<compile_context>
chip_gen: v7x
topology: tpu7x:2x2x1
jax: 0.10.0
libtpu: 0.0.40
codegen_flags: <defaults>
</compile_context>

<pallas_src>
import functools
import math

import jax
import jax.numpy as jnp
from jax.experimental import pallas as pl
from jax.experimental.pallas import tpu as pltpu


# ----------------------------------------------------------------------------
# Fused kernel: whole Block_encoder_bottleneck forward for one batch element
# ----------------------------------------------------------------------------
def _block_kernel(x_ref, masks_ref, ln0_ref, wconv_ref, bconv_ref,
                  wdw_ref, bdw_ref, lnqkv_ref, win_ref, bin_ref,
                  wout_ref, bout_ref, lnt_ref, o_ref,
                  *, H, W, Cin, Cout, P):
    f32 = jnp.float32
    bf16 = jnp.bfloat16
    N = H * W
    Lp = (H + 2 * P) * W          # flat length of the row-haloed image
    OFF = P * W                   # lane offset of the interior (128-aligned when possible)
    Cp = Cout                     # channel count of every im2col chunk (Cout % 8 == 0)

    row_mask = masks_ref[7:8, :]                      # (1, Lp): 1 on interior rows

    def cmask(s):                                     # (1, Lp): 1 where column c+s is valid
        return masks_ref[s + 3:s + 4, :]

    def ln_cm(v, g, b):                               # LayerNorm over channel axis 0
        mu = jnp.mean(v, axis=0, keepdims=True)
        var = jnp.mean(jnp.square(v - mu), axis=0, keepdims=True)
        return (v - mu) * jax.lax.rsqrt(var + 1e-5) * g + b

    def gelu(v):
        # TODO(synk): tanh-form GELU (EUP tanh); PyTorch F.gelu defaults to erf (~1e-3 diff).
        return 0.5 * v * (1.0 + jnp.tanh(0.7978845608028654 * (v + 0.044715 * v * v * v)))

    def expand(v):                                    # (C, N) -> (C, Lp), zero halo rows
        z = jnp.zeros((v.shape[0], OFF), f32)
        return jnp.concatenate([z, v, z], axis=1)

    def interior(v):                                  # (C, Lp) -> (C, N)
        return v[:, OFF:OFF + N]

    def shift_read(v, s):                             # out[., i] = v[., i + s]   (s static)
        return pltpu.roll(v, (-s) % Lp, 1) if s % Lp else v

    def col_variants(src, dils):
        # Column-shifted (and masked) copies of a clean-halo source for every
        # horizontal tap offset needed by dilations `dils`.
        out = {0: src}
        for d in dils:
            for s in (-d, d):
                if s not in out:
                    out[s] = shift_read(src, s) * cmask(s)
        return out

    def conv3x3(cols, w_bf, b, d):
        # 'same' 3x3 conv (dilation d) as a single im2col MXU matmul.
        chunks = []
        for kh in range(3):
            rshift = (kh - 1) * d * W
            for kw in range(3):
                chunks.append(shift_read(cols[(kw - 1) * d], rshift))
        col_mat = jnp.concatenate(chunks, axis=0).astype(bf16)        # (9*Cp, Lp)
        return jnp.dot(w_bf, col_mat, preferred_element_type=f32) + b  # (Cout, Lp)

    # ---- LayerNorm(x) -> conv1 + ReLU -> conv2 + ReLU ---------------------------
    x = x_ref[0].astype(f32)                                           # (Cin, N)
    xn = ln_cm(x, ln0_ref[0], ln0_ref[1])
    xp = expand(xn)                                                    # (Cin, Lp), clean halo
    if Cin < Cp:                                                       # zero-pad channels
        xp = jnp.concatenate([xp, jnp.zeros((Cp - Cin, Lp), f32)], axis=0)
    x1 = jnp.maximum(conv3x3(col_variants(xp, (1,)),
                             wconv_ref[0], bconv_ref[0], 1), 0.0)
    x1 = jnp.maximum(conv3x3(col_variants(x1 * row_mask, (1,)),
                             wconv_ref[1], bconv_ref[1], 1), 0.0)
    # TODO(synk): F.dropout(p=0.3, training=True) treated as identity.

    # ---- Attention: depthwise 3x3 q/k/v + ReLU + LayerNorm ----------------------
    cols_dw = col_variants(x1 * row_mask, (1,))
    acc = [jnp.zeros((Cout, Lp), f32) for _ in range(3)]
    for kh in range(3):
        rshift = (kh - 1) * W
        for kw in range(3):
            tap = 3 * kh + kw
            sh = shift_read(cols_dw[kw - 1], rshift)
            acc = [a + wdw_ref[i, tap] * sh for i, a in enumerate(acc)]
    qkv = [ln_cm(jnp.maximum(interior(acc[i]) + bdw_ref[i], 0.0),
                 lnqkv_ref[i, 0], lnqkv_ref[i, 1]) for i in range(3)]

    # ---- single-head nn.MultiheadAttention (1/sqrt(C) folded into Wq/bq) --------
    q_m = jnp.dot(win_ref[0], qkv[0].astype(bf16), preferred_element_type=f32) + bin_ref[0]
    k_m = jnp.dot(win_ref[1], qkv[1].astype(bf16), preferred_element_type=f32) + bin_ref[1]
    v_m = jnp.dot(win_ref[2], qkv[2].astype(bf16), preferred_element_type=f32) + bin_ref[2]
    s_qk = jax.lax.dot_general(q_m.astype(bf16), k_m.astype(bf16),
                               (((0,), (0,)), ((), ())),
                               preferred_element_type=f32)             # (N, N)
    s_qk = s_qk - jnp.max(s_qk, axis=-1, keepdims=True)
    p_qk = jnp.exp(s_qk)
    p_qk = p_qk * (1.0 / jnp.sum(p_qk, axis=-1, keepdims=True))
    attn = jax.lax.dot_general(v_m.astype(bf16), p_qk.astype(bf16),
                               (((1,), (1,)), ((), ())),
                               preferred_element_type=f32)             # (Cout, N)
    attn = jnp.dot(wout_ref[...], attn.astype(bf16),
                   preferred_element_type=f32) + bout_ref[...]

    # ---- Transformer trunk: conv + residual, LayerNorm ---------------------------
    x2 = conv3x3(col_variants(expand(attn), (1,)), wconv_ref[2], bconv_ref[2], 1) + x1
    x2i = interior(x2)                                                 # (Cout, N)
    x3 = expand(ln_cm(x2i, lnt_ref[0], lnt_ref[1]))                    # clean halo

    # ---- Wide_Focus: 3 dilated gelu convs sharing column variants + conv4 --------
    cols_wf = col_variants(x3, (1, 2, 3))
    wf = gelu(conv3x3(cols_wf, wconv_ref[3], bconv_ref[3], 1))
    wf = wf + gelu(conv3x3(cols_wf, wconv_ref[4], bconv_ref[4], 2))
    wf = wf + gelu(conv3x3(cols_wf, wconv_ref[5], bconv_ref[5], 3))
    # TODO(synk): F.dropout(p=0.1, training=True) treated as identity.
    out = gelu(interior(conv3x3(col_variants(wf * row_mask, (1,)),
                                wconv_ref[6], bconv_ref[6], 1))) + x2i

    o_ref[0] = out.astype(o_ref.dtype)                                 # (Cout, N) lane-dense


# ----------------------------------------------------------------------------
# Wrapper: one pallas_call for the whole forward pass
# ----------------------------------------------------------------------------
def block_encoder_bottleneck_forward(x_nchw, params):
    """blk == 'first' / 'bottleneck' branch.  NCHW in -> NCHW out."""
    B, Cin, H, W = x_nchw.shape
    Cout = params["conv1_w"].shape[-1]
    N = H * W
    assert Cout % 8 == 0 and Cin <= Cout, "packing assumes Cin <= Cout and Cout % 8 == 0"
    Cp = Cout
    # Row-halo depth: >= 3 (max dilation) and, if possible, making the interior
    # lane offset a multiple of 128.
    P = next((cand for cand in range(3, 17) if (cand * W) % 128 == 0), 3)
    Lp = (H + 2 * P) * W
    scale = 1.0 / math.sqrt(Cout)

    def pack_conv(wname):
        w = params[wname]                                      # (3, 3, Ci, Cout)
        ci = w.shape[2]
        wt = jnp.transpose(w, (3, 0, 1, 2))                    # (Cout, 3, 3, Ci)
        wt = jnp.pad(wt, ((0, 0), (0, 0), (0, 0), (0, Cp - ci)))
        return wt.reshape(Cout, 9 * Cp).astype(jnp.bfloat16)

    conv_names = [("conv1_w", "conv1_b"), ("conv2_w", "conv2_b"),
                  ("t_conv_w", "t_conv_b"), ("wf1_w", "wf1_b"), ("wf2_w", "wf2_b"),
                  ("wf3_w", "wf3_b"), ("wf4_w", "wf4_b")]
    wconv = jnp.stack([pack_conv(wn) for wn, _ in conv_names])                  # (7, Cout, 9*Cp)
    bconv = jnp.stack([params[bn].reshape(Cout, 1) for _, bn in conv_names])    # (7, Cout, 1)

    wdw = jnp.stack([params[f"dw_{n}_w"].reshape(9, Cout)[..., None]
                     for n in ("q", "k", "v")])                                 # (3, 9, Cout, 1)
    bdw = jnp.stack([params[f"dw_{n}_b"].reshape(Cout, 1) for n in ("q", "k", "v")])
    lnqkv = jnp.stack([jnp.stack([params[f"ln_{n}_g"], params[f"ln_{n}_b"]])
                       for n in ("q", "k", "v")]).reshape(3, 2, Cout, 1)

    win = params["mha_in_w"].reshape(3, Cout, Cout)
    win = win.at[0].multiply(scale).astype(jnp.bfloat16)          # fold q-scaling into Wq
    b_in = params["mha_in_b"].reshape(3, Cout, 1)
    b_in = b_in.at[0].multiply(scale)
    wout = params["mha_out_w"].astype(jnp.bfloat16)               # (Cout, Cout), rows = out
    bout = params["mha_out_b"].reshape(Cout, 1)

    ln0 = jnp.stack([params["ln0_g"], params["ln0_b"]]).reshape(2, Cin, 1)
    lnt = jnp.stack([params["t_ln_g"], params["t_ln_b"]]).reshape(2, Cout, 1)

    # Column-validity masks (horizontal tap shifts -3..3) + interior-row mask.
    col = jnp.arange(Lp, dtype=jnp.int32) % W
    row = jnp.arange(Lp, dtype=jnp.int32) // W
    masks = jnp.stack([((col + s >= 0) & (col + s < W)).astype(jnp.float32)
                       for s in range(-3, 4)]
                      + [((row >= P) & (row < P + H)).astype(jnp.float32)])     # (8, Lp)

    x_flat = x_nchw.reshape(B, Cin, N)                            # NCHW, free reshape

    def bspec(shape):
        nd = len(shape)
        return pl.BlockSpec(shape, lambda i, nd=nd: (0,) * nd)

    args = [masks, ln0, wconv, bconv, wdw, bdw, lnqkv, win, b_in, wout, bout, lnt]
    in_specs = [pl.BlockSpec((1, Cin, N), lambda i: (i, 0, 0))]
    in_specs += [bspec(a.shape) for a in args]

    kern = functools.partial(_block_kernel, H=H, W=W, Cin=Cin, Cout=Cout, P=P)
    out = pl.pallas_call(
        kern,
        out_shape=jax.ShapeDtypeStruct((B, Cout, N), x_nchw.dtype),
        grid=(B,),
        in_specs=in_specs,
        out_specs=pl.BlockSpec((1, Cout, N), lambda i: (i, 0, 0)),
        compiler_params=pltpu.CompilerParams(
            dimension_semantics=("parallel",)),                   # 2nd TensorCore on v7x
    )(x_flat, *args)

    return out.reshape(B, Cout, H, W)                             # channel-major == NCHW


# ----------------------------------------------------------------------------
# Deterministic parameter init (shapes follow the module's __init__)
# ----------------------------------------------------------------------------
def init_params(key, c_in, c_out):
    keys = iter(jax.random.split(key, 64))

    def nrm(shape, scale=0.1):
        return jax.random.normal(next(keys), shape, jnp.float32) * scale

    p = {}
    p["ln0_g"] = jnp.ones((c_in,), jnp.float32)
    p["ln0_b"] = jnp.zeros((c_in,), jnp.float32)
    p["conv1_w"] = nrm((3, 3, c_in, c_out))        # dense conv weights (kh, kw, Cin, Cout)
    p["conv1_b"] = nrm((c_out,))
    p["conv2_w"] = nrm((3, 3, c_out, c_out))
    p["conv2_b"] = nrm((c_out,))
    for nm in ("q", "k", "v"):                     # Attention depthwise projections
        p[f"dw_{nm}_w"] = nrm((3, 3, c_out))       # depthwise weights (kh, kw, C)
        p[f"dw_{nm}_b"] = nrm((c_out,))
        p[f"ln_{nm}_g"] = jnp.ones((c_out,), jnp.float32)
        p[f"ln_{nm}_b"] = jnp.zeros((c_out,), jnp.float32)
    p["mha_in_w"] = nrm((3 * c_out, c_out))        # nn.MultiheadAttention in_proj_weight
    p["mha_in_b"] = nrm((3 * c_out,))
    p["mha_out_w"] = nrm((c_out, c_out))
    p["mha_out_b"] = nrm((c_out,))
    p["t_conv_w"] = nrm((3, 3, c_out, c_out))      # Transformer.conv1
    p["t_conv_b"] = nrm((c_out,))
    p["t_ln_g"] = jnp.ones((c_out,), jnp.float32)
    p["t_ln_b"] = jnp.zeros((c_out,), jnp.float32)
    for i in range(1, 5):                          # Wide_Focus conv1..conv4
        p[f"wf{i}_w"] = nrm((3, 3, c_out, c_out))
        p[f"wf{i}_b"] = nrm((c_out,))
    return p


if __name__ == "__main__":
    key = jax.random.PRNGKey(0)
    kx, kp = jax.random.split(key)

    B, C_IN, H, W = 2, 4, 16, 16
    C_OUT = 8                                      # att_heads unused (num_heads=1 inside MHA)

    x = jax.random.normal(kx, (B, C_IN, H, W), jnp.float32)   # NCHW, like the PyTorch module
    params = init_params(kp, C_IN, C_OUT)

    fwd = jax.jit(block_encoder_bottleneck_forward)
    out = fwd(x, params)
    jax.block_until_ready(out)

    assert out.shape == (B, C_OUT, H, W), out.shape
    assert out.dtype == jnp.float32
    assert bool(jnp.all(jnp.isfinite(out)))
    print("KERNEL_OK")
</pallas_src>

<mosaic_0001>
module attributes {stable_mosaic.version = 11 : i64} {
  func.func @_block_kernel(%arg0: i32, %arg1: memref<1x4x256xf32, #tpu.memory_space<vmem>>, %arg2: memref<8x512xf32, #tpu.memory_space<vmem>>, %arg3: memref<2x4x1xf32, #tpu.memory_space<vmem>>, %arg4: memref<7x8x72xbf16, #tpu.memory_space<vmem>>, %arg5: memref<7x8x1xf32, #tpu.memory_space<vmem>>, %arg6: memref<3x9x8x1xf32, #tpu.memory_space<vmem>>, %arg7: memref<3x8x1xf32, #tpu.memory_space<vmem>>, %arg8: memref<3x2x8x1xf32, #tpu.memory_space<vmem>>, %arg9: memref<3x8x8xbf16, #tpu.memory_space<vmem>>, %arg10: memref<3x8x1xf32, #tpu.memory_space<vmem>>, %arg11: memref<8x8xbf16, #tpu.memory_space<vmem>>, %arg12: memref<8x1xf32, #tpu.memory_space<vmem>>, %arg13: memref<2x8x1xf32, #tpu.memory_space<vmem>>, %arg14: memref<1x8x256xf32, #tpu.memory_space<vmem>>) attributes {dimension_semantics = [#tpu.dimension_semantics<parallel>], iteration_bounds = array<i64: 2>, scalar_prefetch = 0 : i64, scratch_operands = 0 : i64, tpu.core_type = #tpu.core_type<tc>, window_params = [{transform_indices = @transform_0, window_bounds = array<i64: 1, 4, 256>}, {pipeline_mode = #tpu.pipeline_mode<synchronous>, transform_indices = @transform_1, window_bounds = array<i64: 8, 512>}, {pipeline_mode = #tpu.pipeline_mode<synchronous>, transform_indices = @transform_2, window_bounds = array<i64: 2, 4, 1>}, {pipeline_mode = #tpu.pipeline_mode<synchronous>, transform_indices = @transform_3, window_bounds = array<i64: 7, 8, 72>}, {pipeline_mode = #tpu.pipeline_mode<synchronous>, transform_indices = @transform_4, window_bounds = array<i64: 7, 8, 1>}, {pipeline_mode = #tpu.pipeline_mode<synchronous>, transform_indices = @transform_5, window_bounds = array<i64: 3, 9, 8, 1>}, {pipeline_mode = #tpu.pipeline_mode<synchronous>, transform_indices = @transform_6, window_bounds = array<i64: 3, 8, 1>}, {pipeline_mode = #tpu.pipeline_mode<synchronous>, transform_indices = @transform_7, window_bounds = array<i64: 3, 2, 8, 1>}, {pipeline_mode = #tpu.pipeline_mode<synchronous>, transform_indices = @transform_8, window_bounds = array<i64: 3, 8, 8>}, {pipeline_mode = #tpu.pipeline_mode<synchronous>, transform_indices = @transform_9, window_bounds = array<i64: 3, 8, 1>}, {pipeline_mode = #tpu.pipeline_mode<synchronous>, transform_indices = @transform_10, window_bounds = array<i64: 8, 8>}, {pipeline_mode = #tpu.pipeline_mode<synchronous>, transform_indices = @transform_11, window_bounds = array<i64: 8, 1>}, {pipeline_mode = #tpu.pipeline_mode<synchronous>, transform_indices = @transform_12, window_bounds = array<i64: 2, 8, 1>}, {transform_indices = @transform_13, window_bounds = array<i64: 1, 8, 256>}]} {
    %c7 = arith.constant 7 : index
    %c0 = arith.constant 0 : index
    %0 = vector.load %arg2[%c7, %c0] : memref<8x512xf32, #tpu.memory_space<vmem>>, vector<1x512xf32>
    %c0_0 = arith.constant 0 : index
    %c0_1 = arith.constant 0 : index
    %c0_2 = arith.constant 0 : index
    %1 = vector.load %arg1[%c0_0, %c0_1, %c0_2] : memref<1x4x256xf32, #tpu.memory_space<vmem>>, vector<1x4x256xf32>
    %2 = vector.shape_cast %1 : vector<1x4x256xf32> to vector<4x256xf32>
    %c0_3 = arith.constant 0 : index
    %c0_4 = arith.constant 0 : index
    %c0_5 = arith.constant 0 : index
    %3 = vector.load %arg3[%c0_3, %c0_4, %c0_5] : memref<2x4x1xf32, #tpu.memory_space<vmem>>, vector<1x4x1xf32>
    %4 = vector.shape_cast %3 : vector<1x4x1xf32> to vector<4x1xf32>
    %c1 = arith.constant 1 : index
    %c0_6 = arith.constant 0 : index
    %c0_7 = arith.constant 0 : index
    %5 = vector.load %arg3[%c1, %c0_6, %c0_7] : memref<2x4x1xf32, #tpu.memory_space<vmem>>, vector<1x4x1xf32>
    %6 = vector.shape_cast %5 : vector<1x4x1xf32> to vector<4x1xf32>
    %cst = arith.constant dense<0.000000e+00> : vector<256xf32>
    %7 = vector.multi_reduction <add>, %2, %cst [0] : vector<4x256xf32> to vector<256xf32>
    %8 = vector.shape_cast %7 : vector<256xf32> to vector<1x256xf32>
    %cst_8 = arith.constant 4.000000e+00 : f32
    %9 = vector.broadcast %cst_8 : f32 to vector<1x256xf32>
    %10 = arith.divf %8, %9 : vector<1x256xf32>
    %11 = vector.broadcast %10 : vector<1x256xf32> to vector<4x256xf32>
    %12 = arith.subf %2, %11 : vector<4x256xf32>
    %13 = arith.mulf %12, %12 : vector<4x256xf32>
    %cst_9 = arith.constant dense<0.000000e+00> : vector<256xf32>
    %14 = vector.multi_reduction <add>, %13, %cst_9 [0] : vector<4x256xf32> to vector<256xf32>
    %15 = vector.shape_cast %14 : vector<256xf32> to vector<1x256xf32>
    %cst_10 = arith.constant 4.000000e+00 : f32
    %16 = vector.broadcast %cst_10 : f32 to vector<1x256xf32>
    %17 = arith.divf %15, %16 : vector<1x256xf32>
    %18 = vector.broadcast %10 : vector<1x256xf32> to vector<4x256xf32>
    %19 = arith.subf %2, %18 : vector<4x256xf32>
    %cst_11 = arith.constant 9.99999974E-6 : f32
    %20 = vector.broadcast %cst_11 : f32 to vector<1x256xf32>
    %21 = arith.addf %17, %20 : vector<1x256xf32>
    %22 = math.rsqrt %21 : vector<1x256xf32>
    %23 = vector.broadcast %22 : vector<1x256xf32> to vector<4x256xf32>
    %24 = arith.mulf %19, %23 : vector<4x256xf32>
    %25 = vector.broadcast %4 : vector<4x1xf32> to vector<4x256xf32>
    %26 = arith.mulf %24, %25 : vector<4x256xf32>
    %27 = vector.broadcast %6 : vector<4x1xf32> to vector<4x256xf32>
    %28 = arith.addf %26, %27 : vector<4x256xf32>
    %cst_12 = arith.constant 0.000000e+00 : f32
    %29 = vector.broadcast %cst_12 : f32 to vector<4x128xf32>
    %30 = tpu.concatenate %29, %28, %29 in 1 : vector<4x128xf32>, vector<4x256xf32>, vector<4x128xf32> -> vector<4x512xf32>
    %cst_13 = arith.constant 0.000000e+00 : f32
    %31 = vector.broadcast %cst_13 : f32 to vector<4x512xf32>
    %32 = tpu.concatenate %30, %31 in 0 : vector<4x512xf32>, vector<4x512xf32> -> vector<8x512xf32>
    %c1_i32 = arith.constant 1 : i32
    %33 = tpu.dynamic_rotate %32 by %c1_i32 dim 1 : vector<8x512xf32>, i32 -> vector<8x512xf32>
    %c2 = arith.constant 2 : index
    %c0_14 = arith.constant 0 : index
    %34 = vector.load %arg2[%c2, %c0_14] : memref<8x512xf32, #tpu.memory_space<vmem>>, vector<1x512xf32>
    %35 = vector.broadcast %34 : vector<1x512xf32> to vector<8x512xf32>
    %36 = arith.mulf %33, %35 : vector<8x512xf32>
    %c511_i32 = arith.constant 511 : i32
    %37 = tpu.dynamic_rotate %32 by %c511_i32 dim 1 : vector<8x512xf32>, i32 -> vector<8x512xf32>
    %c4 = arith.constant 4 : index
    %c0_15 = arith.constant 0 : index
    %38 = vector.load %arg2[%c4, %c0_15] : memref<8x512xf32, #tpu.memory_space<vmem>>, vector<1x512xf32>
    %39 = vector.broadcast %38 : vector<1x512xf32> to vector<8x512xf32>
    %40 = arith.mulf %37, %39 : vector<8x512xf32>
    %c0_16 = arith.constant 0 : index
    %c0_17 = arith.constant 0 : index
    %c0_18 = arith.constant 0 : index
    %41 = vector.load %arg4[%c0_16, %c0_17, %c0_18] : memref<7x8x72xbf16, #tpu.memory_space<vmem>>, vector<1x8x72xbf16>
    %42 = vector.shape_cast %41 : vector<1x8x72xbf16> to vector<8x72xbf16>
    %c0_19 = arith.constant 0 : index
    %c0_20 = arith.constant 0 : index
    %c0_21 = arith.constant 0 : index
    %43 = vector.load %arg5[%c0_19, %c0_20, %c0_21] : memref<7x8x1xf32, #tpu.memory_space<vmem>>, vector<1x8x1xf32>
    %44 = vector.shape_cast %43 : vector<1x8x1xf32> to vector<8x1xf32>
    %c16_i32 = arith.constant 16 : i32
    %45 = tpu.dynamic_rotate %36 by %c16_i32 dim 1 : vector<8x512xf32>, i32 -> vector<8x512xf32>
    %c16_i32_22 = arith.constant 16 : i32
    %46 = tpu.dynamic_rotate %32 by %c16_i32_22 dim 1 : vector<8x512xf32>, i32 -> vector<8x512xf32>
    %c16_i32_23 = arith.constant 16 : i32
    %47 = tpu.dynamic_rotate %40 by %c16_i32_23 dim 1 : vector<8x512xf32>, i32 -> vector<8x512xf32>
    %c496_i32 = arith.constant 496 : i32
    %48 = tpu.dynamic_rotate %36 by %c496_i32 dim 1 : vector<8x512xf32>, i32 -> vector<8x512xf32>
    %c496_i32_24 = arith.constant 496 : i32
    %49 = tpu.dynamic_rotate %32 by %c496_i32_24 dim 1 : vector<8x512xf32>, i32 -> vector<8x512xf32>
    %c496_i32_25 = arith.constant 496 : i32
    %50 = tpu.dynamic_rotate %40 by %c496_i32_25 dim 1 : vector<8x512xf32>, i32 -> vector<8x512xf32>
    %51 = tpu.concatenate %45, %46, %47, %36, %32, %40, %48, %49, %50 in 0 : vector<8x512xf32>, vector<8x512xf32>, vector<8x512xf32>, vector<8x512xf32>, vector<8x512xf32>, vector<8x512xf32>, vector<8x512xf32>, vector<8x512xf32>, vector<8x512xf32> -> vector<72x512xf32>
    %52 = arith.truncf %51 : vector<72x512xf32> to vector<72x512xbf16>
    %cst_26 = arith.constant dense<0.000000e+00> : vector<8x512xf32>
    %53 = tpu.matmul %42, %52, %cst_26 {dimension_numbers = #tpu.dot_dimension_numbers<[1], [0], [0], [1], [0, 0, 1, 1], [], []>} : vector<8x72xbf16>, vector<72x512xbf16>, vector<8x512xf32> -> vector<8x512xf32>
    %54 = vector.broadcast %44 : vector<8x1xf32> to vector<8x512xf32>
    %55 = arith.addf %53, %54 : vector<8x512xf32>
    %cst_27 = arith.constant 0.000000e+00 : f32
    %56 = vector.broadcast %cst_27 : f32 to vector<8x512xf32>
    %57 = arith.maximumf %55, %56 : vector<8x512xf32>
    %58 = vector.broadcast %0 : vector<1x512xf32> to vector<8x512xf32>
    %59 = arith.mulf %57, %58 : vector<8x512xf32>
    %c1_i32_28 = arith.constant 1 : i32
    %60 = tpu.dynamic_rotate %59 by %c1_i32_28 dim 1 : vector<8x512xf32>, i32 -> vector<8x512xf32>
    %c2_29 = arith.constant 2 : index
    %c0_30 = arith.constant 0 : index
    %61 = vector.load %arg2[%c2_29, %c0_30] : memref<8x512xf32, #tpu.memory_space<vmem>>, vector<1x512xf32>
    %62 = vector.broadcast %61 : vector<1x512xf32> to vector<8x512xf32>
    %63 = arith.mulf %60, %62 : vector<8x512xf32>
    %c511_i32_31 = arith.constant 511 : i32
    %64 = tpu.dynamic_rotate %59 by %c511_i32_31 dim 1 : vector<8x512xf32>, i32 -> vector<8x512xf32>
    %c4_32 = arith.constant 4 : index
    %c0_33 = arith.constant 0 : index
    %65 = vector.load %arg2[%c4_32, %c0_33] : memref<8x512xf32, #tpu.memory_space<vmem>>, vector<1x512xf32>
    %66 = vector.broadcast %65 : vector<1x512xf32> to vector<8x512xf32>
    %67 = arith.mulf %64, %66 : vector<8x512xf32>
    %c1_34 = arith.constant 1 : index
    %c0_35 = arith.constant 0 : index
    %c0_36 = arith.constant 0 : index
    %68 = vector.load %arg4[%c1_34, %c0_35, %c0_36] : memref<7x8x72xbf16, #tpu.memory_space<vmem>>, vector<1x8x72xbf16>
    %69 = vector.shape_cast %68 : vector<1x8x72xbf16> to vector<8x72xbf16>
    %c1_37 = arith.constant 1 : index
    %c0_38 = arith.constant 0 : index
    %c0_39 = arith.constant 0 : index
    %70 = vector.load %arg5[%c1_37, %c0_38, %c0_39] : memref<7x8x1xf32, #tpu.memory_space<vmem>>, vector<1x8x1xf32>
    %71 = vector.shape_cast %70 : vector<1x8x1xf32> to vector<8x1xf32>
    %c16_i32_40 = arith.constant 16 : i32
    %72 = tpu.dynamic_rotate %63 by %c16_i32_40 dim 1 : vector<8x512xf32>, i32 -> vector<8x512xf32>
    %c16_i32_41 = arith.constant 16 : i32
    %73 = tpu.dynamic_rotate %59 by %c16_i32_41 dim 1 : vector<8x512xf32>, i32 -> vector<8x512xf32>
    %c16_i32_42 = arith.constant 16 : i32
    %74 = tpu.dynamic_rotate %67 by %c16_i32_42 dim 1 : vector<8x512xf32>, i32 -> vector<8x512xf32>
    %c496_i32_43 = arith.constant 496 : i32
    %75 = tpu.dynamic_rotate %63 by %c496_i32_43 dim 1 : vector<8x512xf32>, i32 -> vector<8x512xf32>
    %c496_i32_44 = arith.constant 496 : i32
    %76 = tpu.dynamic_rotate %59 by %c496_i32_44 dim 1 : vector<8x512xf32>, i32 -> vector<8x512xf32>
    %c496_i32_45 = arith.constant 496 : i32
    %77 = tpu.dynamic_rotate %67 by %c496_i32_45 dim 1 : vector<8x512xf32>, i32 -> vector<8x512xf32>
    %78 = tpu.concatenate %72, %73, %74, %63, %59, %67, %75, %76, %77 in 0 : vector<8x512xf32>, vector<8x512xf32>, vector<8x512xf32>, vector<8x512xf32>, vector<8x512xf32>, vector<8x512xf32>, vector<8x512xf32>, vector<8x512xf32>, vector<8x512xf32> -> vector<72x512xf32>
    %79 = arith.truncf %78 : vector<72x512xf32> to vector<72x512xbf16>
    %cst_46 = arith.constant dense<0.000000e+00> : vector<8x512xf32>
    %80 = tpu.matmul %69, %79, %cst_46 {dimension_numbers = #tpu.dot_dimension_numbers<[1], [0], [0], [1], [0, 0, 1, 1], [], []>} : vector<8x72xbf16>, vector<72x512xbf16>, vector<8x512xf32> -> vector<8x512xf32>
    %81 = vector.broadcast %71 : vector<8x1xf32> to vector<8x512xf32>
    %82 = arith.addf %80, %81 : vector<8x512xf32>
    %cst_47 = arith.constant 0.000000e+00 : f32
    %83 = vector.broadcast %cst_47 : f32 to vector<8x512xf32>
    %84 = arith.maximumf %82, %83 : vector<8x512xf32>
    %85 = vector.broadcast %0 : vector<1x512xf32> to vector<8x512xf32>
    %86 = arith.mulf %84, %85 : vector<8x512xf32>
    %c1_i32_48 = arith.constant 1 : i32
    %87 = tpu.dynamic_rotate %86 by %c1_i32_48 dim 1 : vector<8x512xf32>, i32 -> vector<8x512xf32>
    %c2_49 = arith.constant 2 : index
    %c0_50 = arith.constant 0 : index
    %88 = vector.load %arg2[%c2_49, %c0_50] : memref<8x512xf32, #tpu.memory_space<vmem>>, vector<1x512xf32>
    %89 = vector.broadcast %88 : vector<1x512xf32> to vector<8x512xf32>
    %90 = arith.mulf %87, %89 : vector<8x512xf32>
    %c511_i32_51 = arith.constant 511 : i32
    %91 = tpu.dynamic_rotate %86 by %c511_i32_51 dim 1 : vector<8x512xf32>, i32 -> vector<8x512xf32>
    %c4_52 = arith.constant 4 : index
    %c0_53 = arith.constant 0 : index
    %92 = vector.load %arg2[%c4_52, %c0_53] : memref<8x512xf32, #tpu.memory_space<vmem>>, vector<1x512xf32>
    %93 = vector.broadcast %92 : vector<1x512xf32> to vector<8x512xf32>
    %94 = arith.mulf %91, %93 : vector<8x512xf32>
    %cst_54 = arith.constant 0.000000e+00 : f32
    %95 = vector.broadcast %cst_54 : f32 to vector<8x512xf32>
    %cst_55 = arith.constant 0.000000e+00 : f32
    %96 = vector.broadcast %cst_55 : f32 to vector<8x512xf32>
    %cst_56 = arith.constant 0.000000e+00 : f32
    %97 = vector.broadcast %cst_56 : f32 to vector<8x512xf32>
    %c16_i32_57 = arith.constant 16 : i32
    %98 = tpu.dynamic_rotate %90 by %c16_i32_57 dim 1 : vector<8x512xf32>, i32 -> vector<8x512xf32>
    %c0_58 = arith.constant 0 : index
    %c0_59 = arith.constant 0 : index
    %c0_60 = arith.constant 0 : index
    %c0_61 = arith.constant 0 : index
    %99 = vector.load %arg6[%c0_58, %c0_59, %c0_60, %c0_61] : memref<3x9x8x1xf32, #tpu.memory_space<vmem>>, vector<1x1x8x1xf32>
    %100 = vector.shape_cast %99 : vector<1x1x8x1xf32> to vector<8x1xf32>
    %101 = vector.broadcast %100 : vector<8x1xf32> to vector<8x512xf32>
    %102 = arith.mulf %101, %98 : vector<8x512xf32>
    %103 = arith.addf %95, %102 : vector<8x512xf32>
    %c1_62 = arith.constant 1 : index
    %c0_63 = arith.constant 0 : index
    %c0_64 = arith.constant 0 : index
    %c0_65 = arith.constant 0 : index
    %104 = vector.load %arg6[%c1_62, %c0_63, %c0_64, %c0_65] : memref<3x9x8x1xf32, #tpu.memory_space<vmem>>, vector<1x1x8x1xf32>
    %105 = vector.shape_cast %104 : vector<1x1x8x1xf32> to vector<8x1xf32>
    %106 = vector.broadcast %105 : vector<8x1xf32> to vector<8x512xf32>
    %107 = arith.mulf %106, %98 : vector<8x512xf32>
    %108 = arith.addf %96, %107 : vector<8x512xf32>
    %c2_66 = arith.constant 2 : index
    %c0_67 = arith.constant 0 : index
    %c0_68 = arith.constant 0 : index
    %c0_69 = arith.constant 0 : index
    %109 = vector.load %arg6[%c2_66, %c0_67, %c0_68, %c0_69] : memref<3x9x8x1xf32, #tpu.memory_space<vmem>>, vector<1x1x8x1xf32>
    %110 = vector.shape_cast %109 : vector<1x1x8x1xf32> to vector<8x1xf32>
    %111 = vector.broadcast %110 : vector<8x1xf32> to vector<8x512xf32>
    %112 = arith.mulf %111, %98 : vector<8x512xf32>
    %113 = arith.addf %97, %112 : vector<8x512xf32>
    %c16_i32_70 = arith.constant 16 : i32
    %114 = tpu.dynamic_rotate %86 by %c16_i32_70 dim 1 : vector<8x512xf32>, i32 -> vector<8x512xf32>
    %c0_71 = arith.constant 0 : index
    %c1_72 = arith.constant 1 : index
    %c0_73 = arith.constant 0 : index
    %c0_74 = arith.constant 0 : index
    %115 = vector.load %arg6[%c0_71, %c1_72, %c0_73, %c0_74] : memref<3x9x8x1xf32, #tpu.memory_space<vmem>>, vector<1x1x8x1xf32>
    %116 = vector.shape_cast %115 : vector<1x1x8x1xf32> to vector<8x1xf32>
    %117 = vector.broadcast %116 : vector<8x1xf32> to vector<8x512xf32>
    %118 = arith.mulf %117, %114 : vector<8x512xf32>
    %119 = arith.addf %103, %118 : vector<8x512xf32>
    %c1_75 = arith.constant 1 : index
    %c1_76 = arith.constant 1 : index
    %c0_77 = arith.constant 0 : index
    %c0_78 = arith.constant 0 : index
    %120 = vector.load %arg6[%c1_75, %c1_76, %c0_77, %c0_78] : memref<3x9x8x1xf32, #tpu.memory_space<vmem>>, vector<1x1x8x1xf32>
    %121 = vector.shape_cast %120 : vector<1x1x8x1xf32> to vector<8x1xf32>
    %122 = vector.broadcast %121 : vector<8x1xf32> to vector<8x512xf32>
    %123 = arith.mulf %122, %114 : vector<8x512xf32>
    %124 = arith.addf %108, %123 : vector<8x512xf32>
    %c2_79 = arith.constant 2 : index
    %c1_80 = arith.constant 1 : index
    %c0_81 = arith.constant 0 : index
    %c0_82 = arith.constant 0 : index
    %125 = vector.load %arg6[%c2_79, %c1_80, %c0_81, %c0_82] : memref<3x9x8x1xf32, #tpu.memory_space<vmem>>, vector<1x1x8x1xf32>
    %126 = vector.shape_cast %125 : vector<1x1x8x1xf32> to vector<8x1xf32>
    %127 = vector.broadcast %126 : vector<8x1xf32> to vector<8x512xf32>
    %128 = arith.mulf %127, %114 : vector<8x512xf32>
    %129 = arith.addf %113, %128 : vector<8x512xf32>
    %c16_i32_83 = arith.constant 16 : i32
    %130 = tpu.dynamic_rotate %94 by %c16_i32_83 dim 1 : vector<8x512xf32>, i32 -> vector<8x512xf32>
    %c0_84 = arith.constant 0 : index
    %c2_85 = arith.constant 2 : index
    %c0_86 = arith.constant 0 : index
    %c0_87 = arith.constant 0 : index
    %131 = vector.load %arg6[%c0_84, %c2_85, %c0_86, %c0_87] : memref<3x9x8x1xf32, #tpu.memory_space<vmem>>, vector<1x1x8x1xf32>
    %132 = vector.shape_cast %131 : vector<1x1x8x1xf32> to vector<8x1xf32>
    %133 = vector.broadcast %132 : vector<8x1xf32> to vector<8x512xf32>
    %134 = arith.mulf %133, %130 : vector<8x512xf32>
    %135 = arith.addf %119, %134 : vector<8x512xf32>
    %c1_88 = arith.constant 1 : index
    %c2_89 = arith.constant 2 : index
    %c0_90 = arith.constant 0 : index
    %c0_91 = arith.constant 0 : index
    %136 = vector.load %arg6[%c1_88, %c2_89, %c0_90, %c0_91] : memref<3x9x8x1xf32, #tpu.memory_space<vmem>>, vector<1x1x8x1xf32>
    %137 = vector.shape_cast %136 : vector<1x1x8x1xf32> to vector<8x1xf32>
    %138 = vector.broadcast %137 : vector<8x1xf32> to vector<8x512xf32>
    %139 = arith.mulf %138, %130 : vector<8x512xf32>
    %140 = arith.addf %124, %139 : vector<8x512xf32>
    %c2_92 = arith.constant 2 : index
    %c2_93 = arith.constant 2 : index
    %c0_94 = arith.constant 0 : index
    %c0_95 = arith.constant 0 : index
    %141 = vector.load %arg6[%c2_92, %c2_93, %c0_94, %c0_95] : memref<3x9x8x1xf32, #tpu.memory_space<vmem>>, vector<1x1x8x1xf32>
    %142 = vector.shape_cast %141 : vector<1x1x8x1xf32> to vector<8x1xf32>
    %143 = vector.broadcast %142 : vector<8x1xf32> to vector<8x512xf32>
    %144 = arith.mulf %143, %130 : vector<8x512xf32>
    %145 = arith.addf %129, %144 : vector<8x512xf32>
    %c0_96 = arith.constant 0 : index
    %c3 = arith.constant 3 : index
    %c0_97 = arith.constant 0 : index
    %c0_98 = arith.constant 0 : index
    %146 = vector.load %arg6[%c0_96, %c3, %c0_97, %c0_98] : memref<3x9x8x1xf32, #tpu.memory_space<vmem>>, vector<1x1x8x1xf32>
    %147 = vector.shape_cast %146 : vector<1x1x8x1xf32> to vector<8x1xf32>
    %148 = vector.broadcast %147 : vector<8x1xf32> to vector<8x512xf32>
    %149 = arith.mulf %148, %90 : vector<8x512xf32>
    %150 = arith.addf %135, %149 : vector<8x512xf32>
    %c1_99 = arith.constant 1 : index
    %c3_100 = arith.constant 3 : index
    %c0_101 = arith.constant 0 : index
    %c0_102 = arith.constant 0 : index
    %151 = vector.load %arg6[%c1_99, %c3_100, %c0_101, %c0_102] : memref<3x9x8x1xf32, #tpu.memory_space<vmem>>, vector<1x1x8x1xf32>
    %152 = vector.shape_cast %151 : vector<1x1x8x1xf32> to vector<8x1xf32>
    %153 = vector.broadcast %152 : vector<8x1xf32> to vector<8x512xf32>
    %154 = arith.mulf %153, %90 : vector<8x512xf32>
    %155 = arith.addf %140, %154 : vector<8x512xf32>
    %c2_103 = arith.constant 2 : index
    %c3_104 = arith.constant 3 : index
    %c0_105 = arith.constant 0 : index
    %c0_106 = arith.constant 0 : index
    %156 = vector.load %arg6[%c2_103, %c3_104, %c0_105, %c0_106] : memref<3x9x8x1xf32, #tpu.memory_space<vmem>>, vector<1x1x8x1xf32>
    %157 = vector.shape_cast %156 : vector<1x1x8x1xf32> to vector<8x1xf32>
    %158 = vector.broadcast %157 : vector<8x1xf32> to vector<8x512xf32>
    %159 = arith.mulf %158, %90 : vector<8x512xf32>
    %160 = arith.addf %145, %159 : vector<8x512xf32>
    %c0_107 = arith.constant 0 : index
    %c4_108 = arith.constant 4 : index
    %c0_109 = arith.constant 0 : index
    %c0_110 = arith.constant 0 : index
    %161 = vector.load %arg6[%c0_107, %c4_108, %c0_109, %c0_110] : memref<3x9x8x1xf32, #tpu.memory_space<vmem>>, vector<1x1x8x1xf32>
    %162 = vector.shape_cast %161 : vector<1x1x8x1xf32> to vector<8x1xf32>
    %163 = vector.broadcast %162 : vector<8x1xf32> to vector<8x512xf32>
    %164 = arith.mulf %163, %86 : vector<8x512xf32>
    %165 = arith.addf %150, %164 : vector<8x512xf32>
    %c1_111 = arith.constant 1 : index
    %c4_112 = arith.constant 4 : index
    %c0_113 = arith.constant 0 : index
    %c0_114 = arith.constant 0 : index
    %166 = vector.load %arg6[%c1_111, %c4_112, %c0_113, %c0_114] : memref<3x9x8x1xf32, #tpu.memory_space<vmem>>, vector<1x1x8x1xf32>
    %167 = vector.shape_cast %166 : vector<1x1x8x1xf32> to vector<8x1xf32>
    %168 = vector.broadcast %167 : vector<8x1xf32> to vector<8x512xf32>
    %169 = arith.mulf %168, %86 : vector<8x512xf32>
    %170 = arith.addf %155, %169 : vector<8x512xf32>
    %c2_115 = arith.constant 2 : index
    %c4_116 = arith.constant 4 : index
    %c0_117 = arith.constant 0 : index
    %c0_118 = arith.constant 0 : index
    %171 = vector.load %arg6[%c2_115, %c4_116, %c0_117, %c0_118] : memref<3x9x8x1xf32, #tpu.memory_space<vmem>>, vector<1x1x8x1xf32>
    %172 = vector.shape_cast %171 : vector<1x1x8x1xf32> to vector<8x1xf32>
    %173 = vector.broadcast %172 : vector<8x1xf32> to vector<8x512xf32>
    %174 = arith.mulf %173, %86 : vector<8x512xf32>
    %175 = arith.addf %160, %174 : vector<8x512xf32>
    %c0_119 = arith.constant 0 : index
    %c5 = arith.constant 5 : index
    %c0_120 = arith.constant 0 : index
    %c0_121 = arith.constant 0 : index
    %176 = vector.load %arg6[%c0_119, %c5, %c0_120, %c0_121] : memref<3x9x8x1xf32, #tpu.memory_space<vmem>>, vector<1x1x8x1xf32>
    %177 = vector.shape_cast %176 : vector<1x1x8x1xf32> to vector<8x1xf32>
    %178 = vector.broadcast %177 : vector<8x1xf32> to vector<8x512xf32>
    %179 = arith.mulf %178, %94 : vector<8x512xf32>
    %180 = arith.addf %165, %179 : vector<8x512xf32>
    %c1_122 = arith.constant 1 : index
    %c5_123 = arith.constant 5 : index
    %c0_124 = arith.constant 0 : index
    %c0_125 = arith.constant 0 : index
    %181 = vector.load %arg6[%c1_122, %c5_123, %c0_124, %c0_125] : memref<3x9x8x1xf32, #tpu.memory_space<vmem>>, vector<1x1x8x1xf32>
    %182 = vector.shape_cast %181 : vector<1x1x8x1xf32> to vector<8x1xf32>
    %183 = vector.broadcast %182 : vector<8x1xf32> to vector<8x512xf32>
    %184 = arith.mulf %183, %94 : vector<8x512xf32>
    %185 = arith.addf %170, %184 : vector<8x512xf32>
    %c2_126 = arith.constant 2 : index
    %c5_127 = arith.constant 5 : index
    %c0_128 = arith.constant 0 : index
    %c0_129 = arith.constant 0 : index
    %186 = vector.load %arg6[%c2_126, %c5_127, %c0_128, %c0_129] : memref<3x9x8x1xf32, #tpu.memory_space<vmem>>, vector<1x1x8x1xf32>
    %187 = vector.shape_cast %186 : vector<1x1x8x1xf32> to vector<8x1xf32>
    %188 = vector.broadcast %187 : vector<8x1xf32> to vector<8x512xf32>
    %189 = arith.mulf %188, %94 : vector<8x512xf32>
    %190 = arith.addf %175, %189 : vector<8x512xf32>
    %c496_i32_130 = arith.constant 496 : i32
    %191 = tpu.dynamic_rotate %90 by %c496_i32_130 dim 1 : vector<8x512xf32>, i32 -> vector<8x512xf32>
    %c0_131 = arith.constant 0 : index
    %c6 = arith.constant 6 : index
    %c0_132 = arith.constant 0 : index
    %c0_133 = arith.constant 0 : index
    %192 = vector.load %arg6[%c0_131, %c6, %c0_132, %c0_133] : memref<3x9x8x1xf32, #tpu.memory_space<vmem>>, vector<1x1x8x1xf32>
    %193 = vector.shape_cast %192 : vector<1x1x8x1xf32> to vector<8x1xf32>
    %194 = vector.broadcast %193 : vector<8x1xf32> to vector<8x512xf32>
    %195 = arith.mulf %194, %191 : vector<8x512xf32>
    %196 = arith.addf %180, %195 : vector<8x512xf32>
    %c1_134 = arith.constant 1 : index
    %c6_135 = arith.constant 6 : index
    %c0_136 = arith.constant 0 : index
    %c0_137 = arith.constant 0 : index
    %197 = vector.load %arg6[%c1_134, %c6_135, %c0_136, %c0_137] : memref<3x9x8x1xf32, #tpu.memory_space<vmem>>, vector<1x1x8x1xf32>
    %198 = vector.shape_cast %197 : vector<1x1x8x1xf32> to vector<8x1xf32>
    %199 = vector.broadcast %198 : vector<8x1xf32> to vector<8x512xf32>
    %200 = arith.mulf %199, %191 : vector<8x512xf32>
    %201 = arith.addf %185, %200 : vector<8x512xf32>
    %c2_138 = arith.constant 2 : index
    %c6_139 = arith.constant 6 : index
    %c0_140 = arith.constant 0 : index
    %c0_141 = arith.constant 0 : index
    %202 = vector.load %arg6[%c2_138, %c6_139, %c0_140, %c0_141] : memref<3x9x8x1xf32, #tpu.memory_space<vmem>>, vector<1x1x8x1xf32>
    %203 = vector.shape_cast %202 : vector<1x1x8x1xf32> to vector<8x1xf32>
    %204 = vector.broadcast %203 : vector<8x1xf32> to vector<8x512xf32>
    %205 = arith.mulf %204, %191 : vector<8x512xf32>
    %206 = arith.addf %190, %205 : vector<8x512xf32>
    %c496_i32_142 = arith.constant 496 : i32
    %207 = tpu.dynamic_rotate %86 by %c496_i32_142 dim 1 : vector<8x512xf32>, i32 -> vector<8x512xf32>
    %c0_143 = arith.constant 0 : index
    %c7_144 = arith.constant 7 : index
    %c0_145 = arith.constant 0 : index
    %c0_146 = arith.constant 0 : index
    %208 = vector.load %arg6[%c0_143, %c7_144, %c0_145, %c0_146] : memref<3x9x8x1xf32, #tpu.memory_space<vmem>>, vector<1x1x8x1xf32>
    %209 = vector.shape_cast %208 : vector<1x1x8x1xf32> to vector<8x1xf32>
    %210 = vector.broadcast %209 : vector<8x1xf32> to vector<8x512xf32>
    %211 = arith.mulf %210, %207 : vector<8x512xf32>
    %212 = arith.addf %196, %211 : vector<8x512xf32>
    %c1_147 = arith.constant 1 : index
    %c7_148 = arith.constant 7 : index
    %c0_149 = arith.constant 0 : index
    %c0_150 = arith.constant 0 : index
    %213 = vector.load %arg6[%c1_147, %c7_148, %c0_149, %c0_150] : memref<3x9x8x1xf32, #tpu.memory_space<vmem>>, vector<1x1x8x1xf32>
    %214 = vector.shape_cast %213 : vector<1x1x8x1xf32> to vector<8x1xf32>
    %215 = vector.broadcast %214 : vector<8x1xf32> to vector<8x512xf32>
    %216 = arith.mulf %215, %207 : vector<8x512xf32>
    %217 = arith.addf %201, %216 : vector<8x512xf32>
    %c2_151 = arith.constant 2 : index
    %c7_152 = arith.constant 7 : index
    %c0_153 = arith.constant 0 : index
    %c0_154 = arith.constant 0 : index
    %218 = vector.load %arg6[%c2_151, %c7_152, %c0_153, %c0_154] : memref<3x9x8x1xf32, #tpu.memory_space<vmem>>, vector<1x1x8x1xf32>
    %219 = vector.shape_cast %218 : vector<1x1x8x1xf32> to vector<8x1xf32>
    %220 = vector.broadcast %219 : vector<8x1xf32> to vector<8x512xf32>
    %221 = arith.mulf %220, %207 : vector<8x512xf32>
    %222 = arith.addf %206, %221 : vector<8x512xf32>
    %c496_i32_155 = arith.constant 496 : i32
    %223 = tpu.dynamic_rotate %94 by %c496_i32_155 dim 1 : vector<8x512xf32>, i32 -> vector<8x512xf32>
    %c0_156 = arith.constant 0 : index
    %c8 = arith.constant 8 : index
    %c0_157 = arith.constant 0 : index
    %c0_158 = arith.constant 0 : index
    %224 = vector.load %arg6[%c0_156, %c8, %c0_157, %c0_158] : memref<3x9x8x1xf32, #tpu.memory_space<vmem>>, vector<1x1x8x1xf32>
    %225 = vector.shape_cast %224 : vector<1x1x8x1xf32> to vector<8x1xf32>
    %226 = vector.broadcast %225 : vector<8x1xf32> to vector<8x512xf32>
    %227 = arith.mulf %226, %223 : vector<8x512xf32>
    %228 = arith.addf %212, %227 : vector<8x512xf32>
    %c1_159 = arith.constant 1 : index
    %c8_160 = arith.constant 8 : index
    %c0_161 = arith.constant 0 : index
    %c0_162 = arith.constant 0 : index
    %229 = vector.load %arg6[%c1_159, %c8_160, %c0_161, %c0_162] : memref<3x9x8x1xf32, #tpu.memory_space<vmem>>, vector<1x1x8x1xf32>
    %230 = vector.shape_cast %229 : vector<1x1x8x1xf32> to vector<8x1xf32>
    %231 = vector.broadcast %230 : vector<8x1xf32> to vector<8x512xf32>
    %232 = arith.mulf %231, %223 : vector<8x512xf32>
    %233 = arith.addf %217, %232 : vector<8x512xf32>
    %c2_163 = arith.constant 2 : index
    %c8_164 = arith.constant 8 : index
    %c0_165 = arith.constant 0 : index
    %c0_166 = arith.constant 0 : index
    %234 = vector.load %arg6[%c2_163, %c8_164, %c0_165, %c0_166] : memref<3x9x8x1xf32, #tpu.memory_space<vmem>>, vector<1x1x8x1xf32>
    %235 = vector.shape_cast %234 : vector<1x1x8x1xf32> to vector<8x1xf32>
    %236 = vector.broadcast %235 : vector<8x1xf32> to vector<8x512xf32>
    %237 = arith.mulf %236, %223 : vector<8x512xf32>
    %238 = arith.addf %222, %237 : vector<8x512xf32>
    %239 = vector.extract_strided_slice %228 {offsets = [0, 128], sizes = [8, 256], strides = [1, 1]} : vector<8x512xf32> to vector<8x256xf32>
    %c0_167 = arith.constant 0 : index
    %c0_168 = arith.constant 0 : index
    %c0_169 = arith.constant 0 : index
    %240 = vector.load %arg7[%c0_167, %c0_168, %c0_169] : memref<3x8x1xf32, #tpu.memory_space<vmem>>, vector<1x8x1xf32>
    %241 = vector.shape_cast %240 : vector<1x8x1xf32> to vector<8x1xf32>
    %242 = vector.broadcast %241 : vector<8x1xf32> to vector<8x256xf32>
    %243 = arith.addf %239, %242 : vector<8x256xf32>
    %cst_170 = arith.constant 0.000000e+00 : f32
    %244 = vector.broadcast %cst_170 : f32 to vector<8x256xf32>
    %245 = arith.maximumf %243, %244 : vector<8x256xf32>
    %c0_171 = arith.constant 0 : index
    %c0_172 = arith.constant 0 : index
    %c0_173 = arith.constant 0 : index
    %c0_174 = arith.constant 0 : index
    %246 = vector.load %arg8[%c0_171, %c0_172, %c0_173, %c0_174] : memref<3x2x8x1xf32, #tpu.memory_space<vmem>>, vector<1x1x8x1xf32>
    %247 = vector.shape_cast %246 : vector<1x1x8x1xf32> to vector<8x1xf32>
    %c0_175 = arith.constant 0 : index
    %c1_176 = arith.constant 1 : index
    %c0_177 = arith.constant 0 : index
    %c0_178 = arith.constant 0 : index
    %248 = vector.load %arg8[%c0_175, %c1_176, %c0_177, %c0_178] : memref<3x2x8x1xf32, #tpu.memory_space<vmem>>, vector<1x1x8x1xf32>
    %249 = vector.shape_cast %248 : vector<1x1x8x1xf32> to vector<8x1xf32>
    %cst_179 = arith.constant dense<0.000000e+00> : vector<256xf32>
    %250 = vector.multi_reduction <add>, %245, %cst_179 [0] : vector<8x256xf32> to vector<256xf32>
    %251 = vector.shape_cast %250 : vector<256xf32> to vector<1x256xf32>
    %cst_180 = arith.constant 8.000000e+00 : f32
    %252 = vector.broadcast %cst_180 : f32 to vector<1x256xf32>
    %253 = arith.divf %251, %252 : vector<1x256xf32>
    %254 = vector.broadcast %253 : vector<1x256xf32> to vector<8x256xf32>
    %255 = arith.subf %245, %254 : vector<8x256xf32>
    %256 = arith.mulf %255, %255 : vector<8x256xf32>
    %cst_181 = arith.constant dense<0.000000e+00> : vector<256xf32>
    %257 = vector.multi_reduction <add>, %256, %cst_181 [0] : vector<8x256xf32> to vector<256xf32>
    %258 = vector.shape_cast %257 : vector<256xf32> to vector<1x256xf32>
    %cst_182 = arith.constant 8.000000e+00 : f32
    %259 = vector.broadcast %cst_182 : f32 to vector<1x256xf32>
    %260 = arith.divf %258, %259 : vector<1x256xf32>
    %261 = vector.broadcast %253 : vector<1x256xf32> to vector<8x256xf32>
    %262 = arith.subf %245, %261 : vector<8x256xf32>
    %cst_183 = arith.constant 9.99999974E-6 : f32
    %263 = vector.broadcast %cst_183 : f32 to vector<1x256xf32>
    %264 = arith.addf %260, %263 : vector<1x256xf32>
    %265 = math.rsqrt %264 : vector<1x256xf32>
    %266 = vector.broadcast %265 : vector<1x256xf32> to vector<8x256xf32>
    %267 = arith.mulf %262, %266 : vector<8x256xf32>
    %268 = vector.broadcast %247 : vector<8x1xf32> to vector<8x256xf32>
    %269 = arith.mulf %267, %268 : vector<8x256xf32>
    %270 = vector.broadcast %249 : vector<8x1xf32> to vector<8x256xf32>
    %271 = arith.addf %269, %270 : vector<8x256xf32>
    %272 = vector.extract_strided_slice %233 {offsets = [0, 128], sizes = [8, 256], strides = [1, 1]} : vector<8x512xf32> to vector<8x256xf32>
    %c1_184 = arith.constant 1 : index
    %c0_185 = arith.constant 0 : index
    %c0_186 = arith.constant 0 : index
    %273 = vector.load %arg7[%c1_184, %c0_185, %c0_186] : memref<3x8x1xf32, #tpu.memory_space<vmem>>, vector<1x8x1xf32>
    %274 = vector.shape_cast %273 : vector<1x8x1xf32> to vector<8x1xf32>
    %275 = vector.broadcast %274 : vector<8x1xf32> to vector<8x256xf32>
    %276 = arith.addf %272, %275 : vector<8x256xf32>
    %cst_187 = arith.constant 0.000000e+00 : f32
    %277 = vector.broadcast %cst_187 : f32 to vector<8x256xf32>
    %278 = arith.maximumf %276, %277 : vector<8x256xf32>
    %c1_188 = arith.constant 1 : index
    %c0_189 = arith.constant 0 : index
    %c0_190 = arith.constant 0 : index
    %c0_191 = arith.constant 0 : index
    %279 = vector.load %arg8[%c1_188, %c0_189, %c0_190, %c0_191] : memref<3x2x8x1xf32, #tpu.memory_space<vmem>>, vector<1x1x8x1xf32>
    %280 = vector.shape_cast %279 : vector<1x1x8x1xf32> to vector<8x1xf32>
    %c1_192 = arith.constant 1 : index
    %c1_193 = arith.constant 1 : index
    %c0_194 = arith.constant 0 : index
    %c0_195 = arith.constant 0 : index
    %281 = vector.load %arg8[%c1_192, %c1_193, %c0_194, %c0_195] : memref<3x2x8x1xf32, #tpu.memory_space<vmem>>, vector<1x1x8x1xf32>
    %282 = vector.shape_cast %281 : vector<1x1x8x1xf32> to vector<8x1xf32>
    %cst_196 = arith.constant dense<0.000000e+00> : vector<256xf32>
    %283 = vector.multi_reduction <add>, %278, %cst_196 [0] : vector<8x256xf32> to vector<256xf32>
    %284 = vector.shape_cast %283 : vector<256xf32> to vector<1x256xf32>
    %cst_197 = arith.constant 8.000000e+00 : f32
    %285 = vector.broadcast %cst_197 : f32 to vector<1x256xf32>
    %286 = arith.divf %284, %285 : vector<1x256xf32>
    %287 = vector.broadcast %286 : vector<1x256xf32> to vector<8x256xf32>
    %288 = arith.subf %278, %287 : vector<8x256xf32>
    %289 = arith.mulf %288, %288 : vector<8x256xf32>
    %cst_198 = arith.constant dense<0.000000e+00> : vector<256xf32>
    %290 = vector.multi_reduction <add>, %289, %cst_198 [0] : vector<8x256xf32> to vector<256xf32>
    %291 = vector.shape_cast %290 : vector<256xf32> to vector<1x256xf32>
    %cst_199 = arith.constant 8.000000e+00 : f32
    %292 = vector.broadcast %cst_199 : f32 to vector<1x256xf32>
    %293 = arith.divf %291, %292 : vector<1x256xf32>
    %294 = vector.broadcast %286 : vector<1x256xf32> to vector<8x256xf32>
    %295 = arith.subf %278, %294 : vector<8x256xf32>
    %cst_200 = arith.constant 9.99999974E-6 : f32
    %296 = vector.broadcast %cst_200 : f32 to vector<1x256xf32>
    %297 = arith.addf %293, %296 : vector<1x256xf32>
    %298 = math.rsqrt %297 : vector<1x256xf32>
    %299 = vector.broadcast %298 : vector<1x256xf32> to vector<8x256xf32>
    %300 = arith.mulf %295, %299 : vector<8x256xf32>
    %301 = vector.broadcast %280 : vector<8x1xf32> to vector<8x256xf32>
    %302 = arith.mulf %300, %301 : vector<8x256xf32>
    %303 = vector.broadcast %282 : vector<8x1xf32> to vector<8x256xf32>
    %304 = arith.addf %302, %303 : vector<8x256xf32>
    %305 = vector.extract_strided_slice %238 {offsets = [0, 128], sizes = [8, 256], strides = [1, 1]} : vector<8x512xf32> to vector<8x256xf32>
    %c2_201 = arith.constant 2 : index
    %c0_202 = arith.constant 0 : index
    %c0_203 = arith.constant 0 : index
    %306 = vector.load %arg7[%c2_201, %c0_202, %c0_203] : memref<3x8x1xf32, #tpu.memory_space<vmem>>, vector<1x8x1xf32>
    %307 = vector.shape_cast %306 : vector<1x8x1xf32> to vector<8x1xf32>
    %308 = vector.broadcast %307 : vector<8x1xf32> to vector<8x256xf32>
    %309 = arith.addf %305, %308 : vector<8x256xf32>
    %cst_204 = arith.constant 0.000000e+00 : f32
    %310 = vector.broadcast %cst_204 : f32 to vector<8x256xf32>
    %311 = arith.maximumf %309, %310 : vector<8x256xf32>
    %c2_205 = arith.constant 2 : index
    %c0_206 = arith.constant 0 : index
    %c0_207 = arith.constant 0 : index
    %c0_208 = arith.constant 0 : index
    %312 = vector.load %arg8[%c2_205, %c0_206, %c0_207, %c0_208] : memref<3x2x8x1xf32, #tpu.memory_space<vmem>>, vector<1x1x8x1xf32>
    %313 = vector.shape_cast %312 : vector<1x1x8x1xf32> to vector<8x1xf32>
    %c2_209 = arith.constant 2 : index
    %c1_210 = arith.constant 1 : index
    %c0_211 = arith.constant 0 : index
    %c0_212 = arith.constant 0 : index
    %314 = vector.load %arg8[%c2_209, %c1_210, %c0_211, %c0_212] : memref<3x2x8x1xf32, #tpu.memory_space<vmem>>, vector<1x1x8x1xf32>
    %315 = vector.shape_cast %314 : vector<1x1x8x1xf32> to vector<8x1xf32>
    %cst_213 = arith.constant dense<0.000000e+00> : vector<256xf32>
    %316 = vector.multi_reduction <add>, %311, %cst_213 [0] : vector<8x256xf32> to vector<256xf32>
    %317 = vector.shape_cast %316 : vector<256xf32> to vector<1x256xf32>
    %cst_214 = arith.constant 8.000000e+00 : f32
    %318 = vector.broadcast %cst_214 : f32 to vector<1x256xf32>
    %319 = arith.divf %317, %318 : vector<1x256xf32>
    %320 = vector.broadcast %319 : vector<1x256xf32> to vector<8x256xf32>
    %321 = arith.subf %311, %320 : vector<8x256xf32>
    %322 = arith.mulf %321, %321 : vector<8x256xf32>
    %cst_215 = arith.constant dense<0.000000e+00> : vector<256xf32>
    %323 = vector.multi_reduction <add>, %322, %cst_215 [0] : vector<8x256xf32> to vector<256xf32>
    %324 = vector.shape_cast %323 : vector<256xf32> to vector<1x256xf32>
    %cst_216 = arith.constant 8.000000e+00 : f32
    %325 = vector.broadcast %cst_216 : f32 to vector<1x256xf32>
    %326 = arith.divf %324, %325 : vector<1x256xf32>
    %327 = vector.broadcast %319 : vector<1x256xf32> to vector<8x256xf32>
    %328 = arith.subf %311, %327 : vector<8x256xf32>
    %cst_217 = arith.constant 9.99999974E-6 : f32
    %329 = vector.broadcast %cst_217 : f32 to vector<1x256xf32>
    %330 = arith.addf %326, %329 : vector<1x256xf32>
    %331 = math.rsqrt %330 : vector<1x256xf32>
    %332 = vector.broadcast %331 : vector<1x256xf32> to vector<8x256xf32>
    %333 = arith.mulf %328, %332 : vector<8x256xf32>
    %334 = vector.broadcast %313 : vector<8x1xf32> to vector<8x256xf32>
    %335 = arith.mulf %333, %334 : vector<8x256xf32>
    %336 = vector.broadcast %315 : vector<8x1xf32> to vector<8x256xf32>
    %337 = arith.addf %335, %336 : vector<8x256xf32>
    %c0_218 = arith.constant 0 : index
    %c0_219 = arith.constant 0 : index
    %c0_220 = arith.constant 0 : index
    %338 = vector.load %arg9[%c0_218, %c0_219, %c0_220] : memref<3x8x8xbf16, #tpu.memory_space<vmem>>, vector<1x8x8xbf16>
    %339 = vector.shape_cast %338 : vector<1x8x8xbf16> to vector<8x8xbf16>
    %340 = arith.truncf %271 : vector<8x256xf32> to vector<8x256xbf16>
    %cst_221 = arith.constant dense<0.000000e+00> : vector<8x256xf32>
    %341 = tpu.matmul %339, %340, %cst_221 {dimension_numbers = #tpu.dot_dimension_numbers<[1], [0], [0], [1], [0, 0, 1, 1], [], []>} : vector<8x8xbf16>, vector<8x256xbf16>, vector<8x256xf32> -> vector<8x256xf32>
    %c0_222 = arith.constant 0 : index
    %c0_223 = arith.constant 0 : index
    %c0_224 = arith.constant 0 : index
    %342 = vector.load %arg10[%c0_222, %c0_223, %c0_224] : memref<3x8x1xf32, #tpu.memory_space<vmem>>, vector<1x8x1xf32>
    %343 = vector.shape_cast %342 : vector<1x8x1xf32> to vector<8x1xf32>
    %344 = vector.broadcast %343 : vector<8x1xf32> to vector<8x256xf32>
    %345 = arith.addf %341, %344 : vector<8x256xf32>
    %c1_225 = arith.constant 1 : index
    %c0_226 = arith.constant 0 : index
    %c0_227 = arith.constant 0 : index
    %346 = vector.load %arg9[%c1_225, %c0_226, %c0_227] : memref<3x8x8xbf16, #tpu.memory_space<vmem>>, vector<1x8x8xbf16>
    %347 = vector.shape_cast %346 : vector<1x8x8xbf16> to vector<8x8xbf16>
    %348 = arith.truncf %304 : vector<8x256xf32> to vector<8x256xbf16>
    %cst_228 = arith.constant dense<0.000000e+00> : vector<8x256xf32>
    %349 = tpu.matmul %347, %348, %cst_228 {dimension_numbers = #tpu.dot_dimension_numbers<[1], [0], [0], [1], [0, 0, 1, 1], [], []>} : vector<8x8xbf16>, vector<8x256xbf16>, vector<8x256xf32> -> vector<8x256xf32>
    %c1_229 = arith.constant 1 : index
    %c0_230 = arith.constant 0 : index
    %c0_231 = arith.constant 0 : index
    %350 = vector.load %arg10[%c1_229, %c0_230, %c0_231] : memref<3x8x1xf32, #tpu.memory_space<vmem>>, vector<1x8x1xf32>
    %351 = vector.shape_cast %350 : vector<1x8x1xf32> to vector<8x1xf32>
    %352 = vector.broadcast %351 : vector<8x1xf32> to vector<8x256xf32>
    %353 = arith.addf %349, %352 : vector<8x256xf32>
    %c2_232 = arith.constant 2 : index
    %c0_233 = arith.constant 0 : index
    %c0_234 = arith.constant 0 : index
    %354 = vector.load %arg9[%c2_232, %c0_233, %c0_234] : memref<3x8x8xbf16, #tpu.memory_space<vmem>>, vector<1x8x8xbf16>
    %355 = vector.shape_cast %354 : vector<1x8x8xbf16> to vector<8x8xbf16>
    %356 = arith.truncf %337 : vector<8x256xf32> to vector<8x256xbf16>
    %cst_235 = arith.constant dense<0.000000e+00> : vector<8x256xf32>
    %357 = tpu.matmul %355, %356, %cst_235 {dimension_numbers = #tpu.dot_dimension_numbers<[1], [0], [0], [1], [0, 0, 1, 1], [], []>} : vector<8x8xbf16>, vector<8x256xbf16>, vector<8x256xf32> -> vector<8x256xf32>
    %c2_236 = arith.constant 2 : index
    %c0_237 = arith.constant 0 : index
    %c0_238 = arith.constant 0 : index
    %358 = vector.load %arg10[%c2_236, %c0_237, %c0_238] : memref<3x8x1xf32, #tpu.memory_space<vmem>>, vector<1x8x1xf32>
    %359 = vector.shape_cast %358 : vector<1x8x1xf32> to vector<8x1xf32>
    %360 = vector.broadcast %359 : vector<8x1xf32> to vector<8x256xf32>
    %361 = arith.addf %357, %360 : vector<8x256xf32>
    %362 = arith.truncf %345 : vector<8x256xf32> to vector<8x256xbf16>
    %363 = arith.truncf %353 : vector<8x256xf32> to vector<8x256xbf16>
    %cst_239 = arith.constant dense<0.000000e+00> : vector<256x256xf32>
    %364 = tpu.matmul %362, %363, %cst_239 {dimension_numbers = #tpu.dot_dimension_numbers<[0], [0], [1], [1], [0, 1, 1, 1], [], []>} : vector<8x256xbf16>, vector<8x256xbf16>, vector<256x256xf32> -> vector<256x256xf32>
    %cst_240 = arith.constant dense<0xFF800000> : vector<256xf32>
    %365 = vector.multi_reduction <maximumf>, %364, %cst_240 [1] : vector<256x256xf32> to vector<256xf32>
    %366 = vector.shape_cast %365 : vector<256xf32> to vector<256x1xf32>
    %367 = vector.broadcast %366 : vector<256x1xf32> to vector<256x256xf32>
    %368 = arith.subf %364, %367 : vector<256x256xf32>
    %369 = math.exp %368 : vector<256x256xf32>
    %cst_241 = arith.constant dense<0.000000e+00> : vector<256xf32>
    %370 = vector.multi_reduction <add>, %369, %cst_241 [1] : vector<256x256xf32> to vector<256xf32>
    %371 = vector.shape_cast %370 : vector<256xf32> to vector<256x1xf32>
    %cst_242 = arith.constant 1.000000e+00 : f32
    %372 = vector.broadcast %cst_242 : f32 to vector<256x1xf32>
    %373 = arith.divf %372, %371 : vector<256x1xf32>
    %374 = vector.broadcast %373 : vector<256x1xf32> to vector<256x256xf32>
    %375 = arith.mulf %369, %374 : vector<256x256xf32>
    %376 = arith.truncf %361 : vector<8x256xf32> to vector<8x256xbf16>
    %377 = arith.truncf %375 : vector<256x256xf32> to vector<256x256xbf16>
    %cst_243 = arith.constant dense<0.000000e+00> : vector<8x256xf32>
    %378 = tpu.matmul %376, %377, %cst_243 {dimension_numbers = #tpu.dot_dimension_numbers<[1], [1], [0], [0], [0, 0, 1, 0], [], []>} : vector<8x256xbf16>, vector<256x256xbf16>, vector<8x256xf32> -> vector<8x256xf32>
    %c0_244 = arith.constant 0 : index
    %c0_245 = arith.constant 0 : index
    %379 = vector.load %arg11[%c0_244, %c0_245] : memref<8x8xbf16, #tpu.memory_space<vmem>>, vector<8x8xbf16>
    %380 = arith.truncf %378 : vector<8x256xf32> to vector<8x256xbf16>
    %cst_246 = arith.constant dense<0.000000e+00> : vector<8x256xf32>
    %381 = tpu.matmul %379, %380, %cst_246 {dimension_numbers = #tpu.dot_dimension_numbers<[1], [0], [0], [1], [0, 0, 1, 1], [], []>} : vector<8x8xbf16>, vector<8x256xbf16>, vector<8x256xf32> -> vector<8x256xf32>
    %c0_247 = arith.constant 0 : index
    %c0_248 = arith.constant 0 : index
    %382 = vector.load %arg12[%c0_247, %c0_248] : memref<8x1xf32, #tpu.memory_space<vmem>>, vector<8x1xf32>
    %383 = vector.broadcast %382 : vector<8x1xf32> to vector<8x256xf32>
    %384 = arith.addf %381, %383 : vector<8x256xf32>
    %cst_249 = arith.constant 0.000000e+00 : f32
    %385 = vector.broadcast %cst_249 : f32 to vector<8x128xf32>
    %386 = tpu.concatenate %385, %384, %385 in 1 : vector<8x128xf32>, vector<8x256xf32>, vector<8x128xf32> -> vector<8x512xf32>
    %c1_i32_250 = arith.constant 1 : i32
    %387 = tpu.dynamic_rotate %386 by %c1_i32_250 dim 1 : vector<8x512xf32>, i32 -> vector<8x512xf32>
    %c2_251 = arith.constant 2 : index
    %c0_252 = arith.constant 0 : index
    %388 = vector.load %arg2[%c2_251, %c0_252] : memref<8x512xf32, #tpu.memory_space<vmem>>, vector<1x512xf32>
    %389 = vector.broadcast %388 : vector<1x512xf32> to vector<8x512xf32>
    %390 = arith.mulf %387, %389 : vector<8x512xf32>
    %c511_i32_253 = arith.constant 511 : i32
    %391 = tpu.dynamic_rotate %386 by %c511_i32_253 dim 1 : vector<8x512xf32>, i32 -> vector<8x512xf32>
    %c4_254 = arith.constant 4 : index
    %c0_255 = arith.constant 0 : index
    %392 = vector.load %arg2[%c4_254, %c0_255] : memref<8x512xf32, #tpu.memory_space<vmem>>, vector<1x512xf32>
    %393 = vector.broadcast %392 : vector<1x512xf32> to vector<8x512xf32>
    %394 = arith.mulf %391, %393 : vector<8x512xf32>
    %c2_256 = arith.constant 2 : index
    %c0_257 = arith.constant 0 : index
    %c0_258 = arith.constant 0 : index
    %395 = vector.load %arg4[%c2_256, %c0_257, %c0_258] : memref<7x8x72xbf16, #tpu.memory_space<vmem>>, vector<1x8x72xbf16>
    %396 = vector.shape_cast %395 : vector<1x8x72xbf16> to vector<8x72xbf16>
    %c2_259 = arith.constant 2 : index
    %c0_260 = arith.constant 0 : index
    %c0_261 = arith.constant 0 : index
    %397 = vector.load %arg5[%c2_259, %c0_260, %c0_261] : memref<7x8x1xf32, #tpu.memory_space<vmem>>, vector<1x8x1xf32>
    %398 = vector.shape_cast %397 : vector<1x8x1xf32> to vector<8x1xf32>
    %c16_i32_262 = arith.constant 16 : i32
    %399 = tpu.dynamic_rotate %390 by %c16_i32_262 dim 1 : vector<8x512xf32>, i32 -> vector<8x512xf32>
    %c16_i32_263 = arith.constant 16 : i32
    %400 = tpu.dynamic_rotate %386 by %c16_i32_263 dim 1 : vector<8x512xf32>, i32 -> vector<8x512xf32>
    %c16_i32_264 = arith.constant 16 : i32
    %401 = tpu.dynamic_rotate %394 by %c16_i32_264 dim 1 : vector<8x512xf32>, i32 -> vector<8x512xf32>
    %c496_i32_265 = arith.constant 496 : i32
    %402 = tpu.dynamic_rotate %390 by %c496_i32_265 dim 1 : vector<8x512xf32>, i32 -> vector<8x512xf32>
    %c496_i32_266 = arith.constant 496 : i32
    %403 = tpu.dynamic_rotate %386 by %c496_i32_266 dim 1 : vector<8x512xf32>, i32 -> vector<8x512xf32>
    %c496_i32_267 = arith.constant 496 : i32
    %404 = tpu.dynamic_rotate %394 by %c496_i32_267 dim 1 : vector<8x512xf32>, i32 -> vector<8x512xf32>
    %405 = tpu.concatenate %399, %400, %401, %390, %386, %394, %402, %403, %404 in 0 : vector<8x512xf32>, vector<8x512xf32>, vector<8x512xf32>, vector<8x512xf32>, vector<8x512xf32>, vector<8x512xf32>, vector<8x512xf32>, vector<8x512xf32>, vector<8x512xf32> -> vector<72x512xf32>
    %406 = arith.truncf %405 : vector<72x512xf32> to vector<72x512xbf16>
    %cst_268 = arith.constant dense<0.000000e+00> : vector<8x512xf32>
    %407 = tpu.matmul %396, %406, %cst_268 {dimension_numbers = #tpu.dot_dimension_numbers<[1], [0], [0], [1], [0, 0, 1, 1], [], []>} : vector<8x72xbf16>, vector<72x512xbf16>, vector<8x512xf32> -> vector<8x512xf32>
    %408 = vector.broadcast %398 : vector<8x1xf32> to vector<8x512xf32>
    %409 = arith.addf %407, %408 : vector<8x512xf32>
    %410 = arith.addf %409, %84 : vector<8x512xf32>
    %411 = vector.extract_strided_slice %410 {offsets = [0, 128], sizes = [8, 256], strides = [1, 1]} : vector<8x512xf32> to vector<8x256xf32>
    %c0_269 = arith.constant 0 : index
    %c0_270 = arith.constant 0 : index
    %c0_271 = arith.constant 0 : index
    %412 = vector.load %arg13[%c0_269, %c0_270, %c0_271] : memref<2x8x1xf32, #tpu.memory_space<vmem>>, vector<1x8x1xf32>
    %413 = vector.shape_cast %412 : vector<1x8x1xf32> to vector<8x1xf32>
    %c1_272 = arith.constant 1 : index
    %c0_273 = arith.constant 0 : index
    %c0_274 = arith.constant 0 : index
    %414 = vector.load %arg13[%c1_272, %c0_273, %c0_274] : memref<2x8x1xf32, #tpu.memory_space<vmem>>, vector<1x8x1xf32>
    %415 = vector.shape_cast %414 : vector<1x8x1xf32> to vector<8x1xf32>
    %cst_275 = arith.constant dense<0.000000e+00> : vector<256xf32>
    %416 = vector.multi_reduction <add>, %411, %cst_275 [0] : vector<8x256xf32> to vector<256xf32>
    %417 = vector.shape_cast %416 : vector<256xf32> to vector<1x256xf32>
    %cst_276 = arith.constant 8.000000e+00 : f32
    %418 = vector.broadcast %cst_276 : f32 to vector<1x256xf32>
    %419 = arith.divf %417, %418 : vector<1x256xf32>
    %420 = vector.broadcast %419 : vector<1x256xf32> to vector<8x256xf32>
    %421 = arith.subf %411, %420 : vector<8x256xf32>
    %422 = arith.mulf %421, %421 : vector<8x256xf32>
    %cst_277 = arith.constant dense<0.000000e+00> : vector<256xf32>
    %423 = vector.multi_reduction <add>, %422, %cst_277 [0] : vector<8x256xf32> to vector<256xf32>
    %424 = vector.shape_cast %423 : vector<256xf32> to vector<1x256xf32>
    %cst_278 = arith.constant 8.000000e+00 : f32
    %425 = vector.broadcast %cst_278 : f32 to vector<1x256xf32>
    %426 = arith.divf %424, %425 : vector<1x256xf32>
    %427 = vector.broadcast %419 : vector<1x256xf32> to vector<8x256xf32>
    %428 = arith.subf %411, %427 : vector<8x256xf32>
    %cst_279 = arith.constant 9.99999974E-6 : f32
    %429 = vector.broadcast %cst_279 : f32 to vector<1x256xf32>
    %430 = arith.addf %426, %429 : vector<1x256xf32>
    %431 = math.rsqrt %430 : vector<1x256xf32>
    %432 = vector.broadcast %431 : vector<1x256xf32> to vector<8x256xf32>
    %433 = arith.mulf %428, %432 : vector<8x256xf32>
    %434 = vector.broadcast %413 : vector<8x1xf32> to vector<8x256xf32>
    %435 = arith.mulf %433, %434 : vector<8x256xf32>
    %436 = vector.broadcast %415 : vector<8x1xf32> to vector<8x256xf32>
    %437 = arith.addf %435, %436 : vector<8x256xf32>
    %cst_280 = arith.constant 0.000000e+00 : f32
    %438 = vector.broadcast %cst_280 : f32 to vector<8x128xf32>
    %439 = tpu.concatenate %438, %437, %438 in 1 : vector<8x128xf32>, vector<8x256xf32>, vector<8x128xf32> -> vector<8x512xf32>
    %c1_i32_281 = arith.constant 1 : i32
    %440 = tpu.dynamic_rotate %439 by %c1_i32_281 dim 1 : vector<8x512xf32>, i32 -> vector<8x512xf32>
    %c2_282 = arith.constant 2 : index
    %c0_283 = arith.constant 0 : index
    %441 = vector.load %arg2[%c2_282, %c0_283] : memref<8x512xf32, #tpu.memory_space<vmem>>, vector<1x512xf32>
    %442 = vector.broadcast %441 : vector<1x512xf32> to vector<8x512xf32>
    %443 = arith.mulf %440, %442 : vector<8x512xf32>
    %c511_i32_284 = arith.constant 511 : i32
    %444 = tpu.dynamic_rotate %439 by %c511_i32_284 dim 1 : vector<8x512xf32>, i32 -> vector<8x512xf32>
    %c4_285 = arith.constant 4 : index
    %c0_286 = arith.constant 0 : index
    %445 = vector.load %arg2[%c4_285, %c0_286] : memref<8x512xf32, #tpu.memory_space<vmem>>, vector<1x512xf32>
    %446 = vector.broadcast %445 : vector<1x512xf32> to vector<8x512xf32>
    %447 = arith.mulf %444, %446 : vector<8x512xf32>
    %c2_i32 = arith.constant 2 : i32
    %448 = tpu.dynamic_rotate %439 by %c2_i32 dim 1 : vector<8x512xf32>, i32 -> vector<8x512xf32>
    %c1_287 = arith.constant 1 : index
    %c0_288 = arith.constant 0 : index
    %449 = vector.load %arg2[%c1_287, %c0_288] : memref<8x512xf32, #tpu.memory_space<vmem>>, vector<1x512xf32>
    %450 = vector.broadcast %449 : vector<1x512xf32> to vector<8x512xf32>
    %451 = arith.mulf %448, %450 : vector<8x512xf32>
    %c510_i32 = arith.constant 510 : i32
    %452 = tpu.dynamic_rotate %439 by %c510_i32 dim 1 : vector<8x512xf32>, i32 -> vector<8x512xf32>
    %c5_289 = arith.constant 5 : index
    %c0_290 = arith.constant 0 : index
    %453 = vector.load %arg2[%c5_289, %c0_290] : memref<8x512xf32, #tpu.memory_space<vmem>>, vector<1x512xf32>
    %454 = vector.broadcast %453 : vector<1x512xf32> to vector<8x512xf32>
    %455 = arith.mulf %452, %454 : vector<8x512xf32>
    %c3_i32 = arith.constant 3 : i32
    %456 = tpu.dynamic_rotate %439 by %c3_i32 dim 1 : vector<8x512xf32>, i32 -> vector<8x512xf32>
    %c0_291 = arith.constant 0 : index
    %c0_292 = arith.constant 0 : index
    %457 = vector.load %arg2[%c0_291, %c0_292] : memref<8x512xf32, #tpu.memory_space<vmem>>, vector<1x512xf32>
    %458 = vector.broadcast %457 : vector<1x512xf32> to vector<8x512xf32>
    %459 = arith.mulf %456, %458 : vector<8x512xf32>
    %c509_i32 = arith.constant 509 : i32
    %460 = tpu.dynamic_rotate %439 by %c509_i32 dim 1 : vector<8x512xf32>, i32 -> vector<8x512xf32>
    %c6_293 = arith.constant 6 : index
    %c0_294 = arith.constant 0 : index
    %461 = vector.load %arg2[%c6_293, %c0_294] : memref<8x512xf32, #tpu.memory_space<vmem>>, vector<1x512xf32>
    %462 = vector.broadcast %461 : vector<1x512xf32> to vector<8x512xf32>
    %463 = arith.mulf %460, %462 : vector<8x512xf32>
    %c3_295 = arith.constant 3 : index
    %c0_296 = arith.constant 0 : index
    %c0_297 = arith.constant 0 : index
    %464 = vector.load %arg4[%c3_295, %c0_296, %c0_297] : memref<7x8x72xbf16, #tpu.memory_space<vmem>>, vector<1x8x72xbf16>
    %465 = vector.shape_cast %464 : vector<1x8x72xbf16> to vector<8x72xbf16>
    %c3_298 = arith.constant 3 : index
    %c0_299 = arith.constant 0 : index
    %c0_300 = arith.constant 0 : index
    %466 = vector.load %arg5[%c3_298, %c0_299, %c0_300] : memref<7x8x1xf32, #tpu.memory_space<vmem>>, vector<1x8x1xf32>
    %467 = vector.shape_cast %466 : vector<1x8x1xf32> to vector<8x1xf32>
    %c16_i32_301 = arith.constant 16 : i32
    %468 = tpu.dynamic_rotate %443 by %c16_i32_301 dim 1 : vector<8x512xf32>, i32 -> vector<8x512xf32>
    %c16_i32_302 = arith.constant 16 : i32
    %469 = tpu.dynamic_rotate %439 by %c16_i32_302 dim 1 : vector<8x512xf32>, i32 -> vector<8x512xf32>
    %c16_i32_303 = arith.constant 16 : i32
    %470 = tpu.dynamic_rotate %447 by %c16_i32_303 dim 1 : vector<8x512xf32>, i32 -> vector<8x512xf32>
    %c496_i32_304 = arith.constant 496 : i32
    %471 = tpu.dynamic_rotate %443 by %c496_i32_304 dim 1 : vector<8x512xf32>, i32 -> vector<8x512xf32>
    %c496_i32_305 = arith.constant 496 : i32
    %472 = tpu.dynamic_rotate %439 by %c496_i32_305 dim 1 : vector<8x512xf32>, i32 -> vector<8x512xf32>
    %c496_i32_306 = arith.constant 496 : i32
    %473 = tpu.dynamic_rotate %447 by %c496_i32_306 dim 1 : vector<8x512xf32>, i32 -> vector<8x512xf32>
    %474 = tpu.concatenate %468, %469, %470, %443, %439, %447, %471, %472, %473 in 0 : vector<8x512xf32>, vector<8x512xf32>, vector<8x512xf32>, vector<8x512xf32>, vector<8x512xf32>, vector<8x512xf32>, vector<8x512xf32>, vector<8x512xf32>, vector<8x512xf32> -> vector<72x512xf32>
    %475 = arith.truncf %474 : vector<72x512xf32> to vector<72x512xbf16>
    %cst_307 = arith.constant dense<0.000000e+00> : vector<8x512xf32>
    %476 = tpu.matmul %465, %475, %cst_307 {dimension_numbers = #tpu.dot_dimension_numbers<[1], [0], [0], [1], [0, 0, 1, 1], [], []>} : vector<8x72xbf16>, vector<72x512xbf16>, vector<8x512xf32> -> vector<8x512xf32>
    %477 = vector.broadcast %467 : vector<8x1xf32> to vector<8x512xf32>
    %478 = arith.addf %476, %477 : vector<8x512xf32>
    %cst_308 = arith.constant 5.000000e-01 : f32
    %479 = vector.broadcast %cst_308 : f32 to vector<8x512xf32>
    %480 = arith.mulf %479, %478 : vector<8x512xf32>
    %cst_309 = arith.constant 4.471500e-02 : f32
    %481 = vector.broadcast %cst_309 : f32 to vector<8x512xf32>
    %482 = arith.mulf %481, %478 : vector<8x512xf32>
    %483 = arith.mulf %482, %478 : vector<8x512xf32>
    %484 = arith.mulf %483, %478 : vector<8x512xf32>
    %485 = arith.addf %478, %484 : vector<8x512xf32>
    %cst_310 = arith.constant 0.797884583 : f32
    %486 = vector.broadcast %cst_310 : f32 to vector<8x512xf32>
    %487 = arith.mulf %486, %485 : vector<8x512xf32>
    %488 = math.tanh %487 : vector<8x512xf32>
    %cst_311 = arith.constant 1.000000e+00 : f32
    %489 = vector.broadcast %cst_311 : f32 to vector<8x512xf32>
    %490 = arith.addf %489, %488 : vector<8x512xf32>
    %491 = arith.mulf %480, %490 : vector<8x512xf32>
    %c4_312 = arith.constant 4 : index
    %c0_313 = arith.constant 0 : index
    %c0_314 = arith.constant 0 : index
    %492 = vector.load %arg4[%c4_312, %c0_313, %c0_314] : memref<7x8x72xbf16, #tpu.memory_space<vmem>>, vector<1x8x72xbf16>
    %493 = vector.shape_cast %492 : vector<1x8x72xbf16> to vector<8x72xbf16>
    %c4_315 = arith.constant 4 : index
    %c0_316 = arith.constant 0 : index
    %c0_317 = arith.constant 0 : index
    %494 = vector.load %arg5[%c4_315, %c0_316, %c0_317] : memref<7x8x1xf32, #tpu.memory_space<vmem>>, vector<1x8x1xf32>
    %495 = vector.shape_cast %494 : vector<1x8x1xf32> to vector<8x1xf32>
    %c32_i32 = arith.constant 32 : i32
    %496 = tpu.dynamic_rotate %451 by %c32_i32 dim 1 : vector<8x512xf32>, i32 -> vector<8x512xf32>
    %c32_i32_318 = arith.constant 32 : i32
    %497 = tpu.dynamic_rotate %439 by %c32_i32_318 dim 1 : vector<8x512xf32>, i32 -> vector<8x512xf32>
    %c32_i32_319 = arith.constant 32 : i32
    %498 = tpu.dynamic_rotate %455 by %c32_i32_319 dim 1 : vector<8x512xf32>, i32 -> vector<8x512xf32>
    %c480_i32 = arith.constant 480 : i32
    %499 = tpu.dynamic_rotate %451 by %c480_i32 dim 1 : vector<8x512xf32>, i32 -> vector<8x512xf32>
    %c480_i32_320 = arith.constant 480 : i32
    %500 = tpu.dynamic_rotate %439 by %c480_i32_320 dim 1 : vector<8x512xf32>, i32 -> vector<8x512xf32>
    %c480_i32_321 = arith.constant 480 : i32
    %501 = tpu.dynamic_rotate %455 by %c480_i32_321 dim 1 : vector<8x512xf32>, i32 -> vector<8x512xf32>
    %502 = tpu.concatenate %496, %497, %498, %451, %439, %455, %499, %500, %501 in 0 : vector<8x512xf32>, vector<8x512xf32>, vector<8x512xf32>, vector<8x512xf32>, vector<8x512xf32>, vector<8x512xf32>, vector<8x512xf32>, vector<8x512xf32>, vector<8x512xf32> -> vector<72x512xf32>
    %503 = arith.truncf %502 : vector<72x512xf32> to vector<72x512xbf16>
    %cst_322 = arith.constant dense<0.000000e+00> : vector<8x512xf32>
    %504 = tpu.matmul %493, %503, %cst_322 {dimension_numbers = #tpu.dot_dimension_numbers<[1], [0], [0], [1], [0, 0, 1, 1], [], []>} : vector<8x72xbf16>, vector<72x512xbf16>, vector<8x512xf32> -> vector<8x512xf32>
    %505 = vector.broadcast %495 : vector<8x1xf32> to vector<8x512xf32>
    %506 = arith.addf %504, %505 : vector<8x512xf32>
    %cst_323 = arith.constant 5.000000e-01 : f32
    %507 = vector.broadcast %cst_323 : f32 to vector<8x512xf32>
    %508 = arith.mulf %507, %506 : vector<8x512xf32>
    %cst_324 = arith.constant 4.471500e-02 : f32
    %509 = vector.broadcast %cst_324 : f32 to vector<8x512xf32>
    %510 = arith.mulf %509, %506 : vector<8x512xf32>
    %511 = arith.mulf %510, %506 : vector<8x512xf32>
    %512 = arith.mulf %511, %506 : vector<8x512xf32>
    %513 = arith.addf %506, %512 : vector<8x512xf32>
    %cst_325 = arith.constant 0.797884583 : f32
    %514 = vector.broadcast %cst_325 : f32 to vector<8x512xf32>
    %515 = arith.mulf %514, %513 : vector<8x512xf32>
    %516 = math.tanh %515 : vector<8x512xf32>
    %cst_326 = arith.constant 1.000000e+00 : f32
    %517 = vector.broadcast %cst_326 : f32 to vector<8x512xf32>
    %518 = arith.addf %517, %516 : vector<8x512xf32>
    %519 = arith.mulf %508, %518 : vector<8x512xf32>
    %520 = arith.addf %491, %519 : vector<8x512xf32>
    %c5_327 = arith.constant 5 : index
    %c0_328 = arith.constant 0 : index
    %c0_329 = arith.constant 0 : index
    %521 = vector.load %arg4[%c5_327, %c0_328, %c0_329] : memref<7x8x72xbf16, #tpu.memory_space<vmem>>, vector<1x8x72xbf16>
    %522 = vector.shape_cast %521 : vector<1x8x72xbf16> to vector<8x72xbf16>
    %c5_330 = arith.constant 5 : index
    %c0_331 = arith.constant 0 : index
    %c0_332 = arith.constant 0 : index
    %523 = vector.load %arg5[%c5_330, %c0_331, %c0_332] : memref<7x8x1xf32, #tpu.memory_space<vmem>>, vector<1x8x1xf32>
    %524 = vector.shape_cast %523 : vector<1x8x1xf32> to vector<8x1xf32>
    %c48_i32 = arith.constant 48 : i32
    %525 = tpu.dynamic_rotate %459 by %c48_i32 dim 1 : vector<8x512xf32>, i32 -> vector<8x512xf32>
    %c48_i32_333 = arith.constant 48 : i32
    %526 = tpu.dynamic_rotate %439 by %c48_i32_333 dim 1 : vector<8x512xf32>, i32 -> vector<8x512xf32>
    %c48_i32_334 = arith.constant 48 : i32
    %527 = tpu.dynamic_rotate %463 by %c48_i32_334 dim 1 : vector<8x512xf32>, i32 -> vector<8x512xf32>
    %c464_i32 = arith.constant 464 : i32
    %528 = tpu.dynamic_rotate %459 by %c464_i32 dim 1 : vector<8x512xf32>, i32 -> vector<8x512xf32>
    %c464_i32_335 = arith.constant 464 : i32
    %529 = tpu.dynamic_rotate %439 by %c464_i32_335 dim 1 : vector<8x512xf32>, i32 -> vector<8x512xf32>
    %c464_i32_336 = arith.constant 464 : i32
    %530 = tpu.dynamic_rotate %463 by %c464_i32_336 dim 1 : vector<8x512xf32>, i32 -> vector<8x512xf32>
    %531 = tpu.concatenate %525, %526, %527, %459, %439, %463, %528, %529, %530 in 0 : vector<8x512xf32>, vector<8x512xf32>, vector<8x512xf32>, vector<8x512xf32>, vector<8x512xf32>, vector<8x512xf32>, vector<8x512xf32>, vector<8x512xf32>, vector<8x512xf32> -> vector<72x512xf32>
    %532 = arith.truncf %531 : vector<72x512xf32> to vector<72x512xbf16>
    %cst_337 = arith.constant dense<0.000000e+00> : vector<8x512xf32>
    %533 = tpu.matmul %522, %532, %cst_337 {dimension_numbers = #tpu.dot_dimension_numbers<[1], [0], [0], [1], [0, 0, 1, 1], [], []>} : vector<8x72xbf16>, vector<72x512xbf16>, vector<8x512xf32> -> vector<8x512xf32>
    %534 = vector.broadcast %524 : vector<8x1xf32> to vector<8x512xf32>
    %535 = arith.addf %533, %534 : vector<8x512xf32>
    %cst_338 = arith.constant 5.000000e-01 : f32
    %536 = vector.broadcast %cst_338 : f32 to vector<8x512xf32>
    %537 = arith.mulf %536, %535 : vector<8x512xf32>
    %cst_339 = arith.constant 4.471500e-02 : f32
    %538 = vector.broadcast %cst_339 : f32 to vector<8x512xf32>
    %539 = arith.mulf %538, %535 : vector<8x512xf32>
    %540 = arith.mulf %539, %535 : vector<8x512xf32>
    %541 = arith.mulf %540, %535 : vector<8x512xf32>
    %542 = arith.addf %535, %541 : vector<8x512xf32>
    %cst_340 = arith.constant 0.797884583 : f32
    %543 = vector.broadcast %cst_340 : f32 to vector<8x512xf32>
    %544 = arith.mulf %543, %542 : vector<8x512xf32>
    %545 = math.tanh %544 : vector<8x512xf32>
    %cst_341 = arith.constant 1.000000e+00 : f32
    %546 = vector.broadcast %cst_341 : f32 to vector<8x512xf32>
    %547 = arith.addf %546, %545 : vector<8x512xf32>
    %548 = arith.mulf %537, %547 : vector<8x512xf32>
    %549 = arith.addf %520, %548 : vector<8x512xf32>
    %550 = vector.broadcast %0 : vector<1x512xf32> to vector<8x512xf32>
    %551 = arith.mulf %549, %550 : vector<8x512xf32>
    %c1_i32_342 = arith.constant 1 : i32
    %552 = tpu.dynamic_rotate %551 by %c1_i32_342 dim 1 : vector<8x512xf32>, i32 -> vector<8x512xf32>
    %c2_343 = arith.constant 2 : index
    %c0_344 = arith.constant 0 : index
    %553 = vector.load %arg2[%c2_343, %c0_344] : memref<8x512xf32, #tpu.memory_space<vmem>>, vector<1x512xf32>
    %554 = vector.broadcast %553 : vector<1x512xf32> to vector<8x512xf32>
    %555 = arith.mulf %552, %554 : vector<8x512xf32>
    %c511_i32_345 = arith.constant 511 : i32
    %556 = tpu.dynamic_rotate %551 by %c511_i32_345 dim 1 : vector<8x512xf32>, i32 -> vector<8x512xf32>
    %c4_346 = arith.constant 4 : index
    %c0_347 = arith.constant 0 : index
    %557 = vector.load %arg2[%c4_346, %c0_347] : memref<8x512xf32, #tpu.memory_space<vmem>>, vector<1x512xf32>
    %558 = vector.broadcast %557 : vector<1x512xf32> to vector<8x512xf32>
    %559 = arith.mulf %556, %558 : vector<8x512xf32>
    %c6_348 = arith.constant 6 : index
    %c0_349 = arith.constant 0 : index
    %c0_350 = arith.constant 0 : index
    %560 = vector.load %arg4[%c6_348, %c0_349, %c0_350] : memref<7x8x72xbf16, #tpu.memory_space<vmem>>, vector<1x8x72xbf16>
    %561 = vector.shape_cast %560 : vector<1x8x72xbf16> to vector<8x72xbf16>
    %c6_351 = arith.constant 6 : index
    %c0_352 = arith.constant 0 : index
    %c0_353 = arith.constant 0 : index
    %562 = vector.load %arg5[%c6_351, %c0_352, %c0_353] : memref<7x8x1xf32, #tpu.memory_space<vmem>>, vector<1x8x1xf32>
    %563 = vector.shape_cast %562 : vector<1x8x1xf32> to vector<8x1xf32>
    %c16_i32_354 = arith.constant 16 : i32
    %564 = tpu.dynamic_rotate %555 by %c16_i32_354 dim 1 : vector<8x512xf32>, i32 -> vector<8x512xf32>
    %c16_i32_355 = arith.constant 16 : i32
    %565 = tpu.dynamic_rotate %551 by %c16_i32_355 dim 1 : vector<8x512xf32>, i32 -> vector<8x512xf32>
    %c16_i32_356 = arith.constant 16 : i32
    %566 = tpu.dynamic_rotate %559 by %c16_i32_356 dim 1 : vector<8x512xf32>, i32 -> vector<8x512xf32>
    %c496_i32_357 = arith.constant 496 : i32
    %567 = tpu.dynamic_rotate %555 by %c496_i32_357 dim 1 : vector<8x512xf32>, i32 -> vector<8x512xf32>
    %c496_i32_358 = arith.constant 496 : i32
    %568 = tpu.dynamic_rotate %551 by %c496_i32_358 dim 1 : vector<8x512xf32>, i32 -> vector<8x512xf32>
    %c496_i32_359 = arith.constant 496 : i32
    %569 = tpu.dynamic_rotate %559 by %c496_i32_359 dim 1 : vector<8x512xf32>, i32 -> vector<8x512xf32>
    %570 = tpu.concatenate %564, %565, %566, %555, %551, %559, %567, %568, %569 in 0 : vector<8x512xf32>, vector<8x512xf32>, vector<8x512xf32>, vector<8x512xf32>, vector<8x512xf32>, vector<8x512xf32>, vector<8x512xf32>, vector<8x512xf32>, vector<8x512xf32> -> vector<72x512xf32>
    %571 = arith.truncf %570 : vector<72x512xf32> to vector<72x512xbf16>
    %cst_360 = arith.constant dense<0.000000e+00> : vector<8x512xf32>
    %572 = tpu.matmul %561, %571, %cst_360 {dimension_numbers = #tpu.dot_dimension_numbers<[1], [0], [0], [1], [0, 0, 1, 1], [], []>} : vector<8x72xbf16>, vector<72x512xbf16>, vector<8x512xf32> -> vector<8x512xf32>
    %573 = vector.broadcast %563 : vector<8x1xf32> to vector<8x512xf32>
    %574 = arith.addf %572, %573 : vector<8x512xf32>
    %575 = vector.extract_strided_slice %574 {offsets = [0, 128], sizes = [8, 256], strides = [1, 1]} : vector<8x512xf32> to vector<8x256xf32>
    %cst_361 = arith.constant 5.000000e-01 : f32
    %576 = vector.broadcast %cst_361 : f32 to vector<8x256xf32>
    %577 = arith.mulf %576, %575 : vector<8x256xf32>
    %cst_362 = arith.constant 4.471500e-02 : f32
    %578 = vector.broadcast %cst_362 : f32 to vector<8x256xf32>
    %579 = arith.mulf %578, %575 : vector<8x256xf32>
    %580 = arith.mulf %579, %575 : vector<8x256xf32>
    %581 = arith.mulf %580, %575 : vector<8x256xf32>
    %582 = arith.addf %575, %581 : vector<8x256xf32>
    %cst_363 = arith.constant 0.797884583 : f32
    %583 = vector.broadcast %cst_363 : f32 to vector<8x256xf32>
    %584 = arith.mulf %583, %582 : vector<8x256xf32>
    %585 = math.tanh %584 : vector<8x256xf32>
    %cst_364 = arith.constant 1.000000e+00 : f32
    %586 = vector.broadcast %cst_364 : f32 to vector<8x256xf32>
    %587 = arith.addf %586, %585 : vector<8x256xf32>
    %588 = arith.mulf %577, %587 : vector<8x256xf32>
    %589 = arith.addf %588, %411 : vector<8x256xf32>
    %c0_365 = arith.constant 0 : index
    %c0_366 = arith.constant 0 : index
    %c0_367 = arith.constant 0 : index
    %590 = vector.load %arg14[%c0_365, %c0_366, %c0_367] : memref<1x8x256xf32, #tpu.memory_space<vmem>>, vector<1x8x256xf32>
    %591 = vector.shape_cast %590 : vector<1x8x256xf32> to vector<8x256xf32>
    %592 = vector.shape_cast %589 : vector<8x256xf32> to vector<1x8x256xf32>
    tpu.vector_store %arg14[%c0_365, %c0_366, %c0_367], %592 {strides = array<i32>} : memref<1x8x256xf32, #tpu.memory_space<vmem>>, vector<1x8x256xf32>,
    return
  }
  func.func @transform_0(%arg0: i32) -> (i32, i32, i32) {
    %c0_i32 = arith.constant 0 : i32
    %c0_i32_0 = arith.constant 0 : i32
    %c0_i32_1 = arith.constant 0 : i32
    return %arg0, %c0_i32, %c0_i32_0 : i32, i32, i32
  }
  func.func @transform_1(%arg0: i32) -> (i32, i32) {
    %c0_i32 = arith.constant 0 : i32
    %c0_i32_0 = arith.constant 0 : i32
    %c0_i32_1 = arith.constant 0 : i32
    return %c0_i32, %c0_i32_0 : i32, i32
  }
  func.func @transform_2(%arg0: i32) -> (i32, i32, i32) {
    %c0_i32 = arith.constant 0 : i32
    %c0_i32_0 = arith.constant 0 : i32
    %c0_i32_1 = arith.constant 0 : i32
    %c0_i32_2 = arith.constant 0 : i32
    return %c0_i32, %c0_i32_0, %c0_i32_1 : i32, i32, i32
  }
  func.func @transform_3(%arg0: i32) -> (i32, i32, i32) {
    %c0_i32 = arith.constant 0 : i32
    %c0_i32_0 = arith.constant 0 : i32
    %c0_i32_1 = arith.constant 0 : i32
    %c0_i32_2 = arith.constant 0 : i32
    return %c0_i32, %c0_i32_0, %c0_i32_1 : i32, i32, i32
  }
  func.func @transform_4(%arg0: i32) -> (i32, i32, i32) {
    %c0_i32 = arith.constant 0 : i32
    %c0_i32_0 = arith.constant 0 : i32
    %c0_i32_1 = arith.constant 0 : i32
    %c0_i32_2 = arith.constant 0 : i32
    return %c0_i32, %c0_i32_0, %c0_i32_1 : i32, i32, i32
  }
  func.func @transform_5(%arg0: i32) -> (i32, i32, i32, i32) {
    %c0_i32 = arith.constant 0 : i32
    %c0_i32_0 = arith.constant 0 : i32
    %c0_i32_1 = arith.constant 0 : i32
    %c0_i32_2 = arith.constant 0 : i32
    %c0_i32_3 = arith.constant 0 : i32
    return %c0_i32, %c0_i32_0, %c0_i32_1, %c0_i32_2 : i32, i32, i32, i32
  }
  func.func @transform_6(%arg0: i32) -> (i32, i32, i32) {
    %c0_i32 = arith.constant 0 : i32
    %c0_i32_0 = arith.constant 0 : i32
    %c0_i32_1 = arith.constant 0 : i32
    %c0_i32_2 = arith.constant 0 : i32
    return %c0_i32, %c0_i32_0, %c0_i32_1 : i32, i32, i32
  }
  func.func @transform_7(%arg0: i32) -> (i32, i32, i32, i32) {
    %c0_i32 = arith.constant 0 : i32
    %c0_i32_0 = arith.constant 0 : i32
    %c0_i32_1 = arith.constant 0 : i32
    %c0_i32_2 = arith.constant 0 : i32
    %c0_i32_3 = arith.constant 0 : i32
    return %c0_i32, %c0_i32_0, %c0_i32_1, %c0_i32_2 : i32, i32, i32, i32
  }
  func.func @transform_8(%arg0: i32) -> (i32, i32, i32) {
    %c0_i32 = arith.constant 0 : i32
    %c0_i32_0 = arith.constant 0 : i32
    %c0_i32_1 = arith.constant 0 : i32
    %c0_i32_2 = arith.constant 0 : i32
    return %c0_i32, %c0_i32_0, %c0_i32_1 : i32, i32, i32
  }
  func.func @transform_9(%arg0: i32) -> (i32, i32, i32) {
    %c0_i32 = arith.constant 0 : i32
    %c0_i32_0 = arith.constant 0 : i32
    %c0_i32_1 = arith.constant 0 : i32
    %c0_i32_2 = arith.constant 0 : i32
    return %c0_i32, %c0_i32_0, %c0_i32_1 : i32, i32, i32
  }
  func.func @transform_10(%arg0: i32) -> (i32, i32) {
    %c0_i32 = arith.constant 0 : i32
    %c0_i32_0 = arith.constant 0 : i32
    %c0_i32_1 = arith.constant 0 : i32
    return %c0_i32, %c0_i32_0 : i32, i32
  }
  func.func @transform_11(%arg0: i32) -> (i32, i32) {
    %c0_i32 = arith.constant 0 : i32
    %c0_i32_0 = arith.constant 0 : i32
    %c0_i32_1 = arith.constant 0 : i32
    return %c0_i32, %c0_i32_0 : i32, i32
  }
  func.func @transform_12(%arg0: i32) -> (i32, i32, i32) {
    %c0_i32 = arith.constant 0 : i32
    %c0_i32_0 = arith.constant 0 : i32
    %c0_i32_1 = arith.constant 0 : i32
    %c0_i32_2 = arith.constant 0 : i32
    return %c0_i32, %c0_i32_0, %c0_i32_1 : i32, i32, i32
  }
  func.func @transform_13(%arg0: i32) -> (i32, i32, i32) {
    %c0_i32 = arith.constant 0 : i32
    %c0_i32_0 = arith.constant 0 : i32
    %c0_i32_1 = arith.constant 0 : i32
    return %arg0, %c0_i32, %c0_i32_0 : i32, i32, i32
  }
}

</mosaic_0001>

<bundles_post_ra>
// kernel: block_encoder_bottleneck_forward.1
= control target key start
LH: loop header
LB: loop body
LE: loop exit
PB: predicated region body
PF: predicated region fallthrough
CT: control target
= control target key end

     0   :  { %s5010_s25 = smov 0   ;;  %s7264_s0 = inlined_call_operand.vmem [shape: f32[2,4,256], index: 0, kind: input, shape index: {}]   ;;  %s7265_s1 = inlined_call_operand.vmem [shape: f32[8,512], index: 1, kind: input, shape index: {}]   ;;  %s7266_s2 = inlined_call_operand.vmem [shape: f32[2,4,1], index: 2, kind: input, shape index: {}]   ;;  %s7267_s3 = inlined_call_operand.vmem [shape: bf16[7,8,72], index: 3, kind: input, shape index: {}]   ;;  %s7268_s4 = inlined_call_operand.vmem [shape: f32[7,8,1], index: 4, kind: input, shape index: {}]   ;;  %s7269_s5 = inlined_call_operand.vmem [shape: f32[3,9,8,1], index: 5, kind: input, shape index: {}]   ;;  %s7270_s6 = inlined_call_operand.vmem [shape: f32[3,8,1], index: 6, kind: input, shape index: {}]   ;;  %s7271_s7 = inlined_call_operand.vmem [shape: f32[3,2,8,1], index: 7, kind: input, shape index: {}]   ;;  %s7272_s8 = inlined_call_operand.vmem [shape: bf16[3,8,8], index: 8, kind: input, shape index: {}]   ;;  %s7273_s9 = inlined_call_operand.vmem [shape: f32[3,8,1], index: 9, kind: input, shape index: {}]   ;;  %s7274_s10 = inlined_call_operand.vmem [shape: bf16[8,8], index: 10, kind: input, shape index: {}]   ;;  %s7275_s11 = inlined_call_operand.vmem [shape: f32[8,1], index: 11, kind: input, shape index: {}]   ;;  %s7276_s12 = inlined_call_operand.vmem [shape: f32[2,8,1], index: 12, kind: input, shape index: {}]   ;;  %s7277_s13 = inlined_call_operand.vmem [shape: f32[2,8,256], index: 13, kind: output, shape index: {}]  }
   0x1 LB: > { %s4170_s26 = sadd.s32 4294967295, %s4922_s25   ;;  %p4174_p0 = scmp.ge.s32.totalorder %s4922_s25, 1  ;;  %s4922_s25 = sphi %s5010_s25, %s23_s25  }
   0x2   : > { %p387_p1 = scmp.lt.s32.totalorder %s4922_s25, 3 }
   0x4   : > { %p388_p2 = pnand %p4174_p0, %p387_p1 }
   0x6   : > { %391 = sbr.rel (%p388_p2) target bundleno = 4579 (0x11e3), region = 72 }
   0xd   : > { %v445_v0 = vld [vmem:[%s7266_s2] sm:$0xf]  ;;  %v7282_v1 = vmov 0   ;;  %v4180_v2 = vld [vmem:[%s7266_s2 + $0x4] sm:$0xf]  ;;  %v7280_v3 = vmov 0.0   ;;  %v510_v46 = vlaneseq }
   0xe   : > { %4323 = vset.pattern.permute.xlu0 %v7282_v1  ;;  %753 = vmatprep.mubr.bf16.mxu0 %v7282_v1  ;;  %s4926_s14 = smov 1   ;;  %s4927_s15 = smov 127   ;;  %vm451_vm0 = vcmask 1043456   ;;  %v4928_v44 = vmov 839922192   ;;  %vm4931_vm4 = vmmov 1  }
   0xf   : > { %505 = vperm.xlu0 %4323, %v445_v0   ;;  %794 = vmatprep.mubr.bf16.mxu1 %v7282_v1  ;;  %p431_p3 = scmp.lt.s32.totalorder %s4170_s26, 1  ;;  %v508_v45 = vunpack.c.l.s4 %v4928_v44  ;;  %v511_v49 = vshrl.u32 %v510_v46, 7  ;;  %s4929_s20 = smov 16   ;;  %vm5209_vm5 = vmpackc.low %vm4931_vm4, %vm451_vm0  ;;  %vm705_vm7 = vcmask 588800   ;;  %vm1655_vm8 = vcmask 64512  }
  0x10   : > { %534 = vrot.lane.b32.xlu1 %v7280_v3, %s4926_s14  ;;  %s4930_s27 = smov 112   ;;  %s4932_s21 = smov 2  }
  0x11   : > { %4434 = vset.pattern.permute.xlu1 %v7282_v1  ;;  %s7529_s26 = smov (!%p431_p3, %s4170_s26), 1  ;;  %v509_v48 = vunpack.c.0.s8 %v508_v45  ;;  %s4933_s22 = smov 126  }
  0x12   : > { %s4297_s16 = sshll.u32 %s7529_s26, 3  ;;  %s4934_s23 = smov 3  }
  0x13   : > { %518 = vperm.xlu0 %4323, %v4180_v2   ;;  %s435_s19 = scalar_lea.vmem %s7264_s0, %s4297_s16  ;;  %v512_v51 = vsub.s32 %v509_v48, %v511_v49  ;;  %v5060_v2 = vsub.s32 0, %v511_v49  ;;  %s4935_s24 = smov 125  }
  0x14   : > { %573 = vrot.lane.b32.xlu1 %v7280_v3, %s4927_s15  ;;  %v444_v4 = vld [vmem:[%s435_s19] sm:$0xff]  ;;  %s4936_s30 = smov 32   ;;  %s4937_s18 = smov 96  }
  0x15   : > { %v449_v5 = vcombine.high %v444_v4, %v444_v4  ;;  %v452_v6 = vsel %vm451_vm0, %v444_v4, 0.0  ;;  %7376 = vst [vmem:[#allocation3_spill] sm:$0xff] %v5060_v2  ;;  %s4939_s28 = smov 80  }
  0x16   : > { %v453_v8 = vrot.slane %v452_v6, 4 }
  0x17   : > { %v459_v7 = vsel %vm451_vm0, %v449_v5, 0.0  ;;  %v5065_v5 = vand.u32 127, %v510_v46 }
  0x18   : > { %v460_v9 = vrot.slane %v459_v7, 4  ;;  %v454_v10 = vadd.f32 %v453_v8, %v452_v6  ;;  %v5067_v6 = vsub.s32 1, %v511_v49 }
  0x19   : > { %7377 = vst [vmem:[#allocation4_spill] sm:$0xff] %v5065_v5  ;;  %vm542_vm1 = vcmp.lt.s32.totalorder %v5065_v5, 1  ;;  %vm579_vm2 = vcmp.lt.s32.totalorder %v5065_v5, 127  ;;  %vm620_vm3 = vcmp.lt.s32.totalorder %v5065_v5, 16  ;;  %vm654_vm6 = vcmp.lt.s32.totalorder %v5065_v5, 112 }
  0x1a   : > { %v461_v11 = vadd.f32 %v460_v9, %v459_v7  ;;  %v455_v12 = vrot.slane %v454_v10, 2  ;;  %7378 = vst [vmem:[#allocation5_spill] sm:$0xff] %v5067_v6 }
  0x1c   : > { %v462_v13 = vrot.slane %v461_v11, 2  ;;  %v456_v14 = vadd.f32 %v455_v12, %v454_v10 }
  0x1e   : > { %v463_v15 = vadd.f32 %v462_v13, %v461_v11  ;;  %v457_v16 = vrot.slane %v456_v14, 1  ;;  %v4182_v13 = vld [vmem:[%s7265_s1 + $0x4] ss:$8 sm:$0xf] }
  0x20   : > { %v464_v17 = vrot.slane %v463_v15, 1  ;;  %v458_v18 = vadd.f32 %v457_v16, %v456_v14  ;;  %v5088_v14 = vsub.s32 2, %v511_v49 }
  0x22   : > { %v465_v19 = vadd.f32 %v464_v17, %v463_v15  ;;  %v467_v20 = vmul.f32 0.25, %v458_v18  ;;  %7383 = vst [vmem:[#allocation10_spill] sm:$0xff] %v5088_v14  ;;  %v5090_v15 = vsub.s32 3, %v511_v49  ;;  %v5097_v18 = vrot.slane %v4182_v13, %v5088_v14 }
  0x24   : > { %v468_v21 = vmul.f32 0.25, %v465_v19  ;;  %7384 = vst [vmem:[#allocation11_spill] sm:$0xff] %v5090_v15  ;;  %7385 = vst [vmem:[#allocation12_spill] sm:$0xff] %v5097_v18 }
  0x26   : > { %v471_v22 = vcombine.low %v467_v20, %v468_v21  ;;  %v5102_v21 = vrot.slane %v4182_v13, %v5060_v2 }
  0x28   : > { %v473_v23 = vsub.f32 %v444_v4, %v471_v22  ;;  %v4181_v4 = vld [vmem:[%s7265_s1 + $0x2] ss:$8 sm:$0xf]  ;;  %7386 = vst [vmem:[#allocation13_spill] sm:$0xff] %v5102_v21  ;;  %v5105_v22 = vrot.slane %v4182_v13, %v5067_v6 }
  0x29   : > { %v5072_v8 = vrot.slane %v4181_v4, %v5060_v2  ;;  %v5076_v9 = vrot.slane %v4181_v4, %v5067_v6 }
  0x2a   : > { %v474_v24 = vmul.f32 %v473_v23, %v473_v23  ;;  %7387 = vst [vmem:[#allocation14_spill] sm:$0xff] %v5105_v22 }
  0x2b   : > { %7380 = vst [vmem:[#allocation7_spill] sm:$0xff] %v5072_v8  ;;  %7381 = vst [vmem:[#allocation8_spill] sm:$0xff] %v5076_v9 }
  0x2c   : > { %v476_v25 = vcombine.high %v474_v24, %v474_v24  ;;  %v478_v26 = vsel %vm451_vm0, %v474_v24, 0.0  ;;  %v5111_v24 = vrot.slane %v4181_v4, %v5088_v14 }
  0x2d   : > { %v479_v28 = vrot.slane %v478_v26, 4 }
  0x2e   : > { %v485_v27 = vsel %vm451_vm0, %v476_v25, 0.0  ;;  %7388 = vst [vmem:[#allocation15_spill] sm:$0xff] %v5111_v24  ;;  %v5114_v25 = vrot.slane %v4181_v4, %v5090_v15 }
  0x2f   : > { %v486_v29 = vrot.slane %v485_v27, 4  ;;  %v480_v30 = vadd.f32 %v479_v28, %v478_v26 }
  0x30   : > { %7389 = vst [vmem:[#allocation16_spill] sm:$0xff] %v5114_v25 }
  0x31   : > { %v487_v31 = vadd.f32 %v486_v29, %v485_v27  ;;  %v481_v32 = vrot.slane %v480_v30, 2 }
  0x33   : > { %v488_v33 = vrot.slane %v487_v31, 2  ;;  %v482_v34 = vadd.f32 %v481_v32, %v480_v30 }
  0x35   : > { %v489_v35 = vadd.f32 %v488_v33, %v487_v31  ;;  %v483_v36 = vrot.slane %v482_v34, 1 }
  0x37   : > { %v490_v37 = vrot.slane %v489_v35, 1  ;;  %v484_v38 = vadd.f32 %v483_v36, %v482_v34 }
  0x39   : > { %v491_v39 = vadd.f32 %v490_v37, %v489_v35  ;;  %v492_v40 = vmul.f32 0.25, %v484_v38 }
  0x3b   : > { %v493_v41 = vmul.f32 0.25, %v491_v39  ;;  %v494_v42 = vadd.f32 1e-05, %v492_v40  ;;  %v5150_v39 = vrot.slane %v4182_v13, %v5090_v15 }
  0x3d   : > { %v495_v43 = vadd.f32 1e-05, %v493_v41  ;;  %4676 = vrsqrt.f32 %v494_v42  ;;  %7390 = vst [vmem:[#allocation17_spill] sm:$0xff] %v5150_v39 }
  0x3f   : > { %4678 = vrsqrt.f32 %v495_v43  ;;  %v611_v43 = vld [vmem:[%s7268_s4] sm:$0xff] }
  0x47   : > { %v4677_v47 = vpop.eup %4676 }
  0x49   : > { %v4679_v50 = vpop.eup %4678 }
  0x4a   : > { %v500_v52 = vcombine.low %v4677_v47, %v4679_v50 }
  0x4c   : > { %v502_v54 = vmul.f32 %v500_v52, %v473_v23 }
  0x82   : > { %v5058_v0 = vpop.permute.xlu1 %534 }
  0x83   : > { %7375 = vst [vmem:[#allocation2_spill] sm:$0xff] %v5058_v0  ;;  %v5080_v10 = vmul.f32 %v5072_v8, %v5058_v0 }
  0x85   : > { %7382 = vst [vmem:[#allocation9_spill] sm:$0xff] %v5080_v10 }
  0x86   : > { %v5069_v7 = vpop.permute.xlu1 %573 }
  0x87   : > { %7379 = vst [vmem:[#allocation6_spill] sm:$0xff] %v5069_v7  ;;  %v609_v40 = vmul.f32 %v5150_v39, %v5069_v7 }
  0x8e   : > { %v506_v53 = vpop.permute.xlu0 %505 }
  0x8f   : > { %v513_v55 = vrot.slane %v506_v53, %v512_v51 }
  0x91   : > { %v515_v57 = vmul.f32 %v513_v55, %v502_v54 }
  0x92   : > { %v519_v56 = vpop.permute.xlu0 %518 }
  0x93   : > { %v526_v58 = vrot.slane %v519_v56, %v512_v51 }
  0x95   : > { %v5042_v59 = vadd.f32 %v526_v58, %v515_v57 }
  0x97   : > { %v532_v60 = vsel %vm451_vm0, %v5042_v59, 0.0  ;;  %v5048_v61 = vcombine.high %v5042_v59, %v5042_v59 }
  0x98   : > { %536 = vrot.lane.b32.xlu1 %v532_v60, %s4926_s14  ;;  %v4324_v63 = vpack.i.bf16 %v532_v60, %v7280_v3 }
  0x99   : > { %v533_v62 = vsel %vm451_vm0, %v5048_v61, 0.0 }
  0x9a   : > { %538 = vrot.lane.b32.xlu0 %v533_v62, %s4926_s14  ;;  %v4354_v41 = vpack.i.bf16 %v533_v62, %v532_v60 }
  0x9c   : > { %577 = vrot.lane.b32.xlu1 %v533_v62, %s4927_s15 }
  0x9e   : > { %575 = vrot.lane.b32.xlu0 %v532_v60, %s4927_s15 }
  0xa2   : > { %4325 = vrot.lane.b32.xlu0 %v4324_v63, %s4929_s20 }
 0x10a   : > { %v537_v11 = vpop.permute.xlu1 %536 }
 0x10b   : > { %v545_v12 = vsel %vm542_vm1, %v5058_v0, %v537_v11 }
 0x10c   : > { %v5093_v16 = vmul.f32 %v5076_v9, %v545_v12  ;;  %v539_v17 = vpop.permute.xlu0 %538 }
 0x10d   : > { %v543_v27 = vsel %vm542_vm1, %v539_v17, %v5058_v0  ;;  %v544_v28 = vsel %vm542_vm1, %v537_v11, %v539_v17 }
 0x10e   : > { %v578_v19 = vpop.permute.xlu1 %577  ;;  %v4329_v20 = vpack.i.bf16 %v5093_v16, %v5080_v10  ;;  %v5137_v34 = vmul.f32 %v5111_v24, %v544_v28  ;;  %v5140_v35 = vmul.f32 %v5114_v25, %v543_v27 }
 0x10f   : > { %v580_v23 = vsel %vm579_vm2, %v578_v19, %v5069_v7 }
 0x110   : > { %4330 = vrot.lane.b32.xlu0 %v4329_v20, %s4929_s20  ;;  %v576_v26 = vpop.permute.xlu0 %575  ;;  %v5128_v31 = vmul.f32 %v5097_v18, %v580_v23  ;;  %v4339_v38 = vpack.i.bf16 %v5140_v35, %v5137_v34 }
 0x111   : > { %v581_v29 = vsel %vm579_vm2, %v576_v26, %v578_v19  ;;  %v582_v30 = vsel %vm579_vm2, %v5069_v7, %v576_v26 }
 0x112   : > { %v5131_v32 = vmul.f32 %v5102_v21, %v582_v30  ;;  %v5134_v33 = vmul.f32 %v5105_v22, %v581_v29 }
 0x114   : > { %v4334_v36 = vpack.i.bf16 %v5131_v32, %v533_v62  ;;  %v4344_v37 = vpack.i.bf16 %v5128_v31, %v5134_v33  ;;  %v4359_v42 = vpack.i.bf16 %v5131_v32, %v7280_v3  ;;  %v4326_v44 = vpop.permute.xlu0 %4325 }
 0x115   : > { %v4328_v45 = vunpack.i.h.bf16 %v4326_v44  ;;  %v5167_v46 = vunpack.i.l.bf16 %v4326_v44 }
 0x116   : > { %4335 = vrot.lane.b32.xlu1 %v4334_v36, %s4929_s20  ;;  %4345 = vrot.lane.b32.xlu0 %v4344_v37, %s4929_s20 }
 0x117   : > { %7391 = vst [vmem:[#allocation18_spill] sm:$0xff] %v5167_v46  ;;  %v633_v51 = vsel %vm620_vm3, %v5167_v46, %v4328_v45 }
 0x11a   : > { %4340 = vrot.lane.b32.xlu1 %v4339_v38, %s4929_s20  ;;  %4350 = vrot.lane.b32.xlu0 %v4329_v20, %s4930_s27 }
 0x11e   : > { %640 = vrot.lane.b32.xlu1 %v609_v40, %s4929_s20  ;;  %4355 = vrot.lane.b32.xlu0 %v4354_v41, %s4930_s27 }
 0x122   : > { %4360 = vrot.lane.b32.xlu1 %v4359_v42, %s4930_s27  ;;  %4370 = vrot.lane.b32.xlu0 %v4344_v37, %s4930_s27 }
 0x126   : > { %4365 = vrot.lane.b32.xlu1 %v4339_v38, %s4930_s27  ;;  %702 = vperm.xlu0 %4323, %v611_v43  }
 0x12a   : > { %674 = vrot.lane.b32.xlu1 %v609_v40, %s4930_s27 }
 0x182   : > { %v4331_v47 = vpop.permute.xlu0 %4330 }
 0x183   : > { %v4333_v48 = vunpack.i.h.bf16 %v4331_v47  ;;  %v5170_v49 = vunpack.i.l.bf16 %v4331_v47 }
 0x185   : > { %7392 = vst [vmem:[#allocation19_spill] sm:$0xff] %v5170_v49  ;;  %v623_v50 = vsel %vm620_vm3, %v5170_v49, %v4333_v48 }
 0x186   : > { %v681_v52 = vpack.c.bf16 %v633_v51, %v623_v50 }
 0x188   : > { %v4336_v53 = vpop.permute.xlu1 %4335  ;;  %v4346_v54 = vpop.permute.xlu0 %4345  ;;  %721 = vmatprep.subr.bf16.mxu0 %v681_v52 }
 0x189   : > { %v4338_v55 = vunpack.i.h.bf16 %v4336_v53  ;;  %v4337_v56 = vunpack.i.l.bf16 %v4336_v53  ;;  %v4347_v57 = vunpack.i.l.bf16 %v4346_v54  ;;  %v4348_v4 = vunpack.i.h.bf16 %v4346_v54 }
 0x18b   : > { %v631_v11 = vsel %vm620_vm3, %v4337_v56, %v5167_v46  ;;  %v644_v12 = vsel %vm620_vm3, %v4338_v55, %v4347_v57  ;;  %v632_v20 = vsel %vm620_vm3, %v4328_v45, %v4337_v56  ;;  %v643_v41 = vsel %vm620_vm3, %v4347_v57, %v4348_v4 }
 0x18c   : > { %v4341_v58 = vpop.permute.xlu1 %4340  ;;  %v5178_v60 = vpop.permute.xlu0 %4350  ;;  %v685_v30 = vpack.c.bf16 %v5093_v16, %v644_v12  ;;  %v4184_v45 = vpack.c.bf16 %v5134_v33, %v5042_v59  ;;  %v686_v47 = vpack.c.bf16 %v5137_v34, %v643_v41  ;;  %v688_v34 = vpack.c.bf16 %v5131_v32, %v7280_v3  ;;  %v610_v41 = vld [vmem:[%s7267_s3] sm:$0xf] }
 0x18d   : > { %v4343_v62 = vunpack.i.h.bf16 %v4341_v58  ;;  %v4342_v63 = vunpack.i.l.bf16 %v4341_v58  ;;  %v5225_v59 = vunpack.i.l.bf16 %v5178_v60 }
 0x18f   : > { %v624_v13 = vsel %vm620_vm3, %v4343_v62, %v5170_v49  ;;  %v621_v17 = vsel %vm620_vm3, %v4342_v63, %v4343_v62  ;;  %v622_v19 = vsel %vm620_vm3, %v4333_v48, %v4342_v63  ;;  %v5217_v48 = vpack.c.bf16 %v609_v40, %v7280_v3  ;;  %7398 = vst [vmem:[#allocation23_spill] sm:$0xff] %v5225_v59 }
 0x190   : > { %v5194_v23 = vpop.permute.xlu1 %640  ;;  %v4356_v26 = vpop.permute.xlu0 %4355  ;;  %v680_v27 = vpack.c.bf16 %v5167_v46, %v624_v13  ;;  %v683_v28 = vpack.c.bf16 %v631_v11, %v621_v17  ;;  %v682_v29 = vpack.c.bf16 %v632_v20, %v622_v19  ;;  %v4189_v40 = vpack.c.bf16 %v5128_v31, %v5048_v61 }
 0x191   : > { %7393 = vst [vmem:[#allocation20_spill] sm:$0xff] %v5194_v23  ;;  %v642_v36 = vsel %vm620_vm3, %v4348_v4, %v5194_v23  ;;  %v645_v37 = vsel %vm620_vm3, %v5194_v23, %v4338_v55  ;;  %7396 = vst [vmem:[#allocation21_spill] sm:$0xff] %v5217_v48  ;;  %v4357_v50 = vunpack.i.l.bf16 %v4356_v26  ;;  %v4353_v55 = vunpack.i.h.bf16 %v5178_v60 }
 0x192   : > { %722 = vmatpush1.bf16.msra.mxu0 %v680_v27  ;;  %762 = vmatprep.subr.bf16.mxu1 %v683_v28  ;;  %v687_v38 = vpack.c.bf16 %v5140_v35, %v642_v36  ;;  %v684_v16 = vpack.c.bf16 %v5080_v10, %v645_v37  ;;  %v4358_v35 = vunpack.i.h.bf16 %v4356_v26 }
 0x193   : > { %723 = vmatprep.subr.bf16.mxu0 %v685_v30  ;;  %763 = vmatpush1.bf16.msra.mxu1 %v682_v29  ;;  %v657_v17 = vsel %vm654_vm6, %v5225_v59, %v4353_v55 }
 0x194   : > { %v4361_v42 = vpop.permute.xlu1 %4360  ;;  %v4371_v43 = vpop.permute.xlu0 %4370  ;;  %764 = vmatprep.subr.bf16.mxu1 %v687_v38  ;;  %v666_v58 = vsel %vm654_vm6, %v4357_v50, %v4358_v35 }
 0x195   : > { %v5219_v51 = vunpack.i.l.bf16 %v4361_v42  ;;  %v4373_v52 = vunpack.i.h.bf16 %v4371_v43  ;;  %v4372_v53 = vunpack.i.l.bf16 %v4371_v43  ;;  %v4363_v54 = vunpack.i.h.bf16 %v4361_v42  ;;  %v4179_v42 = vld [vmem:[%s7265_s1 + $0x7] ss:$8 sm:$0xf] }
 0x196   : > { %724 = vmatpush1.bf16.msra.mxu0 %v684_v16 }
 0x197   : > { %7397 = vst [vmem:[#allocation22_spill] sm:$0xff] %v5219_v51  ;;  %4185 = vmatprep.subr.msk.bf16.mxu0 %vm5209_vm5, %v4184_v45  ;;  %765 = vmatpush1.bf16.msra.mxu1 %v686_v47  ;;  %v667_v60 = vsel %vm654_vm6, %v5219_v51, %v4357_v50  ;;  %v665_v62 = vsel %vm654_vm6, %v4358_v35, %v5219_v51 }
 0x198   : > { %v4366_v33 = vpop.permute.xlu1 %4365  ;;  %766 = vmatprep.subr.bf16.mxu1 %v5217_v48  ;;  %v677_v32 = vsel %vm654_vm6, %v4372_v53, %v4373_v52  ;;  %v678_v4 = vsel %vm654_vm6, %v4363_v54, %v4372_v53  ;;  %v692_v20 = vpack.c.bf16 %v667_v60, %v657_v17  ;;  %v5281_v35 = vrot.slane %v4179_v42, %v5060_v2 }
 0x199   : > { %v4368_v56 = vunpack.i.h.bf16 %v4366_v33  ;;  %v4367_v57 = vunpack.i.l.bf16 %v4366_v33  ;;  %v697_v26 = vpack.c.bf16 %v677_v32, %v677_v32  ;;  %v696_v30 = vpack.c.bf16 %v678_v4, %v678_v4 }
 0x19a   : > { %726 = vmatpush1.bf16.msra.mxu0 %v688_v34  ;;  %7400 = vst [vmem:[#allocation25_spill] sm:$0xff] %v5281_v35  ;;  %v5284_v53 = vrot.slane %v4179_v42, %v5067_v6 }
 0x19b   : > { %4190 = vmatpush1.bf16.msk.msra.mxu1 %vm5209_vm5, %v4189_v40  ;;  %v656_v61 = vsel %vm654_vm6, %v4353_v55, %v4367_v57  ;;  %v658_v31 = vsel %vm654_vm6, %v4368_v56, %v5225_v59  ;;  %v655_v63 = vsel %vm654_vm6, %v4367_v57, %v4368_v56  ;;  %v710_v37 = vsel %vm451_vm0, %v696_v30, 0 }
 0x19c   : > { %v5254_v11 = vpop.permute.xlu1 %674  ;;  %v693_v12 = vpack.c.bf16 %v666_v58, %v656_v61  ;;  %v695_v13 = vpack.c.bf16 %v5219_v51, %v658_v31  ;;  %v694_v19 = vpack.c.bf16 %v665_v62, %v655_v63  ;;  %7401 = vst [vmem:[#allocation26_spill] sm:$0xff] %v5284_v53  ;;  %v5297_v61 = vrot.slane %v4179_v42, %v5088_v14 }
 0x19d   : > { %7399 = vst [vmem:[#allocation24_spill] sm:$0xff] %v5254_v11  ;;  %v679_v27 = vsel %vm654_vm6, %v5254_v11, %v4363_v54  ;;  %v676_v28 = vsel %vm654_vm6, %v4373_v52, %v5254_v11  ;;  %v5300_v63 = vrot.slane %v4179_v42, %v5090_v15 }
 0x19e   : > { %727 = vmatprep.subr.bf16.mxu0 %v693_v12  ;;  %768 = vmatprep.subr.bf16.mxu1 %v695_v13  ;;  %v699_v29 = vpack.c.bf16 %v679_v27, %v679_v27  ;;  %v698_v36 = vpack.c.bf16 %v676_v28, %v676_v28  ;;  %7402 = vst [vmem:[#allocation27_spill] sm:$0xff] %v5297_v61 }
 0x19f   : > { %728 = vmatpush1.bf16.msra.mxu0 %v692_v20  ;;  %769 = vmatpush1.bf16.msra.mxu1 %v694_v19  ;;  %7403 = vst [vmem:[#allocation28_spill] sm:$0xff] %v5300_v63 }
 0x1a0   : > { %4186 = vmatprep.subr.msk.bf16.mxu0 %vm451_vm0, %v697_v26  ;;  %4191 = vmatprep.subr.msk.bf16.mxu1 %vm451_vm0, %v699_v29  ;;  %v716_v38 = vsel %vm451_vm0, %v698_v36, 0 }
 0x1a3   : > { %730 = vmatpush1.bf16.msra.mxu0 %v710_v37  ;;  %771 = vmatpush1.bf16.msra.mxu1 %v716_v38 }
 0x1a5   : > { %v703_v43 = vpop.permute.xlu0 %702 }
 0x1a6   : > { %4187 = vmatmul.mubr.msk.bf16.vlgmr.msra.gmra.mrb[0].mxu0 %vm705_vm7, %v610_v41  ;;  %4192 = vmatmul.mubr.msk.bf16.vlgmr.msra.gmra.mrb[0].mxu1 %vm705_vm7, %v610_v41 }
 0x1a7   : > { %1012 = vmatprep.mubr.bf16.mxu0 %v7282_v1  ;;  %1053 = vmatprep.mubr.bf16.mxu1 %v7282_v1 }
 0x279   : > { %v755_v16 = vpop.f32.mrb[0].mxu0  ;;  %v796_v44 = vpop.f32.mrb[0].mxu1 }
 0x27a   : > { %v756_v45 = vadd.f32 %v755_v16, %v703_v43  ;;  %v757_v47 = vpop.f32.mrb[1].mxu0  ;;  %v798_v50 = vpop.f32.mrb[1].mxu1  ;;  %v797_v58 = vadd.f32 %v796_v44, %v703_v43 }
 0x27b   : > { %v758_v52 = vadd.f32 %v757_v47, %v703_v43  ;;  %v759_v54 = vpop.f32.mrb[2].mxu0  ;;  %v800_v55 = vpop.f32.mrb[2].mxu1  ;;  %v799_v62 = vadd.f32 %v798_v50, %v703_v43 }
 0x27c   : > { %v803_v33 = vmax.f32 %v756_v45, 0.0  ;;  %v760_v34 = vpop.f32.mrb[3].mxu0  ;;  %v801_v40 = vpop.f32.mrb[3].mxu1  ;;  %v805_v32 = vmax.f32 %v797_v58, 0.0 }
 0x27d   : > { %v804_v56 = vmax.f32 %v758_v52, 0.0  ;;  %v806_v31 = vmax.f32 %v799_v62, 0.0 }
 0x27e   : > { %v5287_v57 = vmul.f32 %v5281_v35, %v803_v33  ;;  %v5307_v4 = vmul.f32 %v5297_v61, %v805_v32 }
 0x27f   : > { %v5290_v60 = vmul.f32 %v5284_v53, %v804_v56  ;;  %v5310_v12 = vmul.f32 %v5300_v63, %v806_v31  ;;  %v4194_v31 = vld [vmem:[%s7268_s4 + $0x8] sm:$0xff] }
 0x280   : > { %832 = vrot.lane.b32.xlu1 %v5287_v57, %s4926_s14 }
 0x281   : > { %834 = vrot.lane.b32.xlu0 %v5290_v60, %s4926_s14  ;;  %v4374_v13 = vpack.i.bf16 %v5290_v60, %v5287_v57  ;;  %v4379_v17 = vpack.i.bf16 %v5310_v12, %v5307_v4 }
 0x284   : > { %848 = vrot.lane.b32.xlu1 %v5287_v57, %s4927_s15 }
 0x285   : > { %850 = vrot.lane.b32.xlu0 %v5290_v60, %s4927_s15 }
 0x288   : > { %836 = vrot.lane.b32.xlu1 %v5307_v4, %s4926_s14 }
 0x289   : > { %838 = vrot.lane.b32.xlu0 %v5310_v12, %s4926_s14 }
 0x28c   : > { %852 = vrot.lane.b32.xlu1 %v5307_v4, %s4927_s15 }
 0x28d   : > { %854 = vrot.lane.b32.xlu0 %v5310_v12, %s4927_s15 }
 0x290   : > { %4375 = vrot.lane.b32.xlu1 %v4374_v13, %s4929_s20 }
 0x291   : > { %4380 = vrot.lane.b32.xlu0 %v4379_v17, %s4929_s20 }
 0x2f2   : > { %v833_v19 = vpop.permute.xlu1 %832 }
 0x2f3   : > { %v835_v20 = vpop.permute.xlu0 %834 }
 0x2f4   : > { %v842_v28 = vsel %vm542_vm1, %v833_v19, %v835_v20 }
 0x2f5   : > { %v5338_v42 = vmul.f32 %v842_v28, %v5076_v9 }
 0x2f6   : > { %v849_v26 = vpop.permute.xlu1 %848 }
 0x2f7   : > { %v851_v27 = vpop.permute.xlu0 %850 }
 0x2f8   : > { %v858_v43 = vsel %vm579_vm2, %v849_v26, %v851_v27 }
 0x2f9   : > { %v5355_v55 = vmul.f32 %v858_v43, %v5102_v21 }
 0x2fa   : > { %v837_v29 = vpop.permute.xlu1 %836 }
 0x2fb   : > { %v841_v30 = vsel %vm542_vm1, %v835_v20, %v837_v29  ;;  %v839_v36 = vpop.permute.xlu0 %838 }
 0x2fc   : > { %v5331_v37 = vmul.f32 %v841_v30, %v5111_v24  ;;  %v840_v38 = vsel %vm542_vm1, %v837_v29, %v839_v36  ;;  %v843_v41 = vsel %vm542_vm1, %v839_v36, %v833_v19 }
 0x2fd   : > { %v5343_v16 = vmul.f32 %v843_v41, %v5072_v8  ;;  %v5346_v44 = vmul.f32 %v840_v38, %v5114_v25 }
 0x2fe   : > { %v853_v45 = vpop.permute.xlu1 %852 }
 0x2ff   : > { %v857_v47 = vsel %vm579_vm2, %v851_v27, %v853_v45  ;;  %v855_v50 = vpop.permute.xlu0 %854  ;;  %v4384_v52 = vpack.i.bf16 %v5338_v42, %v5343_v16  ;;  %v4399_v54 = vpack.i.bf16 %v5346_v44, %v5331_v37 }
 0x300   : > { %v5358_v33 = vmul.f32 %v857_v47, %v5105_v22  ;;  %v856_v34 = vsel %vm579_vm2, %v853_v45, %v855_v50  ;;  %v859_v40 = vsel %vm579_vm2, %v855_v50, %v849_v26 }
 0x301   : > { %v5365_v56 = vmul.f32 %v856_v34, %v5097_v18  ;;  %v5368_v58 = vmul.f32 %v859_v40, %v5150_v39  ;;  %4385 = vrot.lane.b32.xlu1 %v4384_v52, %s4929_s20  ;;  %4400 = vrot.lane.b32.xlu0 %v4399_v54, %s4929_s20 }
 0x302   : > { %v4389_v62 = vpack.i.bf16 %v5358_v33, %v5355_v55  ;;  %v4376_v19 = vpop.permute.xlu1 %4375 }
 0x303   : > { %v4404_v32 = vpack.i.bf16 %v5368_v58, %v5365_v56  ;;  %v4381_v20 = vpop.permute.xlu0 %4380  ;;  %v4378_v26 = vunpack.i.h.bf16 %v4376_v19  ;;  %v4377_v27 = vunpack.i.l.bf16 %v4376_v19 }
 0x304   : > { %v4382_v28 = vunpack.i.l.bf16 %v4381_v20 }
 0x305   : > { %4390 = vrot.lane.b32.xlu1 %v4389_v62, %s4929_s20  ;;  %4405 = vrot.lane.b32.xlu0 %v4404_v32, %s4929_s20  ;;  %v890_v47 = vsel %vm620_vm3, %v4377_v27, %v4378_v26 }
 0x306   : > { %v889_v43 = vsel %vm620_vm3, %v4378_v26, %v4382_v28 }
 0x309   : > { %4395 = vrot.lane.b32.xlu1 %v4374_v13, %s4930_s27  ;;  %4410 = vrot.lane.b32.xlu0 %v4379_v17, %s4930_s27  ;;  %v4383_v13 = vunpack.i.h.bf16 %v4381_v20 }
 0x30b   : > { %v891_v45 = vsel %vm620_vm3, %v4383_v13, %v4377_v27  ;;  %v888_v50 = vsel %vm620_vm3, %v4382_v28, %v4383_v13 }
 0x30d   : > { %4415 = vrot.lane.b32.xlu1 %v4384_v52, %s4930_s27  ;;  %4425 = vrot.lane.b32.xlu0 %v4399_v54, %s4930_s27 }
 0x311   : > { %4420 = vrot.lane.b32.xlu1 %v4389_v62, %s4930_s27  ;;  %4430 = vrot.lane.b32.xlu0 %v4404_v32, %s4930_s27 }
 0x315   : > { %962 = vperm.xlu1 %4434, %v4194_v31  }
 0x373   : > { %v4401_v17 = vpop.permute.xlu0 %4400  ;;  %v4386_v29 = vpop.permute.xlu1 %4385 }
 0x374   : > { %v4403_v30 = vunpack.i.h.bf16 %v4401_v17  ;;  %v4402_v36 = vunpack.i.l.bf16 %v4401_v17  ;;  %v4388_v38 = vunpack.i.h.bf16 %v4386_v29  ;;  %v4387_v41 = vunpack.i.l.bf16 %v4386_v29 }
 0x376   : > { %v877_v52 = vsel %vm620_vm3, %v4388_v38, %v4402_v36  ;;  %v879_v54 = vsel %vm620_vm3, %v4403_v30, %v4387_v41  ;;  %v878_v34 = vsel %vm620_vm3, %v4387_v41, %v4388_v38  ;;  %v876_v40 = vsel %vm620_vm3, %v4402_v36, %v4403_v30 }
 0x377   : > { %v4406_v62 = vpop.permute.xlu0 %4405  ;;  %v4391_v32 = vpop.permute.xlu1 %4390  ;;  %v941_v31 = vpack.c.bf16 %v890_v47, %v878_v34  ;;  %v943_v19 = vpack.c.bf16 %v888_v50, %v876_v40  ;;  %v940_v20 = vpack.c.bf16 %v891_v45, %v879_v54  ;;  %v942_v26 = vpack.c.bf16 %v889_v43, %v877_v52 }
 0x378   : > { %v4408_v27 = vunpack.i.h.bf16 %v4406_v62  ;;  %v4407_v13 = vunpack.i.l.bf16 %v4406_v62  ;;  %v4393_v28 = vunpack.i.h.bf16 %v4391_v32  ;;  %v4392_v17 = vunpack.i.l.bf16 %v4391_v32 }
 0x379   : > { %980 = vmatprep.subr.bf16.mxu0 %v941_v31  ;;  %1021 = vmatprep.subr.bf16.mxu1 %v943_v19  ;;  %v949_v54 = vpack.c.bf16 %v5358_v33, %v5290_v60  ;;  %v950_v60 = vpack.c.bf16 %v5365_v56, %v5307_v4 }
 0x37a   : > { %v901_v29 = vsel %vm620_vm3, %v4393_v28, %v4407_v13  ;;  %v903_v38 = vsel %vm620_vm3, %v4408_v27, %v4392_v17  ;;  %981 = vmatpush1.bf16.msra.mxu0 %v940_v20  ;;  %1022 = vmatpush1.bf16.msra.mxu1 %v942_v26  ;;  %v902_v30 = vsel %vm620_vm3, %v4392_v17, %v4393_v28 }
 0x37b   : > { %v4411_v36 = vpop.permute.xlu0 %4410  ;;  %v4396_v41 = vpop.permute.xlu1 %4395  ;;  %v945_v43 = vpack.c.bf16 %v5338_v42, %v902_v30  ;;  %v900_v45 = vsel %vm620_vm3, %v4407_v13, %v4408_v27  ;;  %v944_v47 = vpack.c.bf16 %v5343_v16, %v903_v38  ;;  %v946_v52 = vpack.c.bf16 %v5331_v37, %v901_v29 }
 0x37c   : > { %v4413_v50 = vunpack.i.h.bf16 %v4411_v36  ;;  %v4412_v34 = vunpack.i.l.bf16 %v4411_v36  ;;  %v4398_v40 = vunpack.i.h.bf16 %v4396_v41  ;;  %v4397_v62 = vunpack.i.l.bf16 %v4396_v41 }
 0x37d   : > { %982 = vmatprep.subr.bf16.mxu0 %v945_v43  ;;  %v947_v32 = vpack.c.bf16 %v5346_v44, %v900_v45  ;;  %v951_v16 = vpack.c.bf16 %v5368_v58, %v5310_v12  ;;  %v948_v37 = vpack.c.bf16 %v5355_v55, %v5287_v57 }
 0x37e   : > { %983 = vmatpush1.bf16.msra.mxu0 %v944_v47  ;;  %v924_v44 = vsel %vm654_vm6, %v4412_v34, %v4413_v50  ;;  %v926_v27 = vsel %vm654_vm6, %v4397_v62, %v4398_v40  ;;  %v925_v12 = vsel %vm654_vm6, %v4398_v40, %v4412_v34  ;;  %v927_v57 = vsel %vm654_vm6, %v4413_v50, %v4397_v62 }
 0x37f   : > { %1023 = vmatprep.subr.bf16.mxu1 %v947_v32  ;;  %v4426_v42 = vpop.permute.xlu0 %4425  ;;  %v4416_v31 = vpop.permute.xlu1 %4415  ;;  %984 = vmatprep.subr.bf16.mxu0 %v949_v54 }
 0x380   : > { %1024 = vmatpush1.bf16.msra.mxu1 %v946_v52  ;;  %v4428_v33 = vunpack.i.h.bf16 %v4426_v42  ;;  %v4427_v19 = vunpack.i.l.bf16 %v4426_v42  ;;  %v4418_v20 = vunpack.i.h.bf16 %v4416_v31  ;;  %v4417_v26 = vunpack.i.l.bf16 %v4416_v31 }
 0x381   : > { %1025 = vmatprep.subr.bf16.mxu1 %v951_v16  ;;  %v4193_v16 = vld [vmem:[%s7267_s3 + $0x4] sm:$0xf] }
 0x382   : > { %v912_v4 = vsel %vm654_vm6, %v4427_v19, %v4428_v33  ;;  %v914_v55 = vsel %vm654_vm6, %v4417_v26, %v4418_v20  ;;  %985 = vmatpush1.bf16.msra.mxu0 %v948_v37  ;;  %v913_v56 = vsel %vm654_vm6, %v4418_v20, %v4427_v19  ;;  %v915_v58 = vsel %vm654_vm6, %v4428_v33, %v4417_v26 }
 0x383   : > { %v4431_v13 = vpop.permute.xlu0 %4430  ;;  %v4421_v28 = vpop.permute.xlu1 %4420  ;;  %v953_v17 = vpack.c.bf16 %v925_v12, %v913_v56  ;;  %v955_v29 = vpack.c.bf16 %v927_v57, %v915_v58  ;;  %v952_v38 = vpack.c.bf16 %v926_v27, %v914_v55  ;;  %v954_v30 = vpack.c.bf16 %v924_v44, %v912_v4 }
 0x384   : > { %1026 = vmatpush1.bf16.msra.mxu1 %v950_v60  ;;  %v4433_v36 = vunpack.i.h.bf16 %v4431_v13  ;;  %v4432_v41 = vunpack.i.l.bf16 %v4431_v13  ;;  %v4423_v43 = vunpack.i.h.bf16 %v4421_v28  ;;  %v4422_v45 = vunpack.i.l.bf16 %v4421_v28 }
 0x385   : > { %986 = vmatprep.subr.bf16.mxu0 %v953_v17  ;;  %1027 = vmatprep.subr.bf16.mxu1 %v955_v29 }
 0x386   : > { %987 = vmatpush1.bf16.msra.mxu0 %v952_v38  ;;  %v937_v47 = vsel %vm654_vm6, %v4423_v43, %v4432_v41  ;;  %v939_v50 = vsel %vm654_vm6, %v4433_v36, %v4422_v45  ;;  %v938_v52 = vsel %vm654_vm6, %v4422_v45, %v4423_v43  ;;  %v936_v54 = vsel %vm654_vm6, %v4432_v41, %v4433_v36  ;;  %v1110_v41 = vld [vmem:[%s7269_s5] sm:$0xff]  ;;  %v4201_v43 = vld [vmem:[%s7269_s5 + $0x8] sm:$0xff]  ;;  %v4204_v45 = vld [vmem:[%s7269_s5 + $0x10] sm:$0xff] }
 0x387   : > { %v957_v34 = vpack.c.bf16 %v937_v47, %v937_v47  ;;  %v959_v40 = vpack.c.bf16 %v939_v50, %v939_v50  ;;  %v956_v62 = vpack.c.bf16 %v938_v52, %v938_v52  ;;  %v958_v32 = vpack.c.bf16 %v936_v54, %v936_v54  ;;  %v4207_v47 = vld [vmem:[%s7269_s5 + $0x18] sm:$0xff]  ;;  %v4210_v50 = vld [vmem:[%s7269_s5 + $0x20] sm:$0xff]  ;;  %v4213_v52 = vld [vmem:[%s7269_s5 + $0x28] sm:$0xff] }
 0x388   : > { %1028 = vmatpush1.bf16.msra.mxu1 %v954_v30  ;;  %v4219_v54 = vld [vmem:[%s7269_s5 + $0x38] sm:$0xff] }
 0x389   : > { %4195 = vmatprep.subr.msk.bf16.mxu0 %vm451_vm0, %v957_v34  ;;  %4197 = vmatprep.subr.msk.bf16.mxu1 %vm451_vm0, %v959_v40  ;;  %v969_v42 = vsel %vm451_vm0, %v956_v62, 0  ;;  %v975_v31 = vsel %vm451_vm0, %v958_v32, 0  ;;  %v4216_v34 = vld [vmem:[%s7269_s5 + $0x30] sm:$0xff]  ;;  %v4222_v40 = vld [vmem:[%s7269_s5 + $0x40] sm:$0xff] }
 0x38a   : > { %989 = vmatpush1.bf16.msra.mxu0 %v969_v42  ;;  %v1446_v62 = vld [vmem:[%s7270_s6] sm:$0xff] }
 0x38c   : > { %1030 = vmatpush1.bf16.msra.mxu1 %v975_v31 }
 0x38d   : > { %4196 = vmatmul.mubr.msk.bf16.vlgmr.msra.gmra.mrb[4].mxu0 %vm705_vm7, %v4193_v16 }
 0x38e   : > { %1697 = vmatprep.mubr.bf16.mxu0 %v7282_v1 }
 0x38f   : > { %4198 = vmatmul.mubr.msk.bf16.vlgmr.msra.gmra.mrb[4].mxu1 %vm705_vm7, %v4193_v16 }
 0x390   : > { %1758 = vmatprep.mubr.bf16.mxu1 %v7282_v1 }
 0x394   : > { %v963_v37 = vpop.permute.xlu1 %962 }
 0x460   : > { %v1014_v60 = vpop.f32.mrb[4].mxu0 }
 0x461   : > { %v1015_v33 = vadd.f32 %v1014_v60, %v963_v37  ;;  %v1016_v19 = vpop.f32.mrb[5].mxu0 }
 0x462   : > { %v1055_v20 = vpop.f32.mrb[4].mxu1  ;;  %v5458_v26 = vadd.f32 %v1016_v19, %v963_v37  ;;  %v1018_v44 = vpop.f32.mrb[6].mxu0 }
 0x463   : > { %v1062_v27 = vmax.f32 %v1015_v33, 0.0  ;;  %v5460_v12 = vadd.f32 %v1055_v20, %v963_v37  ;;  %v1057_v57 = vpop.f32.mrb[5].mxu1  ;;  %v1019_v4 = vpop.f32.mrb[7].mxu0 }
 0x464   : > { %7404 = vst [vmem:[#allocation29_spill] sm:$0xff] %v5458_v26  ;;  %v7279_v55 = vmax.f32 %v5458_v26, 0.0  ;;  %v1058_v56 = vadd.f32 %v1057_v57, %v963_v37  ;;  %v1059_v58 = vpop.f32.mrb[6].mxu1 }
 0x465   : > { %7405 = vst [vmem:[#allocation30_spill] sm:$0xff] %v5460_v12  ;;  %v1066_v13 = vmul.f32 %v1062_v27, %v5281_v35  ;;  %v7278_v28 = vmax.f32 %v5460_v12, 0.0  ;;  %v1060_v17 = vpop.f32.mrb[7].mxu1 }
 0x466   : > { %v5468_v29 = vmul.f32 %v7279_v55, %v5284_v53  ;;  %v1065_v38 = vmax.f32 %v1058_v56, 0.0 }
 0x467   : > { %1070 = vrot.lane.b32.xlu0 %v1066_v13, %s4926_s14  ;;  %v5476_v30 = vmul.f32 %v7278_v28, %v5297_v61 }
 0x468   : > { %1072 = vrot.lane.b32.xlu1 %v5468_v29, %s4926_s14  ;;  %v1069_v36 = vmul.f32 %v1065_v38, %v5300_v63 }
 0x46b   : > { %1074 = vrot.lane.b32.xlu0 %v5476_v30, %s4926_s14 }
 0x46c   : > { %1076 = vrot.lane.b32.xlu1 %v1069_v36, %s4926_s14 }
 0x46f   : > { %1086 = vrot.lane.b32.xlu0 %v1066_v13, %s4927_s15 }
 0x470   : > { %1088 = vrot.lane.b32.xlu1 %v5468_v29, %s4927_s15 }
 0x473   : > { %1090 = vrot.lane.b32.xlu0 %v5476_v30, %s4927_s15 }
 0x474   : > { %1092 = vrot.lane.b32.xlu1 %v1069_v36, %s4927_s15 }
 0x477   : > { %1113 = vperm.xlu0 %4323, %v1110_v41  }
 0x478   : > { %1154 = vperm.xlu1 %4434, %v4201_v43  }
 0x47b   : > { %1195 = vperm.xlu0 %4323, %v4204_v45  }
 0x47c   : > { %1228 = vperm.xlu1 %4434, %v4207_v47  }
 0x47f   : > { %1261 = vperm.xlu0 %4323, %v4210_v50  }
 0x480   : > { %1142 = vrot.lane.b32.xlu1 %v1066_v13, %s4929_s20 }
 0x483   : > { %1294 = vperm.xlu0 %4323, %v4213_v52   ;;  %v4199_v52 = vld [vmem:[%s7269_s5 + $0x48] sm:$0xff] }
 0x484   : > { %1146 = vrot.lane.b32.xlu1 %v5476_v30, %s4929_s20 }
 0x487   : > { %1376 = vperm.xlu0 %4323, %v4219_v54   ;;  %v4202_v54 = vld [vmem:[%s7269_s5 + $0x50] sm:$0xff] }
 0x488   : > { %1335 = vperm.xlu1 %4434, %v4216_v34   ;;  %v4205_v34 = vld [vmem:[%s7269_s5 + $0x58] sm:$0xff] }
 0x48b   : > { %1366 = vrot.lane.b32.xlu0 %v5476_v30, %s4930_s27 }
 0x48c   : > { %1417 = vperm.xlu1 %4434, %v4222_v40   ;;  %v4208_v40 = vld [vmem:[%s7269_s5 + $0x60] sm:$0xff] }
 0x48f   : > { %1449 = vperm.xlu0 %4323, %v1446_v62   ;;  %v4211_v62 = vld [vmem:[%s7269_s5 + $0x68] sm:$0xff] }
 0x490   : > { %1364 = vrot.lane.b32.xlu1 %v5468_v29, %s4930_s27 }
 0x493   : > { %1144 = vrot.lane.b32.xlu0 %v5468_v29, %s4929_s20 }
 0x494   : > { %1368 = vrot.lane.b32.xlu1 %v1069_v36, %s4930_s27 }
 0x4d9   : > { %v1071_v32 = vpop.permute.xlu0 %1070 }
 0x4da   : > { %v1073_v42 = vpop.permute.xlu1 %1072 }
 0x4db   : > { %v1080_v31 = vsel %vm542_vm1, %v1071_v32, %v1073_v42 }
 0x4dc   : > { %v5531_v16 = vmul.f32 %v1080_v31, %v5076_v9  ;;  %v4220_v31 = vld [vmem:[%s7269_s5 + $0x80] sm:$0xff] }
 0x4dd   : > { %v1075_v37 = vpop.permute.xlu0 %1074 }
 0x4de   : > { %v1077_v60 = vpop.permute.xlu1 %1076  ;;  %1104 = vrot.lane.b32.xlu1 %v5531_v16, %s4929_s20  ;;  %v1079_v20 = vsel %vm542_vm1, %v1073_v42, %v1075_v37  ;;  %v4217_v42 = vld [vmem:[%s7269_s5 + $0x78] sm:$0xff] }
 0x4df   : > { %v1081_v33 = vsel %vm542_vm1, %v1077_v60, %v1071_v32  ;;  %v5544_v4 = vmul.f32 %v1079_v20, %v5111_v24  ;;  %v1078_v43 = vsel %vm542_vm1, %v1075_v37, %v1077_v60  ;;  %v4214_v32 = vld [vmem:[%s7269_s5 + $0x70] sm:$0xff]  ;;  %v4223_v37 = vld [vmem:[%s7269_s5 + $0x88] sm:$0xff] }
 0x4e0   : > { %v1082_v19 = vmul.f32 %v1081_v33, %v5072_v8  ;;  %v1085_v45 = vmul.f32 %v1078_v43, %v5114_v25  ;;  %v4226_v60 = vld [vmem:[%s7270_s6 + $0x8] sm:$0xff]  ;;  %v1456_v33 = vld [vmem:[%s7271_s7] sm:$0xff]  ;;  %v4227_v20 = vld [vmem:[%s7271_s7 + $0x10] sm:$0xff] }
 0x4e1   : > { %v1087_v44 = vpop.permute.xlu0 %1086 }
 0x4e2   : > { %v1089_v27 = vpop.permute.xlu1 %1088  ;;  %1102 = vrot.lane.b32.xlu0 %v1082_v19, %s4929_s20  ;;  %v4225_v19 = vld [vmem:[%s7271_s7 + $0x8] sm:$0xff] }
 0x4e3   : > { %v1096_v57 = vsel %vm579_vm2, %v1087_v44, %v1089_v27 }
 0x4e4   : > { %v1098_v56 = vmul.f32 %v1096_v57, %v5102_v21  ;;  %v4235_v57 = vld [vmem:[%s7273_s9 + $0x8] sm:$0xff] }
 0x4e5   : > { %v1091_v58 = vpop.permute.xlu0 %1090 }
 0x4e6   : > { %v1095_v13 = vsel %vm579_vm2, %v1089_v27, %v1091_v58  ;;  %v1093_v17 = vpop.permute.xlu1 %1092  ;;  %1106 = vrot.lane.b32.xlu0 %v5544_v4, %s4929_s20  ;;  %1183 = vrot.lane.b32.xlu1 %v1098_v56, %s4929_s20  ;;  %v1649_v27 = vld [vmem:[%s7273_s9] sm:$0xff] }
 0x4e7   : > { %v5553_v38 = vmul.f32 %v1095_v13, %v5105_v22  ;;  %v1094_v36 = vsel %vm579_vm2, %v1091_v58, %v1093_v17  ;;  %v1097_v47 = vsel %vm579_vm2, %v1093_v17, %v1087_v44  ;;  %v4228_v44 = vld [vmem:[%s7271_s7 + $0x18] sm:$0xff] }
 0x4e8   : > { %v5558_v41 = vmul.f32 %v1094_v36, %v5097_v18  ;;  %v1101_v50 = vmul.f32 %v1097_v47, %v5150_v39 }
 0x4ea   : > { %1185 = vrot.lane.b32.xlu0 %v5553_v38, %s4929_s20  ;;  %1187 = vrot.lane.b32.xlu1 %v5558_v41, %s4929_s20 }
 0x4ee   : > { %1323 = vrot.lane.b32.xlu0 %v5531_v16, %s4930_s27  ;;  %1325 = vrot.lane.b32.xlu1 %v5544_v4, %s4930_s27 }
 0x4f2   : > { %1327 = vrot.lane.b32.xlu0 %v1085_v45, %s4930_s27  ;;  %1405 = vrot.lane.b32.xlu1 %v5553_v38, %s4930_s27 }
 0x4f6   : > { %1407 = vrot.lane.b32.xlu0 %v5558_v41, %s4930_s27  ;;  %1409 = vrot.lane.b32.xlu1 %v1101_v50, %s4930_s27  ;;  %v1114_v56 = vpop.permute.xlu0 %1113 }
 0x4f7   : > { %v1155_v58 = vpop.permute.xlu1 %1154 }
 0x4fa   : > { %1124 = vperm.xlu0 %4323, %v4199_v52   ;;  %1165 = vperm.xlu1 %4434, %v4202_v54   ;;  %v1196_v13 = vpop.permute.xlu0 %1195 }
 0x4fb   : > { %v1229_v17 = vpop.permute.xlu1 %1228 }
 0x4fc   : > { %v1231_v39 = vmul.f32 %v1229_v17, %v5531_v16 }
 0x4fe   : > { %1206 = vperm.xlu0 %4323, %v4205_v34   ;;  %1239 = vperm.xlu1 %4434, %v4208_v40   ;;  %v1262_v36 = vpop.permute.xlu0 %1261 }
 0x4ff   : > { %v1143_v43 = vpop.permute.xlu1 %1142  ;;  %v1265_v35 = vmul.f32 %v1262_v36, %v5476_v30 }
 0x502   : > { %1272 = vperm.xlu0 %4323, %v4211_v62   ;;  %1305 = vperm.xlu1 %4434, %v4214_v32   ;;  %v1295_v45 = vpop.permute.xlu0 %1294 }
 0x503   : > { %v1147_v47 = vpop.permute.xlu1 %1146 }
 0x506   : > { %1346 = vperm.xlu0 %4323, %v4217_v42   ;;  %1387 = vperm.xlu1 %4434, %v4220_v31   ;;  %v1377_v50 = vpop.permute.xlu0 %1376 }
 0x507   : > { %v1336_v52 = vpop.permute.xlu1 %1335 }
 0x50a   : > { %1428 = vperm.xlu0 %4323, %v4223_v37   ;;  %1516 = vperm.xlu1 %4434, %v4226_v60   ;;  %v1367_v54 = vpop.permute.xlu0 %1366 }
 0x50b   : > { %v1418_v34 = vpop.permute.xlu1 %1417 }
 0x50e   : > { %1500 = vperm.xlu0 %4323, %v1456_v33   ;;  %1507 = vperm.xlu1 %4434, %v4225_v19   ;;  %v5628_v40 = vpop.permute.xlu0 %1449 }
 0x50f   : > { %v1365_v62 = vpop.permute.xlu1 %1364 }
 0x512   : > { %1567 = vperm.xlu0 %4323, %v4227_v20   ;;  %1574 = vperm.xlu1 %4434, %v4228_v44   ;;  %v1145_v32 = vpop.permute.xlu0 %1144 }
 0x513   : > { %v1369_v42 = vpop.permute.xlu1 %1368  ;;  %v5636_v20 = vsel %vm620_vm3, %v1145_v32, %v1147_v47  ;;  %v5640_v44 = vsel %vm620_vm3, %v1143_v43, %v1145_v32 }
 0x514   : > { %v1158_v55 = vmul.f32 %v1155_v58, %v5636_v20 }
 0x516   : > { %1652 = vperm.xlu0 %4323, %v1649_v27   ;;  %1714 = vperm.xlu1 %4434, %v4235_v57  }
 0x550   : > { %v1105_v31 = vpop.permute.xlu1 %1104 }
 0x554   : > { %v1103_v37 = vpop.permute.xlu0 %1102 }
 0x555   : > { %v5632_v60 = vsel %vm620_vm3, %v1103_v37, %v1105_v31  ;;  %v1157_v37 = vmul.f32 %v1155_v58, %v5640_v44  ;;  %v1232_v58 = vmul.f32 %v1229_v17, %v5544_v4 }
 0x556   : > { %v1116_v57 = vmul.f32 %v1114_v56, %v5632_v60 }
 0x558   : > { %v1184_v33 = vpop.permute.xlu1 %1183  ;;  %v1107_v19 = vpop.permute.xlu0 %1106  ;;  %v1159_v32 = vadd.f32 %v1157_v37, %v1116_v57 }
 0x559   : > { %v5644_v27 = vsel %vm620_vm3, %v1105_v31, %v1107_v19 }
 0x55a   : > { %v1117_v28 = vmul.f32 %v1114_v56, %v5644_v27 }
 0x55c   : > { %v1188_v3 = vpop.permute.xlu1 %1187  ;;  %v1186_v1 = vpop.permute.xlu0 %1185  ;;  %v1160_v31 = vadd.f32 %v1158_v55, %v1117_v28  ;;  %v1297_v28 = vmul.f32 %v1295_v45, %v5553_v38 }
 0x55d   : > { %v5652_v47 = vsel %vm620_vm3, %v1186_v1, %v1188_v3  ;;  %v5656_v43 = vsel %vm620_vm3, %v1184_v33, %v1186_v1  ;;  %v1264_v3 = vmul.f32 %v1262_v36, %v5468_v29 }
 0x55e   : > { %v1198_v19 = vmul.f32 %v1196_v13, %v5656_v43  ;;  %v1199_v56 = vmul.f32 %v1196_v13, %v5652_v47  ;;  %v1298_v13 = vmul.f32 %v1295_v45, %v5558_v41 }
 0x560   : > { %v1200_v8 = vadd.f32 %v1198_v19, %v1159_v32  ;;  %v1201_v63 = vadd.f32 %v1199_v56, %v1160_v31  ;;  %v1326_v53 = vpop.permute.xlu1 %1325  ;;  %v1324_v61 = vpop.permute.xlu0 %1323  ;;  %v5672_v31 = vsel %vm654_vm6, %v1365_v62, %v1367_v54 }
 0x561   : > { %v5666_v55 = vsel %vm654_vm6, %v1324_v61, %v1326_v53 }
 0x562   : > { %v1233_v1 = vadd.f32 %v1231_v39, %v1200_v8  ;;  %v1234_v33 = vadd.f32 %v1232_v58, %v1201_v63  ;;  %v5676_v8 = vsel %vm654_vm6, %v1367_v54, %v1369_v42  ;;  %v1338_v63 = vmul.f32 %v1336_v52, %v5666_v55 }
 0x563   : > { %v1380_v19 = vmul.f32 %v1377_v50, %v5676_v8 }
 0x564   : > { %v1266_v57 = vadd.f32 %v1264_v3, %v1233_v1  ;;  %v1406_v17 = vpop.permute.xlu1 %1405  ;;  %v1267_v37 = vadd.f32 %v1265_v35, %v1234_v33  ;;  %v1328_v32 = vpop.permute.xlu0 %1327  ;;  %v1379_v35 = vmul.f32 %v1377_v50, %v5672_v31 }
 0x565   : > { %v5680_v39 = vsel %vm654_vm6, %v1326_v53, %v1328_v32 }
 0x566   : > { %v1299_v61 = vadd.f32 %v1297_v28, %v1266_v57  ;;  %v1300_v36 = vadd.f32 %v1298_v13, %v1267_v37  ;;  %v1339_v45 = vmul.f32 %v1336_v52, %v5680_v39 }
 0x568   : > { %v1340_v62 = vadd.f32 %v1338_v63, %v1299_v61  ;;  %v1341_v56 = vadd.f32 %v1339_v45, %v1300_v36  ;;  %v1410_v58 = vpop.permute.xlu1 %1409  ;;  %v1408_v3 = vpop.permute.xlu0 %1407 }
 0x569   : > { %v5688_v54 = vsel %vm654_vm6, %v1408_v3, %v1410_v58  ;;  %v5692_v53 = vsel %vm654_vm6, %v1406_v17, %v1408_v3 }
 0x56a   : > { %v1381_v42 = vadd.f32 %v1379_v35, %v1340_v62  ;;  %v1382_v1 = vadd.f32 %v1380_v19, %v1341_v56  ;;  %v1420_v52 = vmul.f32 %v1418_v34, %v5692_v53  ;;  %v1421_v33 = vmul.f32 %v1418_v34, %v5688_v54 }
 0x56c   : > { %v1422_v28 = vadd.f32 %v1420_v52, %v1381_v42  ;;  %v1423_v50 = vadd.f32 %v1421_v33, %v1382_v1 }
 0x56e   : > { %v1452_v13 = vadd.f32 %v5628_v40, %v1422_v28  ;;  %v1453_v57 = vadd.f32 %v5628_v40, %v1423_v50 }
 0x570   : > { %v1454_v37 = vmax.f32 %v1452_v13, 0.0  ;;  %v1455_v32 = vmax.f32 %v1453_v57, 0.0 }
 0x572   : > { %v1459_v61 = vrot.slane %v1454_v37, 4  ;;  %v1465_v63 = vrot.slane %v1455_v32, 4 }
 0x574   : > { %v1460_v36 = vadd.f32 %v1459_v61, %v1454_v37  ;;  %v1466_v45 = vadd.f32 %v1465_v63, %v1455_v32 }
 0x576   : > { %v1461_v17 = vrot.slane %v1460_v36, 2  ;;  %v1467_v58 = vrot.slane %v1466_v45, 2 }
 0x578   : > { %v1462_v35 = vadd.f32 %v1461_v17, %v1460_v36  ;;  %v1468_v19 = vadd.f32 %v1467_v58, %v1466_v45 }
 0x579   : > { %v1166_v62 = vpop.permute.xlu1 %1165  ;;  %v1125_v56 = vpop.permute.xlu0 %1124 }
 0x57a   : > { %v1168_v34 = vmul.f32 %v1166_v62, %v5640_v44  ;;  %v1169_v3 = vmul.f32 %v1166_v62, %v5636_v20  ;;  %v1127_v42 = vmul.f32 %v1125_v56, %v5632_v60  ;;  %v1128_v40 = vmul.f32 %v1125_v56, %v5644_v27 }
 0x57b   : > { %v1463_v1 = vrot.slane %v1462_v35, 1  ;;  %v1469_v52 = vrot.slane %v1468_v19, 1 }
 0x57c   : > { %v1170_v57 = vadd.f32 %v1168_v34, %v1127_v42  ;;  %v1171_v61 = vadd.f32 %v1169_v3, %v1128_v40 }
 0x57d   : > { %v1240_v33 = vpop.permute.xlu1 %1239  ;;  %v1207_v28 = vpop.permute.xlu0 %1206  ;;  %v1464_v50 = vadd.f32 %v1463_v1, %v1462_v35  ;;  %v1470_v13 = vadd.f32 %v1469_v52, %v1468_v19 }
 0x57e   : > { %v1209_v63 = vmul.f32 %v1207_v28, %v5656_v43  ;;  %v1210_v36 = vmul.f32 %v1207_v28, %v5652_v47  ;;  %v1242_v58 = vmul.f32 %v1240_v33, %v5531_v16  ;;  %v1243_v62 = vmul.f32 %v1240_v33, %v5544_v4 }
 0x57f   : > { %v1472_v45 = vmul.f32 0.125, %v1464_v50  ;;  %v1473_v17 = vmul.f32 0.125, %v1470_v13 }
 0x580   : > { %v1211_v6 = vadd.f32 %v1209_v63, %v1170_v57  ;;  %v1212_v56 = vadd.f32 %v1210_v36, %v1171_v61 }
 0x581   : > { %v1306_v2 = vpop.permute.xlu1 %1305  ;;  %v1273_v14 = vpop.permute.xlu0 %1272  ;;  %v5706_v15 = vsub.f32 %v1454_v37, %v1472_v45  ;;  %v5708_v35 = vsub.f32 %v1455_v32, %v1473_v17 }
 0x582   : > { %v1244_v19 = vadd.f32 %v1242_v58, %v1211_v6  ;;  %v1245_v34 = vadd.f32 %v1243_v62, %v1212_v56  ;;  %v1275_v3 = vmul.f32 %v1273_v14, %v5468_v29  ;;  %v1276_v42 = vmul.f32 %v1273_v14, %v5476_v30 }
 0x583   : > { %v1476_v40 = vmul.f32 %v5706_v15, %v5706_v15  ;;  %v1477_v1 = vmul.f32 %v5708_v35, %v5708_v35  ;;  %v1308_v52 = vmul.f32 %v1306_v2, %v5553_v38  ;;  %v1309_v33 = vmul.f32 %v1306_v2, %v5558_v41 }
 0x584   : > { %v1277_v37 = vadd.f32 %v1275_v3, %v1244_v19  ;;  %v1278_v28 = vadd.f32 %v1276_v42, %v1245_v34 }
 0x585   : > { %v1388_v32 = vpop.permute.xlu1 %1387  ;;  %v1347_v50 = vpop.permute.xlu0 %1346  ;;  %v1478_v6 = vrot.slane %v1476_v40, 4  ;;  %v1484_v13 = vrot.slane %v1477_v1, 4 }
 0x586   : > { %v1349_v57 = vmul.f32 %v1347_v50, %v5666_v55  ;;  %v1350_v14 = vmul.f32 %v1347_v50, %v5680_v39  ;;  %v1310_v61 = vadd.f32 %v1308_v52, %v1277_v37  ;;  %v1311_v63 = vadd.f32 %v1309_v33, %v1278_v28 }
 0x587   : > { %v1479_v36 = vadd.f32 %v1478_v6, %v1476_v40  ;;  %v1485_v45 = vadd.f32 %v1484_v13, %v1477_v1  ;;  %v1390_v17 = vmul.f32 %v1388_v32, %v5672_v31  ;;  %v1391_v58 = vmul.f32 %v1388_v32, %v5676_v8 }
 0x588   : > { %v1351_v62 = vadd.f32 %v1349_v57, %v1310_v61  ;;  %v1352_v2 = vadd.f32 %v1350_v14, %v1311_v63 }
 0x589   : > { %v1429_v56 = vpop.permute.xlu0 %1428  ;;  %v1480_v19 = vrot.slane %v1479_v36, 2  ;;  %v1486_v34 = vrot.slane %v1485_v45, 2  ;;  %v1517_v28 = vpop.permute.xlu1 %1516 }
 0x58a   : > { %v1431_v3 = vmul.f32 %v1429_v56, %v5692_v53  ;;  %v1432_v42 = vmul.f32 %v1429_v56, %v5688_v54  ;;  %v1392_v12 = vadd.f32 %v1390_v17, %v1351_v62  ;;  %v1393_v26 = vadd.f32 %v1391_v58, %v1352_v2 }
 0x58b   : > { %v1481_v50 = vadd.f32 %v1480_v19, %v1479_v36  ;;  %v1487_v52 = vadd.f32 %v1486_v34, %v1485_v45 }
 0x58c   : > { %v1433_v33 = vadd.f32 %v1431_v3, %v1392_v12  ;;  %v1434_v40 = vadd.f32 %v1432_v42, %v1393_v26 }
 0x58d   : > { %v1482_v1 = vrot.slane %v1481_v50, 1  ;;  %v1488_v37 = vrot.slane %v1487_v52, 1 }
 0x58e   : > { %v1519_v6 = vadd.f32 %v1517_v28, %v1433_v33  ;;  %v1520_v32 = vadd.f32 %v1517_v28, %v1434_v40  ;;  %v1508_v28 = vpop.permute.xlu1 %1507 }
 0x58f   : > { %v1483_v13 = vadd.f32 %v1482_v1, %v1481_v50  ;;  %v1489_v57 = vadd.f32 %v1488_v37, %v1487_v52 }
 0x590   : > { %v1521_v14 = vmax.f32 %v1519_v6, 0.0  ;;  %v1522_v61 = vmax.f32 %v1520_v32, 0.0 }
 0x591   : > { %v1490_v63 = vmul.f32 0.125, %v1483_v13  ;;  %v1491_v11 = vmul.f32 0.125, %v1489_v57 }
 0x592   : > { %v1527_v48 = vrot.slane %v1521_v14, 4  ;;  %v1533_v59 = vrot.slane %v1522_v61, 4 }
 0x593   : > { %v1492_v56 = vadd.f32 1e-05, %v1490_v63  ;;  %v1493_v17 = vadd.f32 1e-05, %v1491_v11 }
 0x594   : > { %v1528_v58 = vadd.f32 %v1527_v48, %v1521_v14  ;;  %v1534_v36 = vadd.f32 %v1533_v59, %v1522_v61  ;;  %v1501_v48 = vpop.permute.xlu0 %1500 }
 0x595   : > { %4680 = vrsqrt.f32 %v1492_v56 }
 0x596   : > { %4682 = vrsqrt.f32 %v1493_v17  ;;  %v1529_v26 = vrot.slane %v1528_v58, 2  ;;  %v1535_v12 = vrot.slane %v1534_v36, 2 }
 0x598   : > { %v1530_v45 = vadd.f32 %v1529_v26, %v1528_v58  ;;  %v1536_v62 = vadd.f32 %v1535_v12, %v1534_v36 }
 0x59a   : > { %v1531_v2 = vrot.slane %v1530_v45, 1  ;;  %v1537_v19 = vrot.slane %v1536_v62, 1 }
 0x59c   : > { %v1532_v34 = vadd.f32 %v1531_v2, %v1530_v45  ;;  %v1538_v3 = vadd.f32 %v1537_v19, %v1536_v62 }
 0x59e   : > { %v1539_v50 = vmul.f32 0.125, %v1532_v34  ;;  %v1540_v52 = vmul.f32 0.125, %v1538_v3  ;;  %v7406_v34 = vmov 0  }
 0x59f   : > { %v4681_v42 = vpop.eup %4680 }
 0x5a0   : > { %v4683_v33 = vpop.eup %4682  ;;  %v1496_v40 = vmul.f32 %v4681_v42, %v5706_v15  ;;  %v1541_v59 = vsub.f32 %v1521_v14, %v1539_v50  ;;  %v1542_v1 = vsub.f32 %v1522_v61, %v1540_v52  ;;  %v1646_v14 = vld [vmem:[%s7272_s8] sm:$0xf] }
 0x5a1   : > { %v1497_v11 = vmul.f32 %v4683_v33, %v5708_v35 }
 0x5a2   : > { %v1503_v37 = vmul.f32 %v1501_v48, %v1496_v40  ;;  %v1543_v32 = vmul.f32 %v1541_v59, %v1541_v59  ;;  %v1544_v13 = vmul.f32 %v1542_v1, %v1542_v1 }
 0x5a3   : > { %v1504_v6 = vmul.f32 %v1501_v48, %v1497_v11 }
 0x5a4   : > { %v1510_v57 = vadd.f32 %v1508_v28, %v1503_v37  ;;  %v1545_v56 = vrot.slane %v1543_v32, 4  ;;  %v1551_v17 = vrot.slane %v1544_v13, 4 }
 0x5a5   : > { %v1511_v63 = vadd.f32 %v1508_v28, %v1504_v6  ;;  %v1568_v6 = vpop.permute.xlu0 %1567 }
 0x5a6   : > { %v1647_v58 = vpack.c.bf16 %v1510_v57, %v1510_v57  ;;  %v1546_v26 = vadd.f32 %v1545_v56, %v1543_v32  ;;  %v1552_v12 = vadd.f32 %v1551_v17, %v1544_v13  ;;  %v1575_v13 = vpop.permute.xlu1 %1574 }
 0x5a7   : > { %v1648_v36 = vpack.c.bf16 %v1511_v63, %v1511_v63 }
 0x5a8   : > { %v1660_v15 = vsel %vm451_vm0, %v1647_v58, 0  ;;  %v1547_v45 = vrot.slane %v1546_v26, 2  ;;  %v1553_v35 = vrot.slane %v1552_v12, 2 }
 0x5a9   : > { %4232 = vmatprep.subr.msk.bf16.mxu0 %vm451_vm0, %v1648_v36 }
 0x5aa   : > { %1666 = vmatpush1.bf16.msra.mxu0 %v1660_v15  ;;  %v1548_v61 = vadd.f32 %v1547_v45, %v1546_v26  ;;  %v1554_v62 = vadd.f32 %v1553_v35, %v1552_v12  ;;  %v4234_v26 = vld [vmem:[%s7272_s8 + $0x4] sm:$0xf] }
 0x5ac   : > { %v1549_v2 = vrot.slane %v1548_v61, 1  ;;  %v1555_v19 = vrot.slane %v1554_v62, 1 }
 0x5ad   : > { %4233 = vmatmul.mubr.msk.bf16.vlgmr.msra.gmra.mrb[8].mxu0 %vm1655_vm8, %v1646_v14 }
 0x5ae   : > { %1819 = vmatprep.mubr.bf16.mxu0 %v7406_v34  ;;  %v1550_v3 = vadd.f32 %v1549_v2, %v1548_v61  ;;  %v1556_v42 = vadd.f32 %v1555_v19, %v1554_v62  ;;  %v1715_v2 = vpop.permute.xlu1 %1714 }
 0x5b0   : > { %v1557_v50 = vmul.f32 0.125, %v1550_v3  ;;  %v1558_v52 = vmul.f32 0.125, %v1556_v42 }
 0x5b2   : > { %v1559_v33 = vadd.f32 1e-05, %v1557_v50  ;;  %v1560_v40 = vadd.f32 1e-05, %v1558_v52 }
 0x5b4   : > { %4684 = vrsqrt.f32 %v1559_v33 }
 0x5b5   : > { %4686 = vrsqrt.f32 %v1560_v40  ;;  %v4203_v40 = vld [vmem:[%s7269_s5 + $0x98] sm:$0xff] }
 0x5be   : > { %v4685_v11 = vpop.eup %4684 }
 0x5bf   : > { %v4687_v48 = vpop.eup %4686  ;;  %v1563_v37 = vmul.f32 %v4685_v11, %v1541_v59  ;;  %v1653_v59 = vpop.permute.xlu0 %1652 }
 0x5c0   : > { %v1564_v28 = vmul.f32 %v4687_v48, %v1542_v1 }
 0x5c1   : > { %v1570_v32 = vmul.f32 %v1568_v6, %v1563_v37 }
 0x5c2   : > { %v1571_v57 = vmul.f32 %v1568_v6, %v1564_v28  ;;  %v4209_v28 = vld [vmem:[%s7269_s5 + $0xa8] sm:$0xff]  ;;  %v4200_v6 = vld [vmem:[%s7269_s5 + $0x90] sm:$0xff] }
 0x5c3   : > { %v1577_v63 = vadd.f32 %v1575_v13, %v1570_v32  ;;  %v4215_v32 = vld [vmem:[%s7269_s5 + $0xb8] sm:$0xff] }
 0x5c4   : > { %v1578_v56 = vadd.f32 %v1575_v13, %v1571_v57  ;;  %v4206_v13 = vld [vmem:[%s7269_s5 + $0xa0] sm:$0xff]  ;;  %v4221_v57 = vld [vmem:[%s7269_s5 + $0xc8] sm:$0xff] }
 0x5c5   : > { %v1708_v17 = vpack.c.bf16 %v1577_v63, %v1577_v63  ;;  %v4212_v63 = vld [vmem:[%s7269_s5 + $0xb0] sm:$0xff] }
 0x5c6   : > { %v1709_v58 = vpack.c.bf16 %v1578_v56, %v1578_v56  ;;  %v4229_v56 = vld [vmem:[%s7270_s6 + $0x10] sm:$0xff] }
 0x5c7   : > { %v1721_v36 = vsel %vm451_vm0, %v1708_v17, 0  ;;  %v4218_v17 = vld [vmem:[%s7269_s5 + $0xc0] sm:$0xff] }
 0x5c8   : > { %4236 = vmatprep.subr.msk.bf16.mxu1 %vm451_vm0, %v1709_v58  ;;  %v4224_v58 = vld [vmem:[%s7269_s5 + $0xd0] sm:$0xff] }
 0x5c9   : > { %1727 = vmatpush1.bf16.msra.mxu1 %v1721_v36 }
 0x5cc   : > { %4237 = vmatmul.mubr.msk.bf16.vlgmr.msra.gmra.mrb[8].mxu1 %vm1655_vm8, %v4234_v26 }
 0x5cd   : > { %1950 = vmatprep.mubr.bf16.mxu1 %v7406_v34 }
 0x680   : > { %v1699_v1 = vpop.f32.mrb[8].mxu0 }
 0x681   : > { %v1700_v12 = vadd.f32 %v1699_v1, %v1653_v59  ;;  %v1701_v15 = vpop.f32.mrb[9].mxu0 }
 0x682   : > { %v1702_v45 = vadd.f32 %v1701_v15, %v1653_v59  ;;  %v1703_v35 = vpop.f32.mrb[10].mxu0 }
 0x683   : > { %v1828_v14 = vpack.c.bf16 %v1700_v12, %v1700_v12  ;;  %v1704_v61 = vpop.f32.mrb[11].mxu0 }
 0x684   : > { %v1829_v62 = vpack.c.bf16 %v1702_v45, %v1702_v45 }
 0x685   : > { %1832 = vxpose.xlu0.c.b16.start.end [1/1] (short) %v1828_v14, 128 }
 0x686   : > { %1848 = vxpose.xlu1.c.b16.start.end [1/1] (short) %v1829_v62, 128 }
 0x69f   : > { %v1760_v19 = vpop.f32.mrb[8].mxu1 }
 0x6a0   : > { %v1761_v3 = vadd.f32 %v1760_v19, %v1715_v2  ;;  %v1762_v42 = vpop.f32.mrb[9].mxu1 }
 0x6a1   : > { %v1763_v50 = vadd.f32 %v1762_v42, %v1715_v2  ;;  %v1764_v52 = vpop.f32.mrb[10].mxu1 }
 0x6a2   : > { %v1830_v33 = vpack.c.bf16 %v1761_v3, %v1761_v3  ;;  %v1765_v11 = vpop.f32.mrb[11].mxu1 }
 0x6a3   : > { %v1831_v48 = vpack.c.bf16 %v1763_v50, %v1763_v50 }
 0x6a4   : > { %v1913_v37 = vsel %vm451_vm0, %v1830_v33, 0 }
 0x6a5   : > { %4242 = vmatprep.subr.msk.bf16.mxu1 %vm451_vm0, %v1831_v48 }
 0x6a6   : > { %1176 = vperm.xlu1 %4434, %v4203_v40   ;;  %1919 = vmatpush1.bf16.msra.mxu1 %v1913_v37 }
 0x6aa   : > { %1250 = vperm.xlu1 %4434, %v4209_v28   ;;  %1135 = vperm.xlu0 %4323, %v4200_v6  }
 0x6ae   : > { %1316 = vperm.xlu1 %4434, %v4215_v32   ;;  %1217 = vperm.xlu0 %4323, %v4206_v13  }
 0x6b2   : > { %1398 = vperm.xlu1 %4434, %v4221_v57   ;;  %1283 = vperm.xlu0 %4323, %v4212_v63  }
 0x6b6   : > { %1583 = vperm.xlu1 %4434, %v4229_v56   ;;  %1357 = vperm.xlu0 %4323, %v4218_v17  }
 0x6ba   : > { %1439 = vperm.xlu0 %4323, %v4224_v58  }
 0x6eb   : > { %v1840_v36 = vpop.trf.xlu0 }
 0x6ec   : > { %4243 = vmatmul.mubr.msk.bf16.vlgmr.msra.gmra.mrb[12].mxu1 %vm1655_vm8, %v1840_v36  ;;  %v1856_v14 = vpop.trf.xlu1 }
 0x6ed   : > { %1960 = vmatprep.mubr.bf16.mxu1 %v7406_v34 }
 0x6ef   : > { %v1841_v26 = vpop.trf.xlu0 }
 0x6f0   : > { %v1857_v61 = vpop.trf.xlu1 }
 0x6f3   : > { %v1842_v59 = vpop.trf.xlu0 }
 0x6f4   : > { %4244 = vmatmul.mubr.msk.bf16.gmra.mrb[16].mxu1 %vm1655_vm8, %v1841_v26  ;;  %v1858_v62 = vpop.trf.xlu1 }
 0x6f5   : > { %1970 = vmatprep.mubr.bf16.mxu1 %v7406_v34 }
 0x6f7   : > { %v1843_v1 = vpop.trf.xlu0 }
 0x6f8   : > { %v1859_v2 = vpop.trf.xlu1 }
 0x6fb   : > { %v1844_v12 = vpop.trf.xlu0 }
 0x6fc   : > { %4245 = vmatmul.mubr.msk.bf16.gmra.mrb[20].mxu1 %vm1655_vm8, %v1842_v59  ;;  %v1860_v19 = vpop.trf.xlu1  ;;  %v4230_v59 = vld [vmem:[%s7271_s7 + $0x20] sm:$0xff] }
 0x6fd   : > { %1980 = vmatprep.mubr.bf16.mxu1 %v7406_v34 }
 0x6ff   : > { %v1845_v15 = vpop.trf.xlu0 }
 0x700   : > { %v1861_v3 = vpop.trf.xlu1 }
 0x703   : > { %v1846_v45 = vpop.trf.xlu0 }
 0x704   : > { %4246 = vmatmul.mubr.msk.bf16.gmra.mrb[24].mxu1 %vm1655_vm8, %v1843_v1  ;;  %v1862_v42 = vpop.trf.xlu1 }
 0x705   : > { %1990 = vmatprep.mubr.bf16.mxu1 %v7406_v34 }
 0x707   : > { %v1847_v35 = vpop.trf.xlu0 }
 0x708   : > { %v1863_v50 = vpop.trf.xlu1 }
 0x70c   : > { %4247 = vmatmul.mubr.msk.bf16.gmra.mrb[28].mxu1 %vm1655_vm8, %v1844_v12 }
 0x70d   : > { %2000 = vmatprep.mubr.bf16.mxu1 %v7406_v34 }
 0x714   : > { %4248 = vmatmul.mubr.msk.bf16.gmra.mrb[32].mxu1 %vm1655_vm8, %v1845_v15 }
 0x715   : > { %2010 = vmatprep.mubr.bf16.mxu1 %v7406_v34 }
 0x71c   : > { %4249 = vmatmul.mubr.msk.bf16.gmra.mrb[36].mxu1 %vm1655_vm8, %v1846_v45 }
 0x71d   : > { %2020 = vmatprep.mubr.bf16.mxu1 %v7406_v34 }
 0x724   : > { %4250 = vmatmul.mubr.msk.bf16.gmra.mrb[40].mxu1 %vm1655_vm8, %v1847_v35 }
 0x725   : > { %2030 = vmatprep.mubr.bf16.mxu1 %v7406_v34 }
 0x72c   : > { %4251 = vmatmul.mubr.msk.bf16.gmra.mrb[44].mxu1 %vm1655_vm8, %v1856_v14 }
 0x72d   : > { %2040 = vmatprep.mubr.bf16.mxu1 %v7406_v34 }
 0x734   : > { %4252 = vmatmul.mubr.msk.bf16.gmra.mrb[48].mxu1 %vm1655_vm8, %v1857_v61 }
 0x735   : > { %2050 = vmatprep.mubr.bf16.mxu1 %v7406_v34 }
 0x73c   : > { %4253 = vmatmul.mubr.msk.bf16.gmra.mrb[52].mxu1 %vm1655_vm8, %v1858_v62  ;;  %v1136_v62 = vpop.permute.xlu0 %1135 }
 0x73d   : > { %2060 = vmatprep.mubr.bf16.mxu1 %v7406_v34  ;;  %v1139_v1 = vmul.f32 %v1136_v62, %v5644_v27 }
 0x744   : > { %4254 = vmatmul.mubr.msk.bf16.gmra.mrb[56].mxu1 %vm1655_vm8, %v1859_v2 }
 0x745   : > { %2070 = vmatprep.mubr.bf16.mxu1 %v7406_v34 }
 0x74c   : > { %4255 = vmatmul.mubr.msk.bf16.gmra.mrb[60].mxu1 %vm1655_vm8, %v1860_v19 }
 0x74d   : > { %2080 = vmatprep.mubr.bf16.mxu1 %v7406_v34 }
 0x754   : > { %4256 = vmatmul.mubr.msk.bf16.gmra.mrb[64].mxu1 %vm1655_vm8, %v1861_v3 }
 0x755   : > { %2090 = vmatprep.mubr.bf16.mxu1 %v7406_v34 }
 0x75c   : > { %4257 = vmatmul.mubr.msk.bf16.gmra.mrb[68].mxu1 %vm1655_vm8, %v1862_v42 }
 0x75d   : > { %2100 = vmatprep.mubr.bf16.mxu1 %v7406_v34 }
 0x764   : > { %4258 = vmatmul.mubr.msk.bf16.gmra.mrb[72].mxu1 %vm1655_vm8, %v1863_v50  ;;  %v4231_v50 = vld [vmem:[%s7271_s7 + $0x28] sm:$0xff] }
 0x765   : > { %2748 = vmatprep.mubr.bf16.mxu1 %v7406_v34 }
 0x7bf   : > { %v5804_v52 = vpop.f32.mrb[12].mxu1 }
 0x7c0   : > { %v5806_v33 = vpop.f32.mrb[13].mxu1 }
 0x7c1   : > { %v2111_v40 = vmax.f32 %v5804_v52, %v5806_v33  ;;  %v5810_v11 = vpop.f32.mrb[14].mxu1 }
 0x7c2   : > { %v5812_v48 = vpop.f32.mrb[15].mxu1 }
 0x7c3   : > { %v2114_v37 = vmax.f32 %v5810_v11, %v5812_v48  ;;  %2112 = vmax.xlane.f32.xlu0 %v2111_v40 }
 0x7c5   : > { %2115 = vmax.xlane.f32.xlu1 %v2114_v37  ;;  %v1177_v37 = vpop.permute.xlu1 %1176 }
 0x7c6   : > { %v1179_v61 = vmul.f32 %v1177_v37, %v5640_v44  ;;  %v1180_v58 = vmul.f32 %v1177_v37, %v5636_v20 }
 0x7c7   : > { %v5816_v28 = vpop.f32.mrb[16].mxu1 }
 0x7c8   : > { %v5818_v6 = vpop.f32.mrb[17].mxu1  ;;  %v1182_v44 = vadd.f32 %v1180_v58, %v1139_v1 }
 0x7c9   : > { %v2117_v32 = vmax.f32 %v5816_v28, %v5818_v6  ;;  %v5822_v13 = vpop.f32.mrb[18].mxu1  ;;  %v1251_v46 = vpop.permute.xlu1 %1250 }
 0x7ca   : > { %v5824_v57 = vpop.f32.mrb[19].mxu1  ;;  %v1253_v20 = vmul.f32 %v1251_v46, %v5531_v16 }
 0x7cb   : > { %v2120_v63 = vmax.f32 %v5822_v13, %v5824_v57  ;;  %2118 = vmax.xlane.f32.xlu0 %v2117_v32  ;;  %v1218_v32 = vpop.permute.xlu0 %1217 }
 0x7cc   : > { %v1220_v3 = vmul.f32 %v1218_v32, %v5656_v43  ;;  %v1221_v10 = vmul.f32 %v1218_v32, %v5652_v47  ;;  %v1254_v47 = vmul.f32 %v1251_v46, %v5544_v4 }
 0x7cd   : > { %v1317_v1 = vpop.permute.xlu1 %1316 }
 0x7ce   : > { %v1319_v4 = vmul.f32 %v1317_v1, %v5553_v38 }
 0x7cf   : > { %2121 = vmax.xlane.f32.xlu0 %v2120_v63  ;;  %v5828_v56 = vpop.f32.mrb[20].mxu1  ;;  %v1284_v43 = vpop.permute.xlu0 %1283 }
 0x7d0   : > { %v5830_v17 = vpop.f32.mrb[21].mxu1  ;;  %v1286_v32 = vmul.f32 %v1284_v43, %v5468_v29  ;;  %v1287_v58 = vmul.f32 %v1284_v43, %v5476_v30  ;;  %v1320_v30 = vmul.f32 %v1317_v1, %v5558_v41 }
 0x7d1   : > { %v5834_v36 = vpop.f32.mrb[22].mxu1 }
 0x7d2   : > { %v5836_v26 = vpop.f32.mrb[23].mxu1 }
 0x7d3   : > { %v1358_v46 = vpop.permute.xlu0 %1357 }
 0x7d4   : > { %v1360_v43 = vmul.f32 %v1358_v46, %v5666_v55 }
 0x7d6   : > { %1634 = vperm.xlu1 %4434, %v4230_v59   ;;  %v1138_v59 = vmul.f32 %v1136_v62, %v5632_v60 }
 0x7d7   : > { %v5843_v12 = vpop.f32.mrb[24].mxu1  ;;  %v1440_v55 = vpop.permute.xlu0 %1439 }
 0x7d8   : > { %v5845_v15 = vpop.f32.mrb[25].mxu1  ;;  %v1181_v51 = vadd.f32 %v1179_v61, %v1138_v59  ;;  %v1223_v61 = vadd.f32 %v1221_v10, %v1182_v44 }
 0x7d9   : > { %v5849_v35 = vpop.f32.mrb[26].mxu1 }
 0x7da   : > { %v5851_v14 = vpop.f32.mrb[27].mxu1  ;;  %v1222_v63 = vadd.f32 %v1220_v3, %v1181_v51  ;;  %v1256_v49 = vadd.f32 %v1254_v47, %v1223_v61  ;;  %v1361_v47 = vmul.f32 %v1358_v46, %v5680_v39 }
 0x7dc   : > { %v1255_v37 = vadd.f32 %v1253_v20, %v1222_v63  ;;  %v1289_v63 = vadd.f32 %v1287_v58, %v1256_v49  ;;  %v7410_v49 = vmax.f32 %v5828_v56, %v5830_v17 }
 0x7de   : > { %v1288_v16 = vadd.f32 %v1286_v32, %v1255_v37  ;;  %v1322_v61 = vadd.f32 %v1320_v30, %v1289_v63  ;;  %v1399_v32 = vpop.permute.xlu1 %1398  ;;  %v7412_v63 = vmax.f32 %v5843_v12, %v5845_v15 }
 0x7df   : > { %v5855_v2 = vpop.f32.mrb[28].mxu1  ;;  %v1401_v39 = vmul.f32 %v1399_v32, %v5672_v31 }
 0x7e0   : > { %v5857_v19 = vpop.f32.mrb[29].mxu1  ;;  %v1321_v44 = vadd.f32 %v1319_v4, %v1288_v16  ;;  %v1363_v1 = vadd.f32 %v1361_v47, %v1322_v61  ;;  %v1402_v16 = vmul.f32 %v1399_v32, %v5676_v8  ;;  %v1442_v4 = vmul.f32 %v1440_v55, %v5692_v53 }
 0x7e1   : > { %v5861_v42 = vpop.f32.mrb[30].mxu1  ;;  %v7414_v53 = vmax.f32 %v5855_v2, %v5857_v19 }
 0x7e2   : > { %v5866_v40 = vpop.f32.mrb[31].mxu1  ;;  %v1362_v38 = vadd.f32 %v1360_v43, %v1321_v44  ;;  %v1404_v44 = vadd.f32 %v1402_v16, %v1363_v1  ;;  %v1443_v43 = vmul.f32 %v1440_v55, %v5688_v54  ;;  %v7416_v54 = vmax.f32 %v5834_v36, %v5836_v26  ;;  %v1584_v55 = vpop.permute.xlu1 %1583 }
 0x7e4   : > { %v1403_v46 = vadd.f32 %v1401_v39, %v1362_v38  ;;  %v1445_v38 = vadd.f32 %v1443_v43, %v1404_v44 }
 0x7e5   : > { %1641 = vperm.xlu0 %4323, %v4231_v50  }
 0x7e6   : > { %v1444_v8 = vadd.f32 %v1442_v4, %v1403_v46  ;;  %v1587_v16 = vadd.f32 %v1584_v55, %v1445_v38  ;;  %v7418_v46 = vmax.f32 %v5849_v35, %v5851_v14  ;;  %v7422_v38 = vmax.f32 %v5861_v42, %v5866_v40 }
 0x7e7   : > { %v5874_v45 = vpop.f32.mrb[32].mxu1 }
 0x7e8   : > { %v5878_v23 = vpop.f32.mrb[33].mxu1  ;;  %v1586_v39 = vadd.f32 %v1584_v55, %v1444_v8  ;;  %v1589_v8 = vmax.f32 %v1587_v16, 0.0 }
 0x7e9   : > { %v2141_v60 = vmax.f32 %v5874_v45, %v5878_v23  ;;  %v5882_v50 = vpop.f32.mrb[34].mxu1 }
 0x7ea   : > { %v5884_v27 = vpop.f32.mrb[35].mxu1  ;;  %v1588_v43 = vmax.f32 %v1586_v39, 0.0 }
 0x7eb   : > { %v7424_v22 = vmax.f32 %v5882_v50, %v5884_v27 }
 0x7ef   : > { %v5891_v59 = vpop.f32.mrb[36].mxu1 }
 0x7f0   : > { %v5894_v51 = vpop.f32.mrb[37].mxu1 }
 0x7f1   : > { %v2147_v3 = vmax.f32 %v5891_v59, %v5894_v51  ;;  %v5898_v62 = vpop.f32.mrb[38].mxu1 }
 0x7f2   : > { %7407 = vst [vmem:[#allocation31_spill] sm:$0xff] %v5898_v62  ;;  %v5900_v10 = vpop.f32.mrb[39].mxu1 }
 0x7f3   : > { %7408 = vst [vmem:[#allocation32_spill] sm:$0xff] %v5900_v10  ;;  %v7428_v21 = vmax.f32 %v5898_v62, %v5900_v10 }
 0x7f7   : > { %v5907_v20 = vpop.f32.mrb[40].mxu1 }
 0x7f8   : > { %v5910_v37 = vpop.f32.mrb[41].mxu1 }
 0x7f9   : > { %v2153_v18 = vmax.f32 %v5907_v20, %v5910_v37  ;;  %v5914_v29 = vpop.f32.mrb[42].mxu1 }
 0x7fa   : > { %7409 = vst [vmem:[#allocation33_spill] sm:$0xff] %v5914_v29  ;;  %2124 = vmax.xlane.f32.xlu1 %v7410_v49  ;;  %v5919_v41 = vpop.f32.mrb[43].mxu1 }
 0x7fb   : > { %7411 = vst [vmem:[#allocation34_spill] sm:$0xff] %v5919_v41  ;;  %v2156_v58 = vmax.f32 %v5914_v29, %v5919_v41 }
 0x7fe   : > { %2130 = vmax.xlane.f32.xlu1 %v7412_v63 }
 0x7ff   : > { %v5929_v30 = vpop.f32.mrb[44].mxu1 }
 0x800   : > { %v5932_v49 = vpop.f32.mrb[45].mxu1 }
 0x801   : > { %v2159_v31 = vmax.f32 %v5929_v30, %v5932_v49  ;;  %v5936_v61 = vpop.f32.mrb[46].mxu1 }
 0x802   : > { %7413 = vst [vmem:[#allocation35_spill] sm:$0xff] %v5936_v61  ;;  %2136 = vmax.xlane.f32.xlu1 %v7414_v53  ;;  %v5941_v47 = vpop.f32.mrb[47].mxu1 }
 0x803   : > { %7415 = vst [vmem:[#allocation36_spill] sm:$0xff] %v5941_v47  ;;  %v2162_v32 = vmax.f32 %v5936_v61, %v5941_v47 }
 0x804   : > { %2127 = vmax.xlane.f32.xlu0 %v7416_v54  ;;  %v1594_v54 = vrot.slane %v1588_v43, 4 }
 0x806   : > { %2142 = vmax.xlane.f32.xlu1 %v2141_v60  ;;  %v1595_v16 = vadd.f32 %v1594_v54, %v1588_v43 }
 0x807   : > { %v5948_v1 = vpop.f32.mrb[48].mxu1 }
 0x808   : > { %7417 = vst [vmem:[#allocation37_spill] sm:$0xff] %v5948_v1  ;;  %2133 = vmax.xlane.f32.xlu0 %v7418_v46  ;;  %v5953_v4 = vpop.f32.mrb[49].mxu1  ;;  %v1600_v46 = vrot.slane %v1589_v8, 4 }
 0x809   : > { %7419 = vst [vmem:[#allocation38_spill] sm:$0xff] %v5953_v4  ;;  %v2165_v63 = vmax.f32 %v5948_v1, %v5953_v4  ;;  %v5957_v44 = vpop.f32.mrb[50].mxu1 }
 0x80a   : > { %7420 = vst [vmem:[#allocation39_spill] sm:$0xff] %v5957_v44  ;;  %2148 = vmax.xlane.f32.xlu1 %v2147_v3  ;;  %v5959_v53 = vpop.f32.mrb[51].mxu1 }
 0x80b   : > { %7421 = vst [vmem:[#allocation40_spill] sm:$0xff] %v5959_v53  ;;  %v2168_v60 = vmax.f32 %v5957_v44, %v5959_v53 }
 0x80c   : > { %2139 = vmax.xlane.f32.xlu0 %v7422_v38  ;;  %v1601_v38 = vadd.f32 %v1600_v46, %v1589_v8 }
 0x80e   : > { %2154 = vmax.xlane.f32.xlu1 %v2153_v18  ;;  %v1602_v5 = vrot.slane %v1601_v38, 2 }
 0x80f   : > { %v5966_v55 = vpop.f32.mrb[52].mxu1 }
 0x810   : > { %7423 = vst [vmem:[#allocation41_spill] sm:$0xff] %v5966_v55  ;;  %2145 = vmax.xlane.f32.xlu0 %v7424_v22  ;;  %v5971_v3 = vpop.f32.mrb[53].mxu1  ;;  %v1596_v22 = vrot.slane %v1595_v16, 2 }
 0x811   : > { %7425 = vst [vmem:[#allocation42_spill] sm:$0xff] %v5971_v3  ;;  %v2171_v39 = vmax.f32 %v5966_v55, %v5971_v3  ;;  %v5975_v25 = vpop.f32.mrb[54].mxu1 }
 0x812   : > { %7426 = vst [vmem:[#allocation43_spill] sm:$0xff] %v5975_v25  ;;  %2160 = vmax.xlane.f32.xlu1 %v2159_v31  ;;  %v5977_v24 = vpop.f32.mrb[55].mxu1  ;;  %v1597_v46 = vadd.f32 %v1596_v22, %v1595_v16 }
 0x813   : > { %7427 = vst [vmem:[#allocation44_spill] sm:$0xff] %v5977_v24  ;;  %v2174_v18 = vmax.f32 %v5975_v25, %v5977_v24 }
 0x814   : > { %2151 = vmax.xlane.f32.xlu0 %v7428_v21  ;;  %v1598_v34 = vrot.slane %v1597_v46, 1 }
 0x816   : > { %2166 = vmax.xlane.f32.xlu1 %v2165_v63  ;;  %v1603_v63 = vadd.f32 %v1602_v5, %v1601_v38  ;;  %v1599_v44 = vadd.f32 %v1598_v34, %v1597_v46 }
 0x817   : > { %v5984_v9 = vpop.f32.mrb[56].mxu1 }
 0x818   : > { %7429 = vst [vmem:[#allocation45_spill] sm:$0xff] %v5984_v9  ;;  %2157 = vmax.xlane.f32.xlu0 %v2156_v58  ;;  %v5986_v0 = vpop.f32.mrb[57].mxu1  ;;  %v1604_v24 = vrot.slane %v1603_v63, 1  ;;  %v1606_v38 = vmul.f32 0.125, %v1599_v44 }
 0x819   : > { %7430 = vst [vmem:[#allocation46_spill] sm:$0xff] %v5986_v0  ;;  %v2177_v31 = vmax.f32 %v5984_v9, %v5986_v0  ;;  %v5990_v54 = vpop.f32.mrb[58].mxu1 }
 0x81a   : > { %7431 = vst [vmem:[#allocation47_spill] sm:$0xff] %v5990_v54  ;;  %2172 = vmax.xlane.f32.xlu1 %v2171_v39  ;;  %v5992_v7 = vpop.f32.mrb[59].mxu1  ;;  %v1605_v5 = vadd.f32 %v1604_v24, %v1603_v63  ;;  %v6016_v34 = vsub.f32 %v1588_v43, %v1606_v38 }
 0x81b   : > { %7432 = vst [vmem:[#allocation48_spill] sm:$0xff] %v5992_v7  ;;  %v2180_v21 = vmax.f32 %v5990_v54, %v5992_v7 }
 0x81c   : > { %2163 = vmax.xlane.f32.xlu0 %v2162_v32  ;;  %v1610_v44 = vmul.f32 %v6016_v34, %v6016_v34 }
 0x81e   : > { %2178 = vmax.xlane.f32.xlu1 %v2177_v31  ;;  %v1612_v53 = vrot.slane %v1610_v44, 4 }
 0x81f   : > { %v5996_v58 = vpop.f32.mrb[60].mxu1 }
 0x820   : > { %2169 = vmax.xlane.f32.xlu0 %v2168_v60  ;;  %v5998_v25 = vpop.f32.mrb[61].mxu1  ;;  %v1607_v60 = vmul.f32 0.125, %v1605_v5 }
 0x821   : > { %v6002_v39 = vpop.f32.mrb[62].mxu1 }
 0x822   : > { %v6004_v16 = vpop.f32.mrb[63].mxu1  ;;  %v6022_v24 = vsub.f32 %v1589_v8, %v1607_v60 }
 0x824   : > { %2175 = vmax.xlane.f32.xlu0 %v2174_v18  ;;  %v1611_v63 = vmul.f32 %v6022_v24, %v6022_v24  ;;  %v1613_v18 = vadd.f32 %v1612_v53, %v1610_v44 }
 0x826   : > { %v1618_v60 = vrot.slane %v1611_v63, 4  ;;  %v1614_v43 = vrot.slane %v1613_v18, 2 }
 0x827   : > { %v6008_v22 = vpop.f32.mrb[64].mxu1 }
 0x828   : > { %2181 = vmax.xlane.f32.xlu0 %v2180_v21  ;;  %v6010_v31 = vpop.f32.mrb[65].mxu1  ;;  %v1619_v0 = vadd.f32 %v1618_v60, %v1611_v63  ;;  %v1615_v8 = vadd.f32 %v1614_v43, %v1613_v18 }
 0x829   : > { %v6014_v7 = vpop.f32.mrb[66].mxu1 }
 0x82a   : > { %v6018_v46 = vpop.f32.mrb[67].mxu1  ;;  %v1620_v41 = vrot.slane %v1619_v0, 2  ;;  %v1616_v53 = vrot.slane %v1615_v8, 1 }
 0x82f   : > { %v6026_v21 = vpop.f32.mrb[68].mxu1 }
 0x830   : > { %v6030_v5 = vpop.f32.mrb[69].mxu1 }
 0x831   : > { %v6034_v38 = vpop.f32.mrb[70].mxu1 }
 0x832   : > { %7433 = vst [vmem:[#allocation49_spill] sm:$0xff] %v6034_v38  ;;  %v6036_v32 = vpop.f32.mrb[71].mxu1  ;;  %v1617_v38 = vadd.f32 %v1616_v53, %v1615_v8 }
 0x833   : > { %7434 = vst [vmem:[#allocation50_spill] sm:$0xff] %v6036_v32  ;;  %v1621_v32 = vadd.f32 %v1620_v41, %v1619_v0 }
 0x834   : > { %v1624_v60 = vmul.f32 0.125, %v1617_v38 }
 0x835   : > { %v1622_v44 = vrot.slane %v1621_v32, 1 }
 0x836   : > { %v1626_v4 = vadd.f32 1e-05, %v1624_v60 }
 0x837   : > { %v6040_v54 = vpop.f32.mrb[72].mxu1  ;;  %v1623_v63 = vadd.f32 %v1622_v44, %v1621_v32 }
 0x838   : > { %7435 = vst [vmem:[#allocation51_spill] sm:$0xff] %v6040_v54  ;;  %v6042_v9 = vpop.f32.mrb[73].mxu1  ;;  %4688 = vrsqrt.f32 %v1626_v4 }
 0x839   : > { %7436 = vst [vmem:[#allocation52_spill] sm:$0xff] %v6042_v9  ;;  %v6046_v61 = vpop.f32.mrb[74].mxu1  ;;  %v1625_v29 = vmul.f32 0.125, %v1623_v63 }
 0x83a   : > { %v6048_v3 = vpop.f32.mrb[75].mxu1 }
 0x83b   : > { %v1627_v47 = vadd.f32 1e-05, %v1625_v29 }
 0x83d   : > { %4690 = vrsqrt.f32 %v1627_v47 }
 0x850   : > { %v2113_v1 = vpop.xlane.xlu0 %2112 }
 0x851   : > { %v2207_v9 = vsub.f32 %v5804_v52, %v2113_v1  ;;  %v2208_v54 = vsub.f32 %v5806_v33, %v2113_v1 }
 0x852   : > { %v2116_v10 = vpop.xlane.xlu1 %2115 }
 0x853   : > { %v2271_v62 = vmul.f32 1.442695, %v2207_v9  ;;  %v2273_v55 = vmul.f32 1.442695, %v2208_v54  ;;  %v2209_v18 = vsub.f32 %v5810_v11, %v2116_v10  ;;  %v2210_v0 = vsub.f32 %v5812_v48, %v2116_v10  ;;  %v4689_v9 = vpop.eup %4688 }
 0x855   : > { %4692 = vpow2.f32 %v2271_v62  ;;  %v2275_v41 = vmul.f32 1.442695, %v2209_v18  ;;  %v2277_v32 = vmul.f32 1.442695, %v2210_v0  ;;  %v4691_v62 = vpop.eup %4690 }
 0x856   : > { %4694 = vpow2.f32 %v2273_v55  ;;  %v1631_v8 = vmul.f32 %v4691_v62, %v6022_v24  ;;  %v4238_v62 = vld [vmem:[%s7272_s8 + $0x8] sm:$0xf] }
 0x857   : > { %4696 = vpow2.f32 %v2275_v41 }
 0x858   : > { %4698 = vpow2.f32 %v2277_v32  ;;  %v2119_v29 = vpop.xlane.xlu0 %2118  ;;  %v7437_v32 = vmax.f32 %v5996_v58, %v5998_v25 }
 0x859   : > { %v2211_v52 = vsub.f32 %v5816_v28, %v2119_v29  ;;  %v2212_v33 = vsub.f32 %v5818_v6, %v2119_v29  ;;  %v1635_v28 = vpop.permute.xlu1 %1634  ;;  %v1630_v6 = vmul.f32 %v4689_v9, %v6016_v34 }
 0x85a   : > { %v1638_v44 = vmul.f32 %v1635_v28, %v1631_v8 }
 0x85b   : > { %v2279_v1 = vmul.f32 1.442695, %v2211_v52  ;;  %v2281_v4 = vmul.f32 1.442695, %v2212_v33  ;;  %v1637_v53 = vmul.f32 %v1635_v28, %v1630_v6  ;;  %v7438_v52 = vmax.f32 %v6002_v39, %v6004_v16 }
 0x85c   : > { %v2122_v54 = vpop.xlane.xlu0 %2121 }
 0x85d   : > { %4700 = vpow2.f32 %v2279_v1  ;;  %v2213_v11 = vsub.f32 %v5822_v13, %v2122_v54  ;;  %v2214_v48 = vsub.f32 %v5824_v57, %v2122_v54 }
 0x85e   : > { %4702 = vpow2.f32 %v2281_v4 }
 0x85f   : > { %v6060_v10 = vpop.eup %4692  ;;  %v2283_v47 = vmul.f32 1.442695, %v2213_v11  ;;  %v2285_v55 = vmul.f32 1.442695, %v2214_v48  ;;  %v7439_v11 = vmax.f32 %v6008_v22, %v6010_v31  ;;  %v7440_v48 = vmax.f32 %v6014_v7, %v6018_v46 }
 0x860   : > { %v6062_v43 = vpop.eup %4694 }
 0x861   : > { %v6064_v38 = vpop.eup %4696  ;;  %4704 = vpow2.f32 %v2283_v47  ;;  %v2399_v13 = vadd.f32 %v6062_v43, %v6060_v10 }
 0x862   : > { %v6070_v57 = vpop.eup %4698  ;;  %4706 = vpow2.f32 %v2285_v55 }
 0x863   : > { %2400 = vadd.xlane.f32.xlu1 %v2399_v13  ;;  %v2402_v63 = vadd.f32 %v6070_v57, %v6064_v38 }
 0x864   : > { %v1642_v60 = vpop.permute.xlu0 %1641 }
 0x865   : > { %2403 = vadd.xlane.f32.xlu0 %v2402_v63  ;;  %v1644_v18 = vadd.f32 %v1642_v60, %v1637_v53  ;;  %v1645_v0 = vadd.f32 %v1642_v60, %v1638_v44 }
 0x867   : > { %v6074_v34 = vpop.eup %4700  ;;  %v1769_v24 = vpack.c.bf16 %v1644_v18, %v1644_v18  ;;  %v1770_v41 = vpack.c.bf16 %v1645_v0, %v1645_v0  ;;  %2184 = vmax.xlane.f32.xlu1 %v7437_v32 }
 0x868   : > { %v6079_v29 = vpop.eup %4702 }
 0x869   : > { %2187 = vmax.xlane.f32.xlu0 %v7438_v52  ;;  %4240 = vmatprep.subr.msk.bf16.mxu0 %vm451_vm0, %v1770_v41  ;;  %v2405_v33 = vadd.f32 %v6079_v29, %v6074_v34  ;;  %v1782_v1 = vsel %vm451_vm0, %v1769_v24, 0 }
 0x86a   : > { %1788 = vmatpush1.bf16.msra.mxu0 %v1782_v1 }
 0x86b   : > { %v6088_v4 = vpop.eup %4704  ;;  %2406 = vadd.xlane.f32.xlu1 %v2405_v33 }
 0x86c   : > { %v6090_v9 = vpop.eup %4706 }
 0x86d   : > { %v2408_v54 = vadd.f32 %v6090_v9, %v6088_v4  ;;  %4241 = vmatmul.mubr.msk.bf16.vlgmr.msra.gmra.mrb[12].mxu0 %vm1655_vm8, %v4238_v62 }
 0x86f   : > { %2190 = vmax.xlane.f32.xlu1 %v7439_v11  ;;  %2409 = vadd.xlane.f32.xlu0 %v2408_v54 }
 0x873   : > { %2193 = vmax.xlane.f32.xlu0 %v7440_v48 }
 0x887   : > { %v2125_v47 = vpop.xlane.xlu1 %2124 }
 0x888   : > { %v2215_v55 = vsub.f32 %v5828_v56, %v2125_v47  ;;  %v2216_v28 = vsub.f32 %v5830_v17, %v2125_v47 }
 0x88a   : > { %v2287_v6 = vmul.f32 1.442695, %v2215_v55  ;;  %v2289_v8 = vmul.f32 1.442695, %v2216_v28 }
 0x88b   : > { %v2131_v13 = vpop.xlane.xlu1 %2130 }
 0x88c   : > { %4708 = vpow2.f32 %v2287_v6  ;;  %v2219_v53 = vsub.f32 %v5843_v12, %v2131_v13  ;;  %v2220_v44 = vsub.f32 %v5845_v15, %v2131_v13 }
 0x88d   : > { %4710 = vpow2.f32 %v2289_v8 }
 0x88e   : > { %v2295_v63 = vmul.f32 1.442695, %v2219_v53  ;;  %v2297_v18 = vmul.f32 1.442695, %v2220_v44 }
 0x88f   : > { %v2137_v60 = vpop.xlane.xlu1 %2136 }
 0x890   : > { %4712 = vpow2.f32 %v2295_v63  ;;  %v2223_v56 = vsub.f32 %v5855_v2, %v2137_v60  ;;  %v2224_v32 = vsub.f32 %v5857_v19, %v2137_v60 }
 0x891   : > { %v2128_v0 = vpop.xlane.xlu0 %2127  ;;  %4714 = vpow2.f32 %v2297_v18  ;;  %v7441_v18 = vmax.f32 %v6026_v21, %v6030_v5 }
 0x892   : > { %v2217_v24 = vsub.f32 %v5834_v36, %v2128_v0  ;;  %v2218_v41 = vsub.f32 %v5836_v26, %v2128_v0  ;;  %v2303_v26 = vmul.f32 1.442695, %v2223_v56  ;;  %v2305_v48 = vmul.f32 1.442695, %v2224_v32 }
 0x893   : > { %v2143_v17 = vpop.xlane.xlu1 %2142 }
 0x894   : > { %v2291_v52 = vmul.f32 1.442695, %v2217_v24  ;;  %v2293_v12 = vmul.f32 1.442695, %v2218_v41  ;;  %v2227_v2 = vsub.f32 %v5874_v45, %v2143_v17  ;;  %v2228_v19 = vsub.f32 %v5878_v23, %v2143_v17 }
 0x895   : > { %v2134_v33 = vpop.xlane.xlu0 %2133 }
 0x896   : > { %v6112_v15 = vpop.eup %4708  ;;  %4716 = vpow2.f32 %v2291_v52  ;;  %v2221_v1 = vsub.f32 %v5849_v35, %v2134_v33  ;;  %v2222_v54 = vsub.f32 %v5851_v14, %v2134_v33  ;;  %v2311_v35 = vmul.f32 1.442695, %v2227_v2 }
 0x897   : > { %v6116_v36 = vpop.eup %4710  ;;  %4718 = vpow2.f32 %v2293_v12  ;;  %v2149_v11 = vpop.xlane.xlu1 %2148  ;;  %v2313_v8 = vmul.f32 1.442695, %v2228_v19 }
 0x898   : > { %v2299_v62 = vmul.f32 1.442695, %v2221_v1  ;;  %v2411_v47 = vadd.f32 %v6116_v36, %v6112_v15  ;;  %v2301_v28 = vmul.f32 1.442695, %v2222_v54  ;;  %4720 = vpow2.f32 %v2303_v26 }
 0x899   : > { %v2140_v55 = vpop.xlane.xlu0 %2139  ;;  %v2231_v14 = vsub.f32 %v5891_v59, %v2149_v11  ;;  %4722 = vpow2.f32 %v2305_v48  ;;  %v2232_v45 = vsub.f32 %v5894_v51, %v2149_v11  ;;  %v7442_v11 = vld [vmem:[#allocation31_spill] sm:$0xff] }
 0x89a   : > { %2412 = vadd.xlane.f32.xlu1 %v2411_v47  ;;  %v6124_v13 = vpop.eup %4712  ;;  %4724 = vpow2.f32 %v2299_v62  ;;  %v2225_v23 = vsub.f32 %v5861_v42, %v2140_v55  ;;  %v2226_v63 = vsub.f32 %v5866_v40, %v2140_v55  ;;  %v7443_v62 = vld [vmem:[#allocation32_spill] sm:$0xff] }
 0x89b   : > { %v2155_v6 = vpop.xlane.xlu1 %2154  ;;  %v6127_v44 = vpop.eup %4714  ;;  %4726 = vpow2.f32 %v2301_v28  ;;  %v2319_v60 = vmul.f32 1.442695, %v2231_v14  ;;  %v2321_v24 = vmul.f32 1.442695, %v2232_v45  ;;  %v7445_v14 = vld [vmem:[#allocation51_spill] sm:$0xff] }
 0x89c   : > { %4728 = vpow2.f32 %v2311_v35  ;;  %v2235_v59 = vsub.f32 %v5907_v20, %v2155_v6  ;;  %v2236_v42 = vsub.f32 %v5910_v37, %v2155_v6  ;;  %v2307_v56 = vmul.f32 1.442695, %v2225_v23  ;;  %v7444_v35 = vld [vmem:[#allocation37_spill] sm:$0xff]  ;;  %v7446_v6 = vld [vmem:[#allocation52_spill] sm:$0xff] }
 0x89d   : > { %v2146_v53 = vpop.xlane.xlu0 %2145  ;;  %4730 = vpow2.f32 %v2313_v8  ;;  %v2417_v17 = vadd.f32 %v6127_v44, %v6124_v13  ;;  %v2309_v32 = vmul.f32 1.442695, %v2226_v63  ;;  %v7447_v8 = vmax.f32 %v7445_v14, %v7446_v6  ;;  %v7448_v63 = vld [vmem:[#allocation38_spill] sm:$0xff] }
 0x89e   : > { %2196 = vmax.xlane.f32.xlu1 %v7441_v18  ;;  %v2229_v40 = vsub.f32 %v5882_v50, %v2146_v53  ;;  %v2230_v52 = vsub.f32 %v5884_v27, %v2146_v53  ;;  %4732 = vpow2.f32 %v2319_v60  ;;  %v2327_v12 = vmul.f32 1.442695, %v2235_v59 }
 0x89f   : > { %v2161_v51 = vpop.xlane.xlu1 %2160  ;;  %4734 = vpow2.f32 %v2321_v24  ;;  %v2329_v54 = vmul.f32 1.442695, %v2236_v42  ;;  %v7450_v42 = vld [vmem:[#allocation49_spill] sm:$0xff] }
 0x8a0   : > { %v6134_v0 = vpop.eup %4716  ;;  %v2239_v33 = vsub.f32 %v5929_v30, %v2161_v51  ;;  %v2240_v50 = vsub.f32 %v5932_v49, %v2161_v51  ;;  %4736 = vpow2.f32 %v2307_v56  ;;  %v2315_v2 = vmul.f32 1.442695, %v2229_v40  ;;  %v7449_v51 = vld [vmem:[#allocation33_spill] sm:$0xff]  ;;  %v7451_v56 = vld [vmem:[#allocation50_spill] sm:$0xff] }
 0x8a1   : > { %v6137_v41 = vpop.eup %4718  ;;  %v2152_v20 = vpop.xlane.xlu0 %2151  ;;  %4738 = vpow2.f32 %v2309_v32  ;;  %v2317_v30 = vmul.f32 1.442695, %v2230_v52  ;;  %v7452_v40 = vmax.f32 %v7450_v42, %v7451_v56 }
 0x8a2   : > { %2418 = vadd.xlane.f32.xlu1 %v2417_v17  ;;  %v2414_v37 = vadd.f32 %v6137_v41, %v6134_v0  ;;  %v6147_v26 = vpop.eup %4720  ;;  %v2233_v48 = vsub.f32 %v7442_v11, %v2152_v20  ;;  %v2234_v47 = vsub.f32 %v7443_v62, %v2152_v20  ;;  %4740 = vpow2.f32 %v2327_v12  ;;  %v7453_v12 = vld [vmem:[#allocation34_spill] sm:$0xff] }
 0x8a3   : > { %v2167_v1 = vpop.xlane.xlu1 %2166  ;;  %v6150_v19 = vpop.eup %4722  ;;  %v2335_v28 = vmul.f32 1.442695, %v2239_v33  ;;  %4742 = vpow2.f32 %v2329_v54  ;;  %v2337_v53 = vmul.f32 1.442695, %v2240_v50  ;;  %v7455_v11 = vld [vmem:[#allocation42_spill] sm:$0xff] }
 0x8a4   : > { %2415 = vadd.xlane.f32.xlu0 %v2414_v37  ;;  %v6153_v55 = vpop.eup %4724  ;;  %v2243_v49 = vsub.f32 %v7444_v35, %v2167_v1  ;;  %v2244_v60 = vsub.f32 %v7448_v63, %v2167_v1  ;;  %4744 = vpow2.f32 %v2315_v2  ;;  %v2323_v18 = vmul.f32 1.442695, %v2233_v48  ;;  %v7454_v37 = vld [vmem:[#allocation41_spill] sm:$0xff] }
 0x8a5   : > { %v2158_v27 = vpop.xlane.xlu0 %2157  ;;  %v6159_v23 = vpop.eup %4726  ;;  %v2423_v17 = vadd.f32 %v6150_v19, %v6147_v26  ;;  %4746 = vpow2.f32 %v2317_v30  ;;  %v2325_v52 = vmul.f32 1.442695, %v2234_v47  ;;  %v7457_v47 = vld [vmem:[#allocation35_spill] sm:$0xff] }
 0x8a6   : > { %2202 = vmax.xlane.f32.xlu1 %v7447_v8  ;;  %v6162_v59 = vpop.eup %4728  ;;  %v2237_v24 = vsub.f32 %v7449_v51, %v2158_v27  ;;  %v2238_v33 = vsub.f32 %v7453_v12, %v2158_v27  ;;  %4748 = vpow2.f32 %v2335_v28  ;;  %v2343_v1 = vmul.f32 1.442695, %v2243_v49  ;;  %v7460_v12 = vld [vmem:[#allocation46_spill] sm:$0xff] }
 0x8a7   : > { %v2173_v45 = vpop.xlane.xlu1 %2172  ;;  %v6170_v32 = vpop.eup %4730  ;;  %v2420_v50 = vadd.f32 %v6159_v23, %v6153_v55  ;;  %4750 = vpow2.f32 %v2337_v53  ;;  %v2345_v2 = vmul.f32 1.442695, %v2244_v60  ;;  %v7458_v53 = vld [vmem:[#allocation36_spill] sm:$0xff] }
 0x8a8   : > { %2199 = vmax.xlane.f32.xlu0 %v7452_v40  ;;  %v2247_v54 = vsub.f32 %v7454_v37, %v2173_v45  ;;  %v2248_v48 = vsub.f32 %v7455_v11, %v2173_v45  ;;  %v6177_v35 = vpop.eup %4732  ;;  %4752 = vpow2.f32 %v2323_v18  ;;  %v2331_v30 = vmul.f32 1.442695, %v2237_v24  ;;  %v7459_v40 = vld [vmem:[#allocation45_spill] sm:$0xff] }
 0x8a9   : > { %v2164_v20 = vpop.xlane.xlu0 %2163  ;;  %7456 = vst [vmem:[#allocation31_spill] sm:$0xff] %v6177_v35  ;;  %v2429_v27 = vadd.f32 %v6170_v32, %v6162_v59  ;;  %v6182_v49 = vpop.eup %4734  ;;  %4754 = vpow2.f32 %v2325_v52  ;;  %v2333_v63 = vmul.f32 1.442695, %v2238_v33  ;;  %v7461_v33 = vld [vmem:[#allocation39_spill] sm:$0xff] }
 0x8aa   : > { %2424 = vadd.xlane.f32.xlu1 %v2423_v17  ;;  %v2241_v8 = vsub.f32 %v7457_v47, %v2164_v20  ;;  %v2242_v60 = vsub.f32 %v7458_v53, %v2164_v20  ;;  %v6185_v51 = vpop.eup %4736  ;;  %4756 = vpow2.f32 %v2343_v1  ;;  %v2351_v45 = vmul.f32 1.442695, %v2247_v54 }
 0x8ab   : > { %v2179_v62 = vpop.xlane.xlu1 %2178  ;;  %v6188_v24 = vpop.eup %4738  ;;  %4758 = vpow2.f32 %v2345_v2  ;;  %v2353_v17 = vmul.f32 1.442695, %v2248_v48  ;;  %v7462_v20 = vmax.f32 %v6046_v61, %v6048_v3  ;;  %v2435_v1 = vadd.f32 %v6182_v49, %v6177_v35  ;;  %v7463_v48 = vld [vmem:[#allocation40_spill] sm:$0xff] }
 0x8ac   : > { %2421 = vadd.xlane.f32.xlu0 %v2420_v50  ;;  %v2251_v18 = vsub.f32 %v7459_v40, %v2179_v62  ;;  %v2252_v37 = vsub.f32 %v7460_v12, %v2179_v62  ;;  %v6191_v50 = vpop.eup %4740  ;;  %4760 = vpow2.f32 %v2331_v30  ;;  %v2339_v52 = vmul.f32 1.442695, %v2241_v8 }
 0x8ad   : > { %v2170_v28 = vpop.xlane.xlu0 %2169  ;;  %v6199_v47 = vpop.eup %4742  ;;  %4762 = vpow2.f32 %v2333_v63  ;;  %v2341_v2 = vmul.f32 1.442695, %v2242_v60  ;;  %v2426_v8 = vadd.f32 %v6188_v24, %v6185_v51  ;;  %v7465_v63 = vld [vmem:[#allocation43_spill] sm:$0xff] }
 0x8ae   : > { %2430 = vadd.xlane.f32.xlu1 %v2429_v27  ;;  %v2245_v11 = vsub.f32 %v7461_v33, %v2170_v28  ;;  %v2246_v62 = vsub.f32 %v7463_v48, %v2170_v28  ;;  %v6202_v27 = vpop.eup %4744  ;;  %4764 = vpow2.f32 %v2351_v45  ;;  %v2359_v30 = vmul.f32 1.442695, %v2251_v18 }
 0x8af   : > { %v6206_v53 = vpop.eup %4746  ;;  %4766 = vpow2.f32 %v2353_v17  ;;  %v2361_v40 = vmul.f32 1.442695, %v2252_v37  ;;  %v2441_v28 = vadd.f32 %v6199_v47, %v6191_v50 }
 0x8b0   : > { %2205 = vmax.xlane.f32.xlu0 %v7462_v20  ;;  %v6208_v12 = vpop.eup %4748  ;;  %4768 = vpow2.f32 %v2339_v52  ;;  %v2347_v33 = vmul.f32 1.442695, %v2245_v11  ;;  %v2349_v18 = vmul.f32 1.442695, %v2246_v62  ;;  %v7466_v20 = vld [vmem:[#allocation44_spill] sm:$0xff]  ;;  %v2432_v17 = vadd.f32 %v6206_v53, %v6202_v27 }
 0x8b1   : > { %v2176_v54 = vpop.xlane.xlu0 %2175  ;;  %7464 = vst [vmem:[#allocation32_spill] sm:$0xff] %v6208_v12  ;;  %v6213_v45 = vpop.eup %4750  ;;  %4770 = vpow2.f32 %v2341_v2 }
 0x8b2   : > { %2436 = vadd.xlane.f32.xlu1 %v2435_v1  ;;  %v2249_v60 = vsub.f32 %v7465_v63, %v2176_v54  ;;  %v2250_v1 = vsub.f32 %v7466_v20, %v2176_v54  ;;  %v6216_v35 = vpop.eup %4752  ;;  %4772 = vpow2.f32 %v2359_v30  ;;  %v2447_v54 = vadd.f32 %v6213_v45, %v6208_v12  ;;  %v7470_v63 = vld [vmem:[#allocation48_spill] sm:$0xff] }
 0x8b3   : > { %v6220_v37 = vpop.eup %4754  ;;  %4774 = vpow2.f32 %v2361_v40 }
 0x8b4   : > { %2427 = vadd.xlane.f32.xlu0 %v2426_v8  ;;  %v6222_v52 = vpop.eup %4756  ;;  %4776 = vpow2.f32 %v2347_v33  ;;  %v2355_v11 = vmul.f32 1.442695, %v2249_v60  ;;  %v7468_v8 = vld [vmem:[#allocation47_spill] sm:$0xff]  ;;  %v2357_v30 = vmul.f32 1.442695, %v2250_v1  ;;  %v2438_v40 = vadd.f32 %v6220_v37, %v6216_v35 }
 0x8b5   : > { %v2182_v48 = vpop.xlane.xlu0 %2181  ;;  %7467 = vst [vmem:[#allocation37_spill] sm:$0xff] %v6222_v52  ;;  %v6227_v62 = vpop.eup %4758  ;;  %4778 = vpow2.f32 %v2349_v18 }
 0x8b6   : > { %2442 = vadd.xlane.f32.xlu1 %v2441_v28  ;;  %v2253_v2 = vsub.f32 %v7468_v8, %v2182_v48  ;;  %7469 = vst [vmem:[#allocation51_spill] sm:$0xff] %v6227_v62  ;;  %v2254_v28 = vsub.f32 %v7470_v63, %v2182_v48  ;;  %v6230_v20 = vpop.eup %4760  ;;  %4780 = vpow2.f32 %v2355_v11  ;;  %v2453_v8 = vadd.f32 %v6227_v62, %v6222_v52 }
 0x8b7   : > { %v6234_v33 = vpop.eup %4762  ;;  %4782 = vpow2.f32 %v2357_v30 }
 0x8b8   : > { %2433 = vadd.xlane.f32.xlu0 %v2432_v17  ;;  %v6236_v60 = vpop.eup %4764  ;;  %v2363_v17 = vmul.f32 1.442695, %v2253_v2  ;;  %v2365_v1 = vmul.f32 1.442695, %v2254_v28 }
 0x8b9   : > { %7471 = vst [vmem:[#allocation52_spill] sm:$0xff] %v6236_v60  ;;  %v6240_v18 = vpop.eup %4766 }
 0x8ba   : > { %2448 = vadd.xlane.f32.xlu1 %v2447_v54  ;;  %7472 = vst [vmem:[#allocation38_spill] sm:$0xff] %v6240_v18  ;;  %v6242_v48 = vpop.eup %4768  ;;  %v2444_v54 = vadd.f32 %v6234_v33, %v6230_v20  ;;  %4784 = vpow2.f32 %v2363_v17  ;;  %v2459_v11 = vadd.f32 %v6240_v18, %v6236_v60 }
 0x8bb   : > { %v6246_v63 = vpop.eup %4770  ;;  %4786 = vpow2.f32 %v2365_v1 }
 0x8bc   : > { %2439 = vadd.xlane.f32.xlu0 %v2438_v40  ;;  %v6248_v12 = vpop.eup %4772  ;;  %v2450_v28 = vadd.f32 %v6246_v63, %v6242_v48 }
 0x8bd   : > { %7473 = vst [vmem:[#allocation33_spill] sm:$0xff] %v6248_v12  ;;  %v6252_v2 = vpop.eup %4774 }
 0x8be   : > { %2454 = vadd.xlane.f32.xlu1 %v2453_v8  ;;  %7474 = vst [vmem:[#allocation49_spill] sm:$0xff] %v6252_v2  ;;  %v6254_v30 = vpop.eup %4776  ;;  %v2465_v8 = vadd.f32 %v6252_v2, %v6248_v12 }
 0x8bf   : > { %7475 = vst [vmem:[#allocation50_spill] sm:$0xff] %v6254_v30  ;;  %v6258_v40 = vpop.eup %4778 }
 0x8c0   : > { %2445 = vadd.xlane.f32.xlu0 %v2444_v54  ;;  %7476 = vst [vmem:[#allocation34_spill] sm:$0xff] %v6258_v40  ;;  %v6262_v17 = vpop.eup %4780  ;;  %v2456_v54 = vadd.f32 %v6258_v40, %v6254_v30 }
 0x8c1   : > { %7477 = vst [vmem:[#allocation41_spill] sm:$0xff] %v6262_v17  ;;  %v6266_v60 = vpop.eup %4782 }
 0x8c2   : > { %2460 = vadd.xlane.f32.xlu1 %v2459_v11  ;;  %7478 = vst [vmem:[#allocation42_spill] sm:$0xff] %v6266_v60  ;;  %v2462_v11 = vadd.f32 %v6266_v60, %v6262_v17 }
 0x8c4   : > { %2451 = vadd.xlane.f32.xlu0 %v2450_v28  ;;  %v6268_v1 = vpop.eup %4784 }
 0x8c5   : > { %7479 = vst [vmem:[#allocation35_spill] sm:$0xff] %v6268_v1  ;;  %v6272_v18 = vpop.eup %4786 }
 0x8c6   : > { %2466 = vadd.xlane.f32.xlu1 %v2465_v8  ;;  %7480 = vst [vmem:[#allocation36_spill] sm:$0xff] %v6272_v18  ;;  %v2468_v28 = vadd.f32 %v6272_v18, %v6268_v1 }
 0x8c8   : > { %2457 = vadd.xlane.f32.xlu0 %v2456_v54 }
 0x8cc   : > { %2463 = vadd.xlane.f32.xlu0 %v2462_v11 }
 0x8d0   : > { %2469 = vadd.xlane.f32.xlu0 %v2468_v28 }
 0x8f0   : > { %v2401_v12 = vpop.xlane.xlu1 %2400 }
 0x8f1   : > { %4788 = vrcp.f32 %v2401_v12 }
 0x8f2   : > { %v2404_v8 = vpop.xlane.xlu0 %2403 }
 0x8f3   : > { %4790 = vrcp.f32 %v2404_v8 }
 0x8f4   : > { %v2185_v2 = vpop.xlane.xlu1 %2184 }
 0x8f5   : > { %v2255_v52 = vsub.f32 %v5996_v58, %v2185_v2  ;;  %v2256_v54 = vsub.f32 %v5998_v25, %v2185_v2 }
 0x8f6   : > { %v2188_v30 = vpop.xlane.xlu0 %2187 }
 0x8f7   : > { %v2367_v62 = vmul.f32 1.442695, %v2255_v52  ;;  %v2369_v40 = vmul.f32 1.442695, %v2256_v54  ;;  %v2257_v17 = vsub.f32 %v6002_v39, %v2188_v30  ;;  %v2258_v11 = vsub.f32 %v6004_v16, %v2188_v30 }
 0x8f8   : > { %v2407_v60 = vpop.xlane.xlu1 %2406 }
 0x8f9   : > { %4792 = vpow2.f32 %v2367_v62  ;;  %v2371_v1 = vmul.f32 1.442695, %v2257_v17  ;;  %v2373_v28 = vmul.f32 1.442695, %v2258_v11 }
 0x8fa   : > { %4794 = vpow2.f32 %v2369_v40 }
 0x8fb   : > { %v4789_v12 = vpop.eup %4788  ;;  %4796 = vpow2.f32 %v2371_v1 }
 0x8fc   : > { %4798 = vpow2.f32 %v2373_v28  ;;  %v2191_v8 = vpop.xlane.xlu1 %2190  ;;  %v2410_v18 = vpop.xlane.xlu0 %2409  ;;  %v2560_v39 = vmul.f32 %v4789_v12, %v6062_v43  ;;  %v2559_v62 = vmul.f32 %v4789_v12, %v6060_v10 }
 0x8fd   : > { %v4791_v58 = vpop.eup %4790  ;;  %4800 = vrcp.f32 %v2407_v60  ;;  %v2259_v25 = vsub.f32 %v6008_v22, %v2191_v8  ;;  %v2260_v52 = vsub.f32 %v6010_v31, %v2191_v8 }
 0x8fe   : > { %4802 = vrcp.f32 %v2410_v18  ;;  %v2562_v16 = vmul.f32 %v4791_v58, %v6070_v57  ;;  %v2561_v2 = vmul.f32 %v4791_v58, %v6064_v38 }
 0x8ff   : > { %v2375_v30 = vmul.f32 1.442695, %v2259_v25  ;;  %v2377_v40 = vmul.f32 1.442695, %v2260_v52 }
 0x900   : > { %v2194_v17 = vpop.xlane.xlu0 %2193  ;;  %v2626_v1 = vpack.c.bf16 %v2562_v16, %v2560_v39  ;;  %v2625_v54 = vpack.c.bf16 %v2561_v2, %v2559_v62 }
 0x901   : > { %4804 = vpow2.f32 %v2375_v30  ;;  %v2261_v60 = vsub.f32 %v6014_v7, %v2194_v17  ;;  %v2262_v22 = vsub.f32 %v6018_v46, %v2194_v17 }
 0x902   : > { %4806 = vpow2.f32 %v2377_v40  ;;  %2657 = vmatprep.subr.bf16.mxu0 %v2626_v1 }
 0x903   : > { %v6288_v31 = vpop.eup %4792  ;;  %v2379_v43 = vmul.f32 1.442695, %v2261_v60  ;;  %v2381_v57 = vmul.f32 1.442695, %v2262_v22  ;;  %2658 = vmatpush1.bf16.xpose.msra.mxu0 %v2625_v54 }
 0x904   : > { %v6290_v10 = vpop.eup %4794 }
 0x905   : > { %v6292_v38 = vpop.eup %4796  ;;  %4808 = vpow2.f32 %v2379_v43  ;;  %v2471_v18 = vadd.f32 %v6290_v10, %v6288_v31 }
 0x906   : > { %v6296_v11 = vpop.eup %4798  ;;  %4810 = vpow2.f32 %v2381_v57 }
 0x907   : > { %v4801_v7 = vpop.eup %4800  ;;  %2472 = vadd.xlane.f32.xlu1 %v2471_v18  ;;  %v2474_v46 = vadd.f32 %v6296_v11, %v6292_v38 }
 0x908   : > { %v4803_v28 = vpop.eup %4802  ;;  %v2564_v12 = vmul.f32 %v4801_v7, %v6079_v29  ;;  %v2563_v58 = vmul.f32 %v4801_v7, %v6074_v34 }
 0x909   : > { %2475 = vadd.xlane.f32.xlu0 %v2474_v46  ;;  %v2566_v8 = vmul.f32 %v4803_v28, %v6090_v9  ;;  %v2565_v25 = vmul.f32 %v4803_v28, %v6088_v4 }
 0x90b   : > { %v6304_v52 = vpop.eup %4804  ;;  %v2628_v39 = vpack.c.bf16 %v2566_v8, %v2564_v12  ;;  %v2627_v16 = vpack.c.bf16 %v2565_v25, %v2563_v58 }
 0x90c   : > { %v6306_v62 = vpop.eup %4806 }
 0x90d   : > { %2659 = vmatprep.subr.bf16.mxu0 %v2628_v39  ;;  %v2477_v2 = vadd.f32 %v6306_v62, %v6304_v52 }
 0x90e   : > { %2660 = vmatpush1.bf16.xpose.msra.mxu0 %v2627_v16 }
 0x90f   : > { %v6310_v30 = vpop.eup %4808  ;;  %2478 = vadd.xlane.f32.xlu1 %v2477_v2 }
 0x910   : > { %v6312_v29 = vpop.eup %4810 }
 0x911   : > { %v2480_v34 = vadd.f32 %v6312_v29, %v6310_v30 }
 0x913   : > { %2481 = vadd.xlane.f32.xlu0 %v2480_v34 }
 0x927   : > { %v2413_v4 = vpop.xlane.xlu1 %2412 }
 0x928   : > { %4812 = vrcp.f32 %v2413_v4 }
 0x92b   : > { %v2197_v9 = vpop.xlane.xlu1 %2196 }
 0x92c   : > { %v2263_v40 = vsub.f32 %v6026_v21, %v2197_v9  ;;  %v2264_v17 = vsub.f32 %v6030_v5, %v2197_v9 }
 0x92e   : > { %v2383_v1 = vmul.f32 1.442695, %v2263_v40  ;;  %v2385_v54 = vmul.f32 1.442695, %v2264_v17 }
 0x92f   : > { %v2419_v60 = vpop.xlane.xlu1 %2418 }
 0x930   : > { %4814 = vpow2.f32 %v2383_v1 }
 0x931   : > { %4816 = vpow2.f32 %v2385_v54  ;;  %v2416_v22 = vpop.xlane.xlu0 %2415 }
 0x932   : > { %4818 = vrcp.f32 %v2416_v22  ;;  %v4813_v25 = vpop.eup %4812 }
 0x933   : > { %v2203_v43 = vpop.xlane.xlu1 %2202  ;;  %4820 = vrcp.f32 %v2419_v60  ;;  %v2568_v9 = vmul.f32 %v4813_v25, %v6116_v36  ;;  %v2567_v17 = vmul.f32 %v4813_v25, %v6112_v15 }
 0x934   : > { %v2267_v57 = vsub.f32 %v7445_v14, %v2203_v43  ;;  %v2268_v18 = vsub.f32 %v7446_v6, %v2203_v43 }
 0x935   : > { %v2200_v7 = vpop.xlane.xlu0 %2199 }
 0x936   : > { %v2391_v46 = vmul.f32 1.442695, %v2267_v57  ;;  %v2393_v28 = vmul.f32 1.442695, %v2268_v18  ;;  %v2265_v21 = vsub.f32 %v7450_v42, %v2200_v7  ;;  %v2266_v5 = vsub.f32 %v7451_v56, %v2200_v7 }
 0x937   : > { %v2425_v58 = vpop.xlane.xlu1 %2424 }
 0x938   : > { %4822 = vpow2.f32 %v2391_v46  ;;  %v2387_v12 = vmul.f32 1.442695, %v2265_v21  ;;  %v2389_v8 = vmul.f32 1.442695, %v2266_v5 }
 0x939   : > { %4824 = vpow2.f32 %v2393_v28  ;;  %v2422_v39 = vpop.xlane.xlu0 %2421 }
 0x93a   : > { %v6322_v16 = vpop.eup %4814  ;;  %4826 = vpow2.f32 %v2387_v12 }
 0x93b   : > { %v6324_v14 = vpop.eup %4816  ;;  %4828 = vpow2.f32 %v2389_v8  ;;  %v2431_v2 = vpop.xlane.xlu1 %2430 }
 0x93c   : > { %v2483_v6 = vadd.f32 %v6324_v14, %v6322_v16  ;;  %v4819_v42 = vpop.eup %4818  ;;  %4830 = vrcp.f32 %v2422_v39 }
 0x93d   : > { %v2206_v56 = vpop.xlane.xlu0 %2205  ;;  %v2570_v40 = vmul.f32 %v4819_v42, %v6137_v41  ;;  %v2569_v1 = vmul.f32 %v4819_v42, %v6134_v0  ;;  %4832 = vrcp.f32 %v2425_v58  ;;  %v4821_v43 = vpop.eup %4820 }
 0x93e   : > { %2484 = vadd.xlane.f32.xlu1 %v2483_v6  ;;  %v2269_v34 = vsub.f32 %v6046_v61, %v2206_v56  ;;  %v2270_v4 = vsub.f32 %v6048_v3, %v2206_v56  ;;  %4834 = vrcp.f32 %v2431_v2  ;;  %v2572_v28 = vmul.f32 %v4821_v43, %v6127_v44 }
 0x93f   : > { %v2630_v22 = vpack.c.bf16 %v2570_v40, %v2568_v9  ;;  %v2629_v18 = vpack.c.bf16 %v2569_v1, %v2567_v17  ;;  %v2571_v5 = vmul.f32 %v4821_v43, %v6124_v13  ;;  %v2437_v25 = vpop.xlane.xlu1 %2436 }
 0x940   : > { %v2395_v54 = vmul.f32 1.442695, %v2269_v34  ;;  %v2397_v60 = vmul.f32 1.442695, %v2270_v4 }
 0x941   : > { %v2428_v57 = vpop.xlane.xlu0 %2427  ;;  %2661 = vmatprep.subr.bf16.mxu0 %v2630_v22 }
 0x942   : > { %v6334_v7 = vpop.eup %4822  ;;  %4836 = vpow2.f32 %v2395_v54  ;;  %2662 = vmatpush1.bf16.xpose.msra.mxu0 %v2629_v18 }
 0x943   : > { %v6336_v61 = vpop.eup %4824  ;;  %4838 = vpow2.f32 %v2397_v60  ;;  %v2443_v22 = vpop.xlane.xlu1 %2442 }
 0x944   : > { %v6338_v3 = vpop.eup %4826  ;;  %4840 = vrcp.f32 %v2428_v57  ;;  %v2489_v15 = vadd.f32 %v6336_v61, %v6334_v7 }
 0x945   : > { %v6342_v36 = vpop.eup %4828  ;;  %v2434_v0 = vpop.xlane.xlu0 %2433 }
 0x946   : > { %2490 = vadd.xlane.f32.xlu1 %v2489_v15  ;;  %4842 = vrcp.f32 %v2434_v0  ;;  %v2486_v41 = vadd.f32 %v6342_v36, %v6338_v3  ;;  %v4831_v46 = vpop.eup %4830 }
 0x947   : > { %v2574_v21 = vmul.f32 %v4831_v46, %v6159_v23  ;;  %v2573_v12 = vmul.f32 %v4831_v46, %v6153_v55  ;;  %v4833_v58 = vpop.eup %4832  ;;  %v2449_v15 = vpop.xlane.xlu1 %2448 }
 0x948   : > { %2487 = vadd.xlane.f32.xlu0 %v2486_v41  ;;  %v4835_v42 = vpop.eup %4834  ;;  %v2576_v55 = vmul.f32 %v4833_v58, %v6150_v19  ;;  %v2575_v34 = vmul.f32 %v4833_v58, %v6147_v26  ;;  %v4239_v19 = vld [vmem:[%s7273_s9 + $0x10] sm:$0xff]  ;;  %v7481_v58 = vld [vmem:[#allocation31_spill] sm:$0xff] }
 0x949   : > { %v2440_v8 = vpop.xlane.xlu0 %2439  ;;  %v2632_v39 = vpack.c.bf16 %v2574_v21, %v2572_v28  ;;  %v2631_v6 = vpack.c.bf16 %v2573_v12, %v2571_v5  ;;  %v2580_v54 = vmul.f32 %v4835_v42, %v6170_v32  ;;  %v2579_v18 = vmul.f32 %v4835_v42, %v6162_v59  ;;  %v2701_v42 = vld [vmem:[%s7275_s11] sm:$0xff] }
 0x94a   : > { %4844 = vrcp.f32 %v2440_v8 }
 0x94b   : > { %2663 = vmatprep.subr.bf16.mxu0 %v2632_v39  ;;  %4846 = vrcp.f32 %v2437_v25 }
 0x94c   : > { %v6350_v56 = vpop.eup %4836  ;;  %2664 = vmatpush1.bf16.xpose.msra.mxu0 %v2631_v6 }
 0x94d   : > { %v6352_v2 = vpop.eup %4838  ;;  %v2446_v40 = vpop.xlane.xlu0 %2445 }
 0x94e   : > { %v4841_v44 = vpop.eup %4840  ;;  %v2492_v13 = vadd.f32 %v6352_v2, %v6350_v56  ;;  %4848 = vrcp.f32 %v2446_v40 }
 0x94f   : > { %v2578_v23 = vmul.f32 %v4841_v44, %v6188_v24  ;;  %v2577_v4 = vmul.f32 %v4841_v44, %v6185_v51  ;;  %4850 = vrcp.f32 %v2443_v22 }
 0x950   : > { %v4843_v9 = vpop.eup %4842  ;;  %2493 = vadd.xlane.f32.xlu0 %v2492_v13 }
 0x951   : > { %v2634_v17 = vpack.c.bf16 %v2578_v23, %v2576_v55  ;;  %v2633_v1 = vpack.c.bf16 %v2577_v4, %v2575_v34  ;;  %v2582_v60 = vmul.f32 %v4843_v9, %v6206_v53  ;;  %v2581_v24 = vmul.f32 %v4843_v9, %v6202_v27  ;;  %v2452_v57 = vpop.xlane.xlu0 %2451  ;;  %v6367_v53 = vpop.f32.mrb[12].mxu0 }
 0x952   : > { %v6371_v41 = vpop.f32.mrb[13].mxu0  ;;  %4852 = vrcp.f32 %v2452_v57 }
 0x953   : > { %2665 = vmatprep.subr.bf16.mxu0 %v2634_v17  ;;  %v2636_v43 = vpack.c.bf16 %v2582_v60, %v2580_v54  ;;  %v2635_v46 = vpack.c.bf16 %v2581_v24, %v2579_v18  ;;  %v1825_v28 = vpop.f32.mrb[14].mxu0  ;;  %4854 = vrcp.f32 %v2449_v15  ;;  %v7486_v15 = vld [vmem:[#allocation42_spill] sm:$0xff] }
 0x954   : > { %v4845_v26 = vpop.eup %4844  ;;  %2666 = vmatpush1.bf16.xpose.msra.mxu0 %v2633_v1  ;;  %v1826_v5 = vpop.f32.mrb[15].mxu0  ;;  %v7488_v28 = vld [vmem:[#allocation38_spill] sm:$0xff] }
 0x955   : > { %2667 = vmatprep.subr.bf16.mxu0 %v2636_v43  ;;  %v4847_v51 = vpop.eup %4846  ;;  %v2586_v32 = vmul.f32 %v4845_v26, %v6220_v37  ;;  %v2585_v37 = vmul.f32 %v4845_v26, %v6216_v35  ;;  %v2458_v8 = vpop.xlane.xlu0 %2457  ;;  %v7483_v43 = vld [vmem:[#allocation32_spill] sm:$0xff] }
 0x956   : > { %v2584_v0 = vmul.f32 %v4847_v51, %v6182_v49  ;;  %v2583_v25 = vmul.f32 %v4847_v51, %v7481_v58  ;;  %v2455_v49 = vpop.xlane.xlu1 %2454  ;;  %4856 = vrcp.f32 %v2458_v8  ;;  %v7489_v8 = vld [vmem:[#allocation41_spill] sm:$0xff]  ;;  %v7490_v58 = vld [vmem:[#allocation36_spill] sm:$0xff] }
 0x957   : > { %1775 = vperm.xlu1 %4434, %v4239_v19   ;;  %4858 = vrcp.f32 %v2455_v49  ;;  %v7491_v49 = vld [vmem:[#allocation52_spill] sm:$0xff] }
 0x958   : > { %v2638_v21 = vpack.c.bf16 %v2586_v32, %v2584_v0  ;;  %v4849_v12 = vpop.eup %4848  ;;  %v2637_v6 = vpack.c.bf16 %v2585_v37, %v2583_v25  ;;  %v7485_v32 = vld [vmem:[#allocation50_spill] sm:$0xff]  ;;  %v7487_v0 = vld [vmem:[#allocation37_spill] sm:$0xff] }
 0x959   : > { %v4851_v27 = vpop.eup %4850  ;;  %v2590_v59 = vmul.f32 %v4849_v12, %v6234_v33  ;;  %v2589_v33 = vmul.f32 %v4849_v12, %v6230_v20  ;;  %v2464_v55 = vpop.xlane.xlu0 %2463  ;;  %v7482_v20 = vld [vmem:[#allocation34_spill] sm:$0xff] }
 0x95a   : > { %v2588_v39 = vmul.f32 %v4851_v27, %v6199_v47  ;;  %v2587_v47 = vmul.f32 %v4851_v27, %v6191_v50  ;;  %v2461_v34 = vpop.xlane.xlu1 %2460  ;;  %4860 = vrcp.f32 %v2464_v55  ;;  %v7484_v50 = vld [vmem:[#allocation51_spill] sm:$0xff]  ;;  %v7494_v55 = vld [vmem:[#allocation33_spill] sm:$0xff] }
 0x95b   : > { %4862 = vrcp.f32 %v2461_v34 }
 0x95c   : > { %2668 = vmatpush1.bf16.xpose.msra.mxu0 %v2635_v46  ;;  %v2640_v44 = vpack.c.bf16 %v2590_v59, %v2588_v39  ;;  %v4853_v13 = vpop.eup %4852  ;;  %v2639_v9 = vpack.c.bf16 %v2589_v33, %v2587_v47 }
 0x95d   : > { %2669 = vmatprep.subr.bf16.mxu0 %v2638_v21  ;;  %v4855_v35 = vpop.eup %4854  ;;  %v2594_v23 = vmul.f32 %v4853_v13, %v6246_v63  ;;  %v2593_v54 = vmul.f32 %v4853_v13, %v6242_v48  ;;  %v2470_v60 = vpop.xlane.xlu0 %2469 }
 0x95e   : > { %v2592_v4 = vmul.f32 %v4855_v35, %v6213_v45  ;;  %v2591_v63 = vmul.f32 %v4855_v35, %v7483_v43  ;;  %v2467_v19 = vpop.xlane.xlu1 %2466  ;;  %4864 = vrcp.f32 %v2470_v60  ;;  %v7493_v35 = vld [vmem:[#allocation35_spill] sm:$0xff] }
 0x95f   : > { %4866 = vrcp.f32 %v2467_v19 }
 0x960   : > { %v2642_v40 = vpack.c.bf16 %v2594_v23, %v2592_v4  ;;  %v4857_v17 = vpop.eup %4856  ;;  %v2641_v45 = vpack.c.bf16 %v2593_v54, %v2591_v63 }
 0x961   : > { %v4859_v1 = vpop.eup %4858  ;;  %v2598_v22 = vmul.f32 %v4857_v17, %v7482_v20  ;;  %v2597_v18 = vmul.f32 %v4857_v17, %v7485_v32 }
 0x962   : > { %v2596_v26 = vmul.f32 %v4859_v1, %v7484_v50  ;;  %v2595_v46 = vmul.f32 %v4859_v1, %v7487_v0 }
 0x964   : > { %2670 = vmatpush1.bf16.xpose.msra.mxu0 %v2637_v6  ;;  %v2644_v51 = vpack.c.bf16 %v2598_v22, %v2596_v26  ;;  %v4861_v24 = vpop.eup %4860  ;;  %v2643_v5 = vpack.c.bf16 %v2597_v18, %v2595_v46  ;;  %v7492_v6 = vld [vmem:[#allocation49_spill] sm:$0xff] }
 0x965   : > { %2671 = vmatprep.subr.bf16.mxu0 %v2640_v44  ;;  %v4863_v57 = vpop.eup %4862  ;;  %v2602_v48 = vmul.f32 %v4861_v24, %v7486_v15  ;;  %v2601_v59 = vmul.f32 %v4861_v24, %v7489_v8 }
 0x966   : > { %2704 = vperm.xlu0 %4323, %v2701_v42   ;;  %v2600_v21 = vmul.f32 %v4863_v57, %v7488_v28  ;;  %v2599_v39 = vmul.f32 %v4863_v57, %v7491_v49 }
 0x968   : > { %v2646_v12 = vpack.c.bf16 %v2602_v48, %v2600_v21  ;;  %v4865_v27 = vpop.eup %4864  ;;  %v2645_v44 = vpack.c.bf16 %v2601_v59, %v2599_v39  ;;  %v7495_v59 = vmov 0  }
 0x969   : > { %v4867_v37 = vpop.eup %4866  ;;  %v2606_v25 = vmul.f32 %v4865_v27, %v7490_v58  ;;  %v2605_v33 = vmul.f32 %v4865_v27, %v7493_v35 }
 0x96a   : > { %v2604_v42 = vmul.f32 %v4867_v37, %v7492_v6  ;;  %v2603_v23 = vmul.f32 %v4867_v37, %v7494_v55 }
 0x96c   : > { %2672 = vmatpush1.bf16.xpose.msra.mxu0 %v2639_v9  ;;  %v2648_v13 = vpack.c.bf16 %v2606_v25, %v2604_v42  ;;  %v2647_v47 = vpack.c.bf16 %v2605_v33, %v2603_v23 }
 0x96d   : > { %2673 = vmatprep.subr.bf16.mxu0 %v2642_v40 }
 0x974   : > { %2674 = vmatpush1.bf16.xpose.msra.mxu0 %v2641_v45 }
 0x975   : > { %2675 = vmatprep.subr.bf16.mxu0 %v2644_v51 }
 0x97c   : > { %2676 = vmatpush1.bf16.xpose.msra.mxu0 %v2643_v5 }
 0x97d   : > { %2677 = vmatprep.subr.bf16.mxu0 %v2646_v12 }
 0x984   : > { %2678 = vmatpush1.bf16.xpose.msra.mxu0 %v2645_v44 }
 0x985   : > { %2679 = vmatprep.subr.bf16.mxu0 %v2648_v13 }
 0x98c   : > { %2680 = vmatpush1.bf16.xpose.msra.mxu0 %v2647_v47  ;;  %v7496_v47 = vld [vmem:[#allocation6_spill] sm:$0xff] }
 0x994   : > { %v2473_v34 = vpop.xlane.xlu1 %2472 }
 0x995   : > { %4868 = vrcp.f32 %v2473_v34  ;;  %v7497_v34 = vld [vmem:[#allocation4_spill] sm:$0xff] }
 0x996   : > { %v2476_v4 = vpop.xlane.xlu0 %2475  ;;  %vm3037_vm9 = vcmp.lt.s32.totalorder %v7497_v34, 2  ;;  %vm3074_vm10 = vcmp.lt.s32.totalorder %v7497_v34, 126  ;;  %vm3111_vm11 = vcmp.lt.s32.totalorder %v7497_v34, 3  ;;  %vm3147_vm12 = vcmp.lt.s32.totalorder %v7497_v34, 125 }
 0x997   : > { %4870 = vrcp.f32 %v2476_v4  ;;  %vm3405_vm13 = vcmp.lt.s32.totalorder %v7497_v34, 32  ;;  %vm3439_vm14 = vcmp.lt.s32.totalorder %v7497_v34, 96  ;;  %vm3639_vm15 = vcmp.lt.s32.totalorder %v7497_v34, 48 }
 0x998   : > { %vm3673_vm4 = vcmp.lt.s32.totalorder %v7497_v34, 80  ;;  %v4289_v34 = vld [vmem:[%s7267_s3 + $0x18] sm:$0xf] }
 0x99c   : > { %v2479_v9 = vpop.xlane.xlu1 %2478 }
 0x99d   : > { %4872 = vrcp.f32 %v2479_v9  ;;  %v7498_v9 = vld [vmem:[#allocation2_spill] sm:$0xff] }
 0x99f   : > { %v4869_v40 = vpop.eup %4868 }
 0x9a0   : > { %v2482_v17 = vpop.xlane.xlu0 %2481  ;;  %v2608_v54 = vmul.f32 %v4869_v40, %v6290_v10  ;;  %v2607_v20 = vmul.f32 %v4869_v40, %v6288_v31 }
 0x9a1   : > { %v4871_v1 = vpop.eup %4870  ;;  %4874 = vrcp.f32 %v2482_v17  ;;  %v7499_v17 = vld [vmem:[#allocation8_spill] sm:$0xff] }
 0x9a2   : > { %v2610_v60 = vmul.f32 %v4871_v1, %v6296_v11  ;;  %v2609_v22 = vmul.f32 %v4871_v1, %v6292_v38 }
 0x9a4   : > { %v2650_v43 = vpack.c.bf16 %v2610_v60, %v2608_v54  ;;  %v2649_v63 = vpack.c.bf16 %v2609_v22, %v2607_v20  ;;  %v7500_v54 = vld [vmem:[#allocation13_spill] sm:$0xff] }
 0x9a6   : > { %2681 = vmatprep.subr.bf16.mxu0 %v2650_v43 }
 0x9a7   : > { %2682 = vmatpush1.bf16.xpose.msra.mxu0 %v2649_v63  ;;  %v4873_v19 = vpop.eup %4872 }
 0x9a8   : > { %v2612_v26 = vmul.f32 %v4873_v19, %v6306_v62  ;;  %v2611_v51 = vmul.f32 %v4873_v19, %v6304_v52  ;;  %v7501_v19 = vld [vmem:[#allocation15_spill] sm:$0xff] }
 0x9ab   : > { %v4875_v50 = vpop.eup %4874 }
 0x9ac   : > { %v2614_v45 = vmul.f32 %v4875_v50, %v6312_v29  ;;  %v2613_v10 = vmul.f32 %v4875_v50, %v6310_v30 }
 0x9ae   : > { %v2652_v24 = vpack.c.bf16 %v2614_v45, %v2612_v26  ;;  %v2651_v11 = vpack.c.bf16 %v2613_v10, %v2611_v51  ;;  %v7502_v26 = vld [vmem:[#allocation16_spill] sm:$0xff] }
 0x9b0   : > { %2683 = vmatprep.subr.bf16.mxu0 %v2652_v24 }
 0x9b1   : > { %2684 = vmatpush1.bf16.xpose.msra.mxu0 %v2651_v11 }
 0x9cb   : > { %v2485_v31 = vpop.xlane.xlu1 %2484 }
 0x9cc   : > { %4876 = vrcp.f32 %v2485_v31 }
 0x9d3   : > { %v2491_v38 = vpop.xlane.xlu1 %2490 }
 0x9d5   : > { %v2488_v57 = vpop.xlane.xlu0 %2487 }
 0x9d6   : > { %4878 = vrcp.f32 %v2488_v57  ;;  %v4877_v29 = vpop.eup %4876 }
 0x9d7   : > { %v1776_v32 = vpop.permute.xlu1 %1775  ;;  %4880 = vrcp.f32 %v2491_v38  ;;  %v2616_v30 = vmul.f32 %v4877_v29, %v6324_v14  ;;  %v2615_v0 = vmul.f32 %v4877_v29, %v6322_v16  ;;  %v7503_v38 = vld [vmem:[#allocation14_spill] sm:$0xff] }
 0x9d8   : > { %v1824_v18 = vadd.f32 %v6371_v41, %v1776_v32  ;;  %v1822_v16 = vadd.f32 %v6367_v53, %v1776_v32  ;;  %v7504_v32 = vld [vmem:[#allocation12_spill] sm:$0xff] }
 0x9da   : > { %v2624_v15 = vpack.c.bf16 %v1824_v18, %v1824_v18 }
 0x9dc   : > { %2689 = vmatprep.mubr.bf16.mxu0 %v2624_v15 }
 0x9dd   : > { %v2494_v62 = vpop.xlane.xlu0 %2493 }
 0x9de   : > { %4882 = vrcp.f32 %v2494_v62 }
 0x9e0   : > { %v4879_v52 = vpop.eup %4878 }
 0x9e1   : > { %v2618_v48 = vmul.f32 %v4879_v52, %v6342_v36  ;;  %v2617_v46 = vmul.f32 %v4879_v52, %v6338_v3  ;;  %v4881_v5 = vpop.eup %4880  ;;  %v2623_v3 = vpack.c.bf16 %v1822_v16, %v1822_v16 }
 0x9e2   : > { %v2620_v12 = vmul.f32 %v4881_v5, %v6336_v61  ;;  %v2619_v37 = vmul.f32 %v4881_v5, %v6334_v7  ;;  %v7505_v5 = vld [vmem:[#allocation19_spill] sm:$0xff] }
 0x9e3   : > { %v2654_v28 = vpack.c.bf16 %v2618_v48, %v2616_v30  ;;  %v2653_v21 = vpack.c.bf16 %v2617_v46, %v2615_v0  ;;  %v4262_v30 = vld [vmem:[%s7268_s4 + $0x10] sm:$0xff]  ;;  %v4267_v48 = vld [vmem:[%s7276_s12 + $0x8] sm:$0xff]  ;;  %v2956_v0 = vld [vmem:[%s7276_s12] sm:$0xff] }
 0x9e5   : > { %2685 = vmatprep.subr.bf16.mxu0 %v2654_v28  ;;  %v2705_v53 = vpop.permute.xlu0 %2704 }
 0x9e6   : > { %2686 = vmatpush1.bf16.xpose.msra.mxu0 %v2653_v21 }
 0x9e8   : > { %v4883_v41 = vpop.eup %4882 }
 0x9e9   : > { %v2622_v27 = vmul.f32 %v4883_v41, %v6352_v2  ;;  %v2621_v14 = vmul.f32 %v4883_v41, %v6350_v56  ;;  %v2698_v56 = vld [vmem:[%s7274_s10] sm:$0xf] }
 0x9eb   : > { %v2656_v8 = vpack.c.bf16 %v2622_v27, %v2620_v12  ;;  %v2655_v36 = vpack.c.bf16 %v2621_v14, %v2619_v37  ;;  %v7506_v12 = vld [vmem:[#allocation18_spill] sm:$0xff] }
 0x9ed   : > { %2687 = vmatprep.subr.bf16.mxu0 %v2656_v8 }
 0x9ee   : > { %2688 = vmatpush1.bf16.xpose.msra.mxu0 %v2655_v36 }
 0x9f5   : > { %2690 = vmatmul.mubr.bf16.vlgmr.msra.gmra.mrb[16].mxu0 %v2623_v3 }
 0x9f6   : > { %2906 = vmatprep.mubr.bf16.mxu0 %v7495_v59 }
 0xac8   : > { %v2691_v58 = vpop.f32.mrb[16].mxu0 }
 0xac9   : > { %v2699_v25 = vpack.c.bf16 %v2691_v58, %v2691_v58  ;;  %v2693_v49 = vpop.f32.mrb[17].mxu0 }
 0xaca   : > { %v2700_v61 = vpack.c.bf16 %v2693_v49, %v2693_v49  ;;  %v2695_v39 = vpop.f32.mrb[18].mxu0 }
 0xacb   : > { %v2711_v2 = vsel %vm451_vm0, %v2699_v25, 0  ;;  %v2696_v7 = vpop.f32.mrb[19].mxu0 }
 0xacc   : > { %4259 = vmatprep.subr.msk.bf16.mxu1 %vm451_vm0, %v2700_v61 }
 0xacd   : > { %2717 = vmatpush1.bf16.msra.mxu1 %v2711_v2 }
 0xad0   : > { %4260 = vmatmul.mubr.msk.bf16.vlgmr.msra.gmra.mrb[76].mxu1 %vm1655_vm8, %v2698_v56 }
 0xad1   : > { %2946 = vmatprep.mubr.bf16.mxu1 %v7495_v59 }
 0xba3   : > { %v2750_v6 = vpop.f32.mrb[76].mxu1 }
 0xba4   : > { %v6424_v42 = vadd.f32 %v2750_v6, %v2705_v53  ;;  %v2752_v44 = vpop.f32.mrb[77].mxu1 }
 0xba5   : > { %v2754_v13 = vpop.f32.mrb[78].mxu1  ;;  %v6430_v33 = vadd.f32 %v2752_v44, %v2705_v53  ;;  %v7507_v44 = vld [vmem:[#allocation20_spill] sm:$0xff] }
 0xba6   : > { %2767 = vrot.lane.b32.xlu0 %v6424_v42, %s4927_s15  ;;  %2757 = vrot.lane.b32.xlu1 %v6424_v42, %s4926_s14  ;;  %v2755_v35 = vpop.f32.mrb[79].mxu1 }
 0xba7   : > { %v4455_v52 = vpack.i.bf16 %v6430_v33, %v6424_v42 }
 0xbaa   : > { %2759 = vrot.lane.b32.xlu1 %v6430_v33, %s4926_s14 }
 0xbae   : > { %2769 = vrot.lane.b32.xlu1 %v6430_v33, %s4927_s15 }
 0xc18   : > { %v2768_v55 = vpop.permute.xlu0 %2767  ;;  %v2758_v23 = vpop.permute.xlu1 %2757 }
 0xc19   : > { %v2773_v4 = vsel %vm579_vm2, %v7496_v47, %v2768_v55  ;;  %v2763_v40 = vsel %vm542_vm1, %v7498_v9, %v2758_v23 }
 0xc1a   : > { %v6443_v1 = vmul.f32 %v2763_v40, %v7499_v17  ;;  %v6446_v60 = vmul.f32 %v2773_v4, %v7500_v54 }
 0xc1c   : > { %v4435_v20 = vpack.i.bf16 %v6424_v42, %v6443_v1  ;;  %v2760_v22 = vpop.permute.xlu1 %2759  ;;  %v4440_v51 = vpack.i.bf16 %v6446_v60, %v6430_v33 }
 0xc1d   : > { %v2762_v43 = vsel %vm542_vm1, %v2758_v23, %v2760_v22  ;;  %v2761_v63 = vsel %vm542_vm1, %v2760_v22, %v7498_v9 }
 0xc1e   : > { %v6456_v50 = vmul.f32 %v2762_v43, %v7501_v19  ;;  %v6459_v45 = vmul.f32 %v2761_v63, %v7502_v26  ;;  %4436 = vrot.lane.b32.xlu0 %v4435_v20, %s4929_s20 }
 0xc20   : > { %v4445_v10 = vpack.i.bf16 %v6459_v45, %v6456_v50  ;;  %v2770_v24 = vpop.permute.xlu1 %2769  ;;  %v4460_v15 = vpack.i.bf16 %v6456_v50, %v6443_v1  ;;  %v4465_v29 = vpack.i.bf16 %v6446_v60, %v6459_v45 }
 0xc21   : > { %v2771_v11 = vsel %vm579_vm2, %v2770_v24, %v7496_v47  ;;  %v2772_v31 = vsel %vm579_vm2, %v2768_v55, %v2770_v24  ;;  %v7508_v24 = vld [vmem:[#allocation9_spill] sm:$0xff] }
 0xc22   : > { %v6472_v57 = vmul.f32 %v2772_v31, %v7503_v38  ;;  %v6475_v18 = vmul.f32 %v2771_v11, %v7504_v32  ;;  %4441 = vrot.lane.b32.xlu0 %v4440_v51, %s4929_s20  ;;  %4446 = vrot.lane.b32.xlu1 %v4445_v10, %s4929_s20 }
 0xc24   : > { %v4450_v62 = vpack.i.bf16 %v6475_v18, %v6472_v57 }
 0xc26   : > { %4461 = vrot.lane.b32.xlu0 %v4460_v15, %s4930_s27  ;;  %4451 = vrot.lane.b32.xlu1 %v4450_v62, %s4929_s20 }
 0xc2a   : > { %4466 = vrot.lane.b32.xlu0 %v4465_v29, %s4930_s27  ;;  %4456 = vrot.lane.b32.xlu1 %v4455_v52, %s4930_s27 }
 0xc2e   : > { %2856 = vperm.xlu0 %4323, %v4262_v30   ;;  %4471 = vrot.lane.b32.xlu1 %v4450_v62, %s4930_s27  ;;  %v2844_v30 = vpack.c.bf16 %v6472_v57, %v6424_v42 }
 0xc32   : > { %3006 = vperm.xlu0 %4323, %v4267_v48   ;;  %2999 = vperm.xlu1 %4434, %v2956_v0  }
 0xc90   : > { %v4437_v46 = vpop.permute.xlu0 %4436 }
 0xc91   : > { %v4439_v28 = vunpack.i.h.bf16 %v4437_v46  ;;  %v4438_v21 = vunpack.i.l.bf16 %v4437_v46 }
 0xc93   : > { %v2789_v41 = vsel %vm620_vm3, %v7505_v5, %v4438_v21  ;;  %v2797_v27 = vsel %vm620_vm3, %v7506_v12, %v4439_v28 }
 0xc94   : > { %v4442_v37 = vpop.permute.xlu0 %4441  ;;  %v4447_v14 = vpop.permute.xlu1 %4446  ;;  %v2836_v8 = vpack.c.bf16 %v2797_v27, %v2789_v41  ;;  %v7511_v27 = vld [vmem:[#allocation23_spill] sm:$0xff] }
 0xc95   : > { %v4443_v36 = vunpack.i.l.bf16 %v4442_v37  ;;  %v4449_v16 = vunpack.i.h.bf16 %v4447_v14  ;;  %v4448_v3 = vunpack.i.l.bf16 %v4447_v14  ;;  %v4444_v58 = vunpack.i.h.bf16 %v4442_v37  ;;  %v7512_v14 = vld [vmem:[#allocation21_spill] sm:$0xff] }
 0xc96   : > { %2874 = vmatprep.subr.bf16.mxu0 %v2836_v8 }
 0xc97   : > { %v2796_v25 = vsel %vm620_vm3, %v4439_v28, %v4443_v36  ;;  %v2790_v49 = vsel %vm620_vm3, %v4449_v16, %v7505_v5  ;;  %v2788_v61 = vsel %vm620_vm3, %v4438_v21, %v4448_v3  ;;  %v2787_v56 = vsel %vm620_vm3, %v4448_v3, %v4449_v16 }
 0xc98   : > { %v2835_v39 = vpack.c.bf16 %v7506_v12, %v2790_v49  ;;  %v4462_v2 = vpop.permute.xlu0 %4461  ;;  %v4452_v7 = vpop.permute.xlu1 %4451  ;;  %v2807_v13 = vsel %vm620_vm3, %v7507_v44, %v4444_v58  ;;  %v2837_v35 = vpack.c.bf16 %v2796_v25, %v2788_v61  ;;  %v2795_v55 = vsel %vm620_vm3, %v4443_v36, %v7506_v12  ;;  %v7513_v61 = vld [vmem:[#allocation24_spill] sm:$0xff] }
 0xc99   : > { %v4454_v53 = vunpack.i.h.bf16 %v4452_v7  ;;  %v4453_v6 = vunpack.i.l.bf16 %v4452_v7  ;;  %v2838_v4 = vpack.c.bf16 %v2795_v55, %v2787_v56  ;;  %v4464_v20 = vunpack.i.h.bf16 %v4462_v2 }
 0xc9a   : > { %2875 = vmatpush1.bf16.msra.mxu0 %v2835_v39  ;;  %v4463_v22 = vunpack.i.l.bf16 %v4462_v2  ;;  %v2839_v11 = vpack.c.bf16 %v7508_v24, %v2807_v13  ;;  %v2845_v36 = vpack.c.bf16 %v6475_v18, %v6430_v33  ;;  %v4261_v13 = vld [vmem:[%s7267_s3 + $0x8] sm:$0xf] }
 0xc9b   : > { %v2805_v23 = vsel %vm620_vm3, %v4453_v6, %v4454_v53  ;;  %v2806_v40 = vsel %vm620_vm3, %v4444_v58, %v4453_v6  ;;  %v2804_v10 = vsel %vm620_vm3, %v4454_v53, %v7507_v44  ;;  %2914 = vmatprep.subr.bf16.mxu1 %v2838_v4 }
 0xc9c   : > { %v4467_v43 = vpop.permute.xlu0 %4466  ;;  %v4457_v63 = vpop.permute.xlu1 %4456  ;;  %v2840_v51 = vpack.c.bf16 %v6443_v1, %v2806_v40  ;;  %v2841_v62 = vpack.c.bf16 %v6456_v50, %v2805_v23  ;;  %2915 = vmatpush1.bf16.msra.mxu1 %v2837_v35  ;;  %v2842_v52 = vpack.c.bf16 %v6459_v45, %v2804_v10  ;;  %v7509_v1 = vmov 0.0   ;;  %v7510_v45 = vld [vmem:[#allocation22_spill] sm:$0xff] }
 0xc9d   : > { %v4459_v31 = vunpack.i.h.bf16 %v4457_v63  ;;  %v4458_v15 = vunpack.i.l.bf16 %v4457_v63  ;;  %v4468_v29 = vunpack.i.l.bf16 %v4467_v43  ;;  %v2843_v48 = vpack.c.bf16 %v6446_v60, %v7509_v1 }
 0xc9e   : > { %2876 = vmatprep.subr.bf16.mxu0 %v2840_v51  ;;  %2916 = vmatprep.subr.bf16.mxu1 %v2842_v52  ;;  %v2815_v46 = vsel %vm654_vm6, %v4463_v22, %v4464_v20  ;;  %v4469_v28 = vunpack.i.h.bf16 %v4467_v43  ;;  %v2816_v16 = vsel %vm654_vm6, %v7511_v27, %v4463_v22  ;;  %v7514_v51 = vld [vmem:[#allocation29_spill] sm:$0xff] }
 0xc9f   : > { %2877 = vmatpush1.bf16.msra.mxu0 %v2839_v11  ;;  %v2823_v41 = vsel %vm654_vm6, %v4458_v15, %v4459_v31  ;;  %v2824_v42 = vsel %vm654_vm6, %v7510_v45, %v4458_v15  ;;  %v2817_v60 = vsel %vm654_vm6, %v4468_v29, %v7511_v27  ;;  %v2814_v3 = vsel %vm654_vm6, %v4464_v20, %v4468_v29 }
 0xca0   : > { %v4472_v0 = vpop.permute.xlu1 %4471  ;;  %2878 = vmatprep.subr.bf16.mxu0 %v2844_v30  ;;  %2917 = vmatpush1.bf16.msra.mxu1 %v2841_v62  ;;  %v2847_v57 = vpack.c.bf16 %v2823_v41, %v2815_v46  ;;  %v2822_v58 = vsel %vm654_vm6, %v4459_v31, %v7510_v45  ;;  %v2846_v25 = vpack.c.bf16 %v2824_v42, %v2816_v16  ;;  %v7515_v10 = vmax.f32 %v7514_v51, 0.0  ;;  %v7516_v62 = vld [vmem:[#allocation30_spill] sm:$0xff] }
 0xca1   : > { %v4474_v50 = vunpack.i.h.bf16 %v4472_v0  ;;  %v4473_v21 = vunpack.i.l.bf16 %v4472_v0  ;;  %2918 = vmatprep.subr.bf16.mxu1 %v7512_v14  ;;  %v2849_v49 = vpack.c.bf16 %v7510_v45, %v2817_v60  ;;  %v2834_v39 = vsel %vm654_vm6, %v7513_v61, %v4469_v28 }
 0xca2   : > { %v2848_v7 = vpack.c.bf16 %v2822_v58, %v2814_v3  ;;  %v2853_v56 = vpack.c.bf16 %v2834_v39, %v2834_v39  ;;  %v7517_v29 = vmax.f32 %v7516_v62, 0.0 }
 0xca3   : > { %v2832_v37 = vsel %vm654_vm6, %v4473_v21, %v4474_v50  ;;  %2879 = vmatpush1.bf16.msra.mxu0 %v2843_v48  ;;  %v2833_v8 = vsel %vm654_vm6, %v4469_v28, %v4473_v21  ;;  %v2831_v2 = vsel %vm654_vm6, %v4474_v50, %v7513_v61 }
 0xca4   : > { %2880 = vmatprep.subr.bf16.mxu0 %v2847_v57  ;;  %v2851_v33 = vpack.c.bf16 %v2832_v37, %v2832_v37  ;;  %2919 = vmatpush1.bf16.msra.mxu1 %v2845_v36  ;;  %v2850_v18 = vpack.c.bf16 %v2833_v8, %v2833_v8  ;;  %v2852_v53 = vpack.c.bf16 %v2831_v2, %v2831_v2 }
 0xca5   : > { %2920 = vmatprep.subr.bf16.mxu1 %v2849_v49 }
 0xca6   : > { %v2863_v6 = vsel %vm451_vm0, %v2850_v18, 0  ;;  %v2869_v35 = vsel %vm451_vm0, %v2852_v53, 0 }
 0xca7   : > { %2881 = vmatpush1.bf16.msra.mxu0 %v2846_v25 }
 0xca8   : > { %4263 = vmatprep.subr.msk.bf16.mxu0 %vm451_vm0, %v2851_v33  ;;  %2921 = vmatpush1.bf16.msra.mxu1 %v2848_v7 }
 0xca9   : > { %4265 = vmatprep.subr.msk.bf16.mxu1 %vm451_vm0, %v2853_v56 }
 0xcab   : > { %2883 = vmatpush1.bf16.msra.mxu0 %v2863_v6 }
 0xcac   : > { %2923 = vmatpush1.bf16.msra.mxu1 %v2869_v35 }
 0xcad   : > { %v2857_v23 = vpop.permute.xlu0 %2856 }
 0xcae   : > { %4264 = vmatmul.mubr.msk.bf16.vlgmr.msra.gmra.mrb[20].mxu0 %vm705_vm7, %v4261_v13 }
 0xcaf   : > { %3307 = vmatprep.mubr.bf16.mxu0 %v7495_v59  ;;  %4266 = vmatmul.mubr.msk.bf16.vlgmr.msra.gmra.mrb[80].mxu1 %vm705_vm7, %v4261_v13 }
 0xcb0   : > { %3348 = vmatprep.mubr.bf16.mxu1 %v7495_v59 }
 0xcb1   : > { %v3007_v62 = vpop.permute.xlu0 %3006 }
 0xd81   : > { %v2908_v55 = vpop.f32.mrb[20].mxu0 }
 0xd82   : > { %v2909_v4 = vpop.f32.mrb[21].mxu0  ;;  %v2948_v22 = vpop.f32.mrb[80].mxu1 }
 0xd83   : > { %v2910_v40 = vadd.f32 %v2909_v4, %v2857_v23  ;;  %v2911_v20 = vpop.f32.mrb[22].mxu0  ;;  %v2949_v63 = vadd.f32 %v2948_v22, %v2857_v23  ;;  %v2950_v31 = vpop.f32.mrb[81].mxu1 }
 0xd84   : > { %v2912_v43 = vpop.f32.mrb[23].mxu0  ;;  %v2951_v15 = vpop.f32.mrb[82].mxu1 }
 0xd85   : > { %v6583_v11 = vadd.f32 %v2910_v40, %v7515_v10  ;;  %v6587_v52 = vadd.f32 %v2949_v63, %v7517_v29  ;;  %v2952_v48 = vpop.f32.mrb[83].mxu1  ;;  %v3000_v10 = vpop.permute.xlu1 %2999 }
 0xd87   : > { %v2959_v30 = vrot.slane %v6583_v11, 4  ;;  %v2965_v0 = vrot.slane %v6587_v52, 4 }
 0xd89   : > { %v2960_v46 = vadd.f32 %v2959_v30, %v6583_v11  ;;  %v2966_v28 = vadd.f32 %v2965_v0, %v6587_v52 }
 0xd8b   : > { %v2961_v50 = vrot.slane %v2960_v46, 2  ;;  %v2967_v21 = vrot.slane %v2966_v28, 2 }
 0xd8d   : > { %v2962_v41 = vadd.f32 %v2961_v50, %v2960_v46  ;;  %v2968_v42 = vadd.f32 %v2967_v21, %v2966_v28 }
 0xd8f   : > { %v2963_v57 = vrot.slane %v2962_v41, 1  ;;  %v2969_v60 = vrot.slane %v2968_v42, 1 }
 0xd91   : > { %v2964_v37 = vadd.f32 %v2963_v57, %v2962_v41  ;;  %v2970_v8 = vadd.f32 %v2969_v60, %v2968_v42 }
 0xd93   : > { %v2971_v36 = vmul.f32 0.125, %v2964_v37  ;;  %v2972_v16 = vmul.f32 0.125, %v2970_v8  ;;  %v4269_v37 = vld [vmem:[%s7265_s1 + $0x5] ss:$8 sm:$0xf] }
 0xd95   : > { %v2973_v3 = vsub.f32 %v6583_v11, %v2971_v36  ;;  %v2974_v58 = vsub.f32 %v6587_v52, %v2972_v16 }
 0xd97   : > { %v2975_v25 = vmul.f32 %v2973_v3, %v2973_v3  ;;  %v2976_v49 = vmul.f32 %v2974_v58, %v2974_v58 }
 0xd99   : > { %v2977_v39 = vrot.slane %v2975_v25, 4  ;;  %v2983_v33 = vrot.slane %v2976_v49, 4 }
 0xd9b   : > { %v2978_v18 = vadd.f32 %v2977_v39, %v2975_v25  ;;  %v2984_v2 = vadd.f32 %v2983_v33, %v2976_v49 }
 0xd9d   : > { %v2979_v7 = vrot.slane %v2978_v18, 2  ;;  %v2985_v56 = vrot.slane %v2984_v2, 2 }
 0xd9f   : > { %v2980_v53 = vadd.f32 %v2979_v7, %v2978_v18  ;;  %v2986_v6 = vadd.f32 %v2985_v56, %v2984_v2 }
 0xda1   : > { %v2981_v13 = vrot.slane %v2980_v53, 1  ;;  %v2987_v35 = vrot.slane %v2986_v6, 1 }
 0xda3   : > { %v2982_v55 = vadd.f32 %v2981_v13, %v2980_v53  ;;  %v2988_v23 = vadd.f32 %v2987_v35, %v2986_v6  ;;  %v4268_v35 = vld [vmem:[%s7265_s1 + $0x1] ss:$8 sm:$0xf] }
 0xda5   : > { %v2989_v4 = vmul.f32 0.125, %v2982_v55  ;;  %v2990_v40 = vmul.f32 0.125, %v2988_v23  ;;  %v7519_v23 = vld [vmem:[#allocation10_spill] sm:$0xff] }
 0xda7   : > { %v2991_v20 = vadd.f32 1e-05, %v2989_v4  ;;  %v2992_v22 = vadd.f32 1e-05, %v2990_v40  ;;  %v3055_v4 = vrot.slane %v4268_v35, %v7519_v23 }
 0xda9   : > { %4884 = vrsqrt.f32 %v2991_v20 }
 0xdaa   : > { %4886 = vrsqrt.f32 %v2992_v22 }
 0xdb3   : > { %v4885_v43 = vpop.eup %4884 }
 0xdb4   : > { %v2995_v63 = vmul.f32 %v4885_v43, %v2973_v3  ;;  %v4887_v51 = vpop.eup %4886 }
 0xdb5   : > { %v2996_v31 = vmul.f32 %v4887_v51, %v2974_v58  ;;  %v7518_v58 = vld [vmem:[#allocation11_spill] sm:$0xff] }
 0xdb6   : > { %v3002_v15 = vmul.f32 %v3000_v10, %v2995_v63  ;;  %v3096_v25 = vrot.slane %v4269_v37, %v7518_v58  ;;  %v3059_v40 = vrot.slane %v4268_v35, %v7518_v58  ;;  %v7520_v63 = vld [vmem:[#allocation3_spill] sm:$0xff] }
 0xdb7   : > { %v3003_v29 = vmul.f32 %v3000_v10, %v2996_v31  ;;  %v3047_v51 = vrot.slane %v4268_v35, %v7520_v63  ;;  %v7521_v10 = vld [vmem:[#allocation5_spill] sm:$0xff] }
 0xdb8   : > { %v6595_v30 = vadd.f32 %v3007_v62, %v3002_v15  ;;  %v3051_v31 = vrot.slane %v4268_v35, %v7521_v10  ;;  %v3084_v15 = vrot.slane %v4269_v37, %v7520_v63 }
 0xdb9   : > { %v6597_v48 = vadd.f32 %v3007_v62, %v3003_v29 }
 0xdba   : > { %3011 = vrot.lane.b32.xlu1 %v6595_v30, %s4926_s14 }
 0xdbb   : > { %3013 = vrot.lane.b32.xlu0 %v6597_v48, %s4926_s14 }
 0xdbe   : > { %3021 = vrot.lane.b32.xlu1 %v6595_v30, %s4927_s15 }
 0xdbf   : > { %3023 = vrot.lane.b32.xlu0 %v6597_v48, %s4927_s15 }
 0xdc2   : > { %3031 = vrot.lane.b32.xlu1 %v7509_v1, %s4932_s21 }
 0xdc3   : > { %3068 = vrot.lane.b32.xlu0 %v7509_v1, %s4933_s22 }
 0xdc6   : > { %3035 = vrot.lane.b32.xlu1 %v6597_v48, %s4932_s21 }
 0xdc7   : > { %3033 = vrot.lane.b32.xlu0 %v6595_v30, %s4932_s21 }
 0xdca   : > { %3070 = vrot.lane.b32.xlu1 %v6595_v30, %s4933_s22 }
 0xdcb   : > { %3072 = vrot.lane.b32.xlu0 %v6597_v48, %s4933_s22 }
 0xdce   : > { %3105 = vrot.lane.b32.xlu1 %v7509_v1, %s4934_s23 }
 0xdcf   : > { %3141 = vrot.lane.b32.xlu0 %v7509_v1, %s4935_s24 }
 0xdd2   : > { %3109 = vrot.lane.b32.xlu1 %v6597_v48, %s4934_s23 }
 0xdd3   : > { %3107 = vrot.lane.b32.xlu0 %v6595_v30, %s4934_s23 }
 0xdd6   : > { %3143 = vrot.lane.b32.xlu1 %v6595_v30, %s4935_s24 }
 0xdd7   : > { %3145 = vrot.lane.b32.xlu0 %v6597_v48, %s4935_s24  ;;  %s4938_s24 = smov 48  }
 0xe2c   : > { %v3012_v0 = vpop.permute.xlu1 %3011 }
 0xe2d   : > { %v3017_v46 = vsel %vm542_vm1, %v7498_v9, %v3012_v0  ;;  %v3014_v28 = vpop.permute.xlu0 %3013 }
 0xe2e   : > { %v6623_v50 = vmul.f32 %v3017_v46, %v7499_v17  ;;  %v3015_v21 = vsel %vm542_vm1, %v3014_v28, %v7498_v9  ;;  %v3016_v41 = vsel %vm542_vm1, %v3012_v0, %v3014_v28 }
 0xe2f   : > { %v6631_v42 = vmul.f32 %v3015_v21, %v7502_v26  ;;  %v6634_v57 = vmul.f32 %v3016_v41, %v7501_v19  ;;  %v6698_v21 = vpack.i.bf16 %v6597_v48, %v6595_v30 }
 0xe30   : > { %v3022_v60 = vpop.permute.xlu1 %3021 }
 0xe31   : > { %v3027_v8 = vsel %vm579_vm2, %v7496_v47, %v3022_v60  ;;  %v4480_v9 = vpack.i.bf16 %v6595_v30, %v6631_v42  ;;  %v4475_v36 = vpack.i.bf16 %v6634_v57, %v6623_v50  ;;  %v3024_v16 = vpop.permute.xlu0 %3023 }
 0xe32   : > { %v6647_v3 = vmul.f32 %v3027_v8, %v7500_v54  ;;  %v3025_v49 = vsel %vm579_vm2, %v3024_v16, %v7496_v47  ;;  %v3026_v39 = vsel %vm579_vm2, %v3022_v60, %v3024_v16  ;;  %v4490_v47 = vpack.i.bf16 %v6595_v30, %v7509_v1 }
 0xe33   : > { %4481 = vrot.lane.b32.xlu0 %v4480_v9, %s4929_s20  ;;  %4476 = vrot.lane.b32.xlu1 %v4475_v36, %s4929_s20  ;;  %v6660_v7 = vmul.f32 %v3025_v49, %v7504_v32  ;;  %v6663_v56 = vmul.f32 %v3026_v39, %v7503_v38  ;;  %v3092_v8 = vrot.slane %v4269_v37, %v7519_v23 }
 0xe34   : > { %v4485_v33 = vpack.i.bf16 %v6647_v3, %v6597_v48  ;;  %v3032_v18 = vpop.permute.xlu1 %3031 }
 0xe35   : > { %v3069_v2 = vpop.permute.xlu0 %3068  ;;  %v4495_v6 = vpack.i.bf16 %v6660_v7, %v6663_v56  ;;  %v6700_v41 = vmul.f32 %v3047_v51, %v3032_v18 }
 0xe36   : > { %v6665_v53 = vmul.f32 %v3096_v25, %v3069_v2 }
 0xe37   : > { %4486 = vrot.lane.b32.xlu1 %v4485_v33, %s4929_s20 }
 0xe38   : > { %3425 = vrot.lane.b32.xlu0 %v6665_v53, %s4936_s30  ;;  %v3036_v13 = vpop.permute.xlu1 %3035 }
 0xe39   : > { %v3034_v55 = vpop.permute.xlu0 %3033  ;;  %v3038_v20 = vsel %vm3037_vm9, %v3036_v13, %v3032_v18 }
 0xe3a   : > { %v3039_v22 = vsel %vm3037_vm9, %v3034_v55, %v3036_v13  ;;  %v3040_v62 = vsel %vm3037_vm9, %v3032_v18, %v3034_v55  ;;  %v6690_v0 = vmul.f32 %v3059_v40, %v3038_v20  ;;  %v3115_v55 = vld [vmem:[%s7265_s1] ss:$8 sm:$0xf]  ;;  %v4270_v40 = vld [vmem:[%s7265_s1 + $0x6] ss:$8 sm:$0xf] }
 0xe3b   : > { %4491 = vrot.lane.b32.xlu1 %v4490_v47, %s4936_s30  ;;  %v6688_v29 = vmul.f32 %v3055_v4, %v3039_v22  ;;  %v6702_v60 = vmul.f32 %v3051_v31, %v3040_v62  ;;  %v3128_v20 = vrot.slane %v3115_v55, %v7519_v23  ;;  %v3132_v22 = vrot.slane %v3115_v55, %v7518_v58 }
 0xe3c   : > { %4496 = vrot.lane.b32.xlu0 %v4495_v6, %s4929_s20  ;;  %v3071_v43 = vpop.permute.xlu1 %3070  ;;  %v3124_v62 = vrot.slane %v3115_v55, %v7521_v10 }
 0xe3d   : > { %v3073_v46 = vpop.permute.xlu0 %3072  ;;  %v3077_v28 = vsel %vm3074_vm10, %v3069_v2, %v3071_v43 }
 0xe3e   : > { %v3075_v16 = vsel %vm3074_vm10, %v3073_v46, %v3069_v2  ;;  %v6710_v25 = vmul.f32 %v3084_v15, %v3077_v28  ;;  %v3076_v49 = vsel %vm3074_vm10, %v3071_v43, %v3073_v46  ;;  %v3120_v15 = vrot.slane %v3115_v55, %v7520_v63 }
 0xe3f   : > { %4501 = vrot.lane.b32.xlu1 %v4475_v36, %s4930_s27  ;;  %v4530_v36 = vpack.i.bf16 %v6690_v0, %v6688_v29  ;;  %v3157_v46 = vrot.slane %v4270_v40, %v7520_v63 }
 0xe40   : > { %4506 = vrot.lane.b32.xlu0 %v4480_v9, %s4930_s27  ;;  %v3088_v9 = vrot.slane %v4269_v37, %v7521_v10  ;;  %v3106_v39 = vpop.permute.xlu1 %3105  ;;  %v4525_v37 = vpack.i.bf16 %v6702_v60, %v6700_v41  ;;  %v4535_v2 = vpack.i.bf16 %v6710_v25, %v6597_v48  ;;  %v4560_v28 = vpack.i.bf16 %v6710_v25, %v7509_v1 }
 0xe41   : > { %v6764_v63 = vmul.f32 %v3120_v15, %v3106_v39 }
 0xe42   : > { %v6721_v18 = vmul.f32 %v3088_v9, %v3076_v49  ;;  %v3165_v49 = vrot.slane %v4270_v40, %v7519_v23 }
 0xe43   : > { %4511 = vrot.lane.b32.xlu1 %v4485_v33, %s4930_s27  ;;  %v6719_v33 = vmul.f32 %v3092_v8, %v3075_v16 }
 0xe44   : > { %4521 = vrot.lane.b32.xlu0 %v4495_v6, %s4930_s27  ;;  %v3142_v6 = vpop.permute.xlu0 %3141  ;;  %v3110_v35 = vpop.permute.xlu1 %3109 }
 0xe45   : > { %v4540_v13 = vpack.i.bf16 %v6719_v33, %v6721_v18  ;;  %v3112_v43 = vsel %vm3111_vm11, %v3110_v35, %v3106_v39 }
 0xe47   : > { %4516 = vrot.lane.b32.xlu1 %v6698_v21, %s4937_s18 }
 0xe48   : > { %4531 = vrot.lane.b32.xlu0 %v4530_v36, %s4936_s30  ;;  %v3108_v4 = vpop.permute.xlu0 %3107  ;;  %v3144_v31 = vpop.permute.xlu1 %3143 }
 0xe49   : > { %v3113_v51 = vsel %vm3111_vm11, %v3108_v4, %v3110_v35  ;;  %v3114_v8 = vsel %vm3111_vm11, %v3106_v39, %v3108_v4  ;;  %v3161_v35 = vrot.slane %v4270_v40, %v7521_v10 }
 0xe4a   : > { %v6755_v9 = vmul.f32 %v3128_v20, %v3113_v51 }
 0xe4b   : > { %4526 = vrot.lane.b32.xlu1 %v4525_v37, %s4936_s30 }
 0xe4c   : > { %4536 = vrot.lane.b32.xlu0 %v4535_v2, %s4936_s30  ;;  %v3146_v16 = vpop.permute.xlu0 %3145  ;;  %v6766_v2 = vmul.f32 %v3124_v62, %v3114_v8 }
 0xe4d   : > { %v3148_v4 = vsel %vm3147_vm12, %v3146_v16, %v3142_v6 }
 0xe4e   : > { %v4570_v23 = vpack.i.bf16 %v6766_v2, %v6764_v63  ;;  %v6781_v39 = vmul.f32 %v3165_v49, %v3148_v4 }
 0xe4f   : > { %4541 = vrot.lane.b32.xlu1 %v4540_v13, %s4936_s30  ;;  %s4298_s30 = sshll.u32 %s7529_s26, 4 }
 0xe50   : > { %3459 = vrot.lane.b32.xlu0 %v6665_v53, %s4937_s18 }
 0xe53   : > { %4546 = vrot.lane.b32.xlu1 %v4490_v47, %s4938_s24  ;;  %v6757_v47 = vmul.f32 %v3132_v22, %v3112_v43  ;;  %v3169_v22 = vrot.slane %v4270_v40, %v7518_v58  ;;  %v4278_v40 = vld [vmem:[%s7268_s4 + $0x20] sm:$0xff] }
 0xe54   : > { %4556 = vrot.lane.b32.xlu0 %v4530_v36, %s4937_s18  ;;  %v3150_v36 = vsel %vm3147_vm12, %v3142_v6, %v3144_v31 }
 0xe55   : > { %v4575_v55 = vpack.i.bf16 %v6757_v47, %v6755_v9  ;;  %v6773_v20 = vmul.f32 %v3157_v46, %v3150_v36  ;;  %v6792_v51 = vmul.f32 %v3169_v22, %v3142_v6  ;;  %v4272_v6 = vld [vmem:[%s7268_s4 + $0x18] sm:$0xff] }
 0xe57   : > { %4551 = vrot.lane.b32.xlu1 %v4525_v37, %s4937_s18  ;;  %v3149_v37 = vsel %vm3147_vm12, %v3144_v31, %v3146_v16  ;;  %v4580_v43 = vpack.i.bf16 %v6773_v20, %v6597_v48  ;;  %v4605_v58 = vpack.i.bf16 %v6773_v20, %v7509_v1 }
 0xe58   : > { %4561 = vrot.lane.b32.xlu0 %v4560_v28, %s4937_s18  ;;  %v6783_v10 = vmul.f32 %v3161_v35, %v3149_v37 }
 0xe5b   : > { %4566 = vrot.lane.b32.xlu1 %v4540_v13, %s4937_s18  ;;  %v4585_v13 = vpack.i.bf16 %v6781_v39, %v6783_v10  ;;  %s440_s18 = scalar_lea.vmem %s7277_s13, %s4298_s30 }
 0xe5c   : > { %4576 = vrot.lane.b32.xlu0 %v4575_v55, %s4938_s24 }
 0xe5f   : > { %4571 = vrot.lane.b32.xlu1 %v4570_v23, %s4938_s24 }
 0xe60   : > { %4581 = vrot.lane.b32.xlu0 %v4580_v43, %s4938_s24 }
 0xe63   : > { %4586 = vrot.lane.b32.xlu1 %v4585_v13, %s4938_s24 }
 0xe64   : > { %3659 = vrot.lane.b32.xlu0 %v6792_v51, %s4938_s24 }
 0xe67   : > { %4591 = vrot.lane.b32.xlu1 %v6698_v21, %s4939_s28  ;;  %v4284_v21 = vld [vmem:[%s7268_s4 + $0x28] sm:$0xff] }
 0xe68   : > { %4601 = vrot.lane.b32.xlu0 %v4575_v55, %s4939_s28 }
 0xe6b   : > { %4596 = vrot.lane.b32.xlu1 %v4570_v23, %s4939_s28 }
 0xe6c   : > { %4606 = vrot.lane.b32.xlu0 %v4605_v58, %s4939_s28 }
 0xe6f   : > { %4611 = vrot.lane.b32.xlu1 %v4585_v13, %s4939_s28 }
 0xe70   : > { %3693 = vrot.lane.b32.xlu0 %v6792_v51, %s4939_s28 }
 0xe73   : > { %3257 = vperm.xlu1 %4434, %v4272_v6  }
 0xe74   : > { %3487 = vperm.xlu0 %4323, %v4278_v40  }
 0xe77   : > { %3721 = vperm.xlu1 %4434, %v4284_v21  }
 0xea5   : > { %v4482_v31 = vpop.permute.xlu0 %4481  ;;  %v4477_v15 = vpop.permute.xlu1 %4476 }
 0xea6   : > { %v4484_v62 = vunpack.i.h.bf16 %v4482_v31  ;;  %v4483_v46 = vunpack.i.l.bf16 %v4482_v31  ;;  %v4478_v28 = vunpack.i.l.bf16 %v4477_v15  ;;  %v4479_v8 = vunpack.i.h.bf16 %v4477_v15 }
 0xea8   : > { %v3191_v16 = vsel %vm620_vm3, %v4483_v46, %v7505_v5  ;;  %v3190_v36 = vsel %vm620_vm3, %v7505_v5, %v4478_v28  ;;  %v3198_v49 = vsel %vm620_vm3, %v7506_v12, %v4484_v62  ;;  %v3189_v22 = vsel %vm620_vm3, %v4478_v28, %v4479_v8 }
 0xea9   : > { %v4487_v35 = vpop.permute.xlu1 %4486  ;;  %v3237_v55 = vpack.c.bf16 %v3198_v49, %v3190_v36  ;;  %v3236_v4 = vpack.c.bf16 %v7506_v12, %v3191_v16  ;;  %v3188_v5 = vsel %vm620_vm3, %v4479_v8, %v4483_v46 }
 0xeaa   : > { %v4488_v37 = vunpack.i.l.bf16 %v4487_v35  ;;  %v6820_v23 = vpop.permute.xlu0 %3425  ;;  %v4489_v43 = vunpack.i.h.bf16 %v4487_v35 }
 0xeab   : > { %3275 = vmatprep.subr.bf16.mxu0 %v3237_v55 }
 0xeac   : > { %v3197_v13 = vsel %vm620_vm3, %v4484_v62, %v4488_v37  ;;  %3276 = vmatpush1.bf16.msra.mxu0 %v3236_v4  ;;  %v3196_v58 = vsel %vm620_vm3, %v4488_v37, %v7506_v12  ;;  %v3208_v62 = vsel %vm620_vm3, %v7507_v44, %v4489_v43 }
 0xead   : > { %v3238_v6 = vpack.c.bf16 %v3197_v13, %v3189_v22  ;;  %v6831_v40 = vpop.permute.xlu1 %4491  ;;  %v3239_v21 = vpack.c.bf16 %v3196_v58, %v3188_v5  ;;  %v3240_v55 = vpack.c.bf16 %v7508_v24, %v3208_v62 }
 0xeae   : > { %v4497_v31 = vpop.permute.xlu0 %4496 }
 0xeaf   : > { %v4499_v15 = vunpack.i.h.bf16 %v4497_v31  ;;  %v4498_v28 = vunpack.i.l.bf16 %v4497_v31  ;;  %3316 = vmatprep.subr.bf16.mxu1 %v3239_v21 }
 0xeb0   : > { %3317 = vmatpush1.bf16.msra.mxu1 %v3238_v6  ;;  %v3246_v6 = vpack.c.bf16 %v6660_v7, %v6597_v48 }
 0xeb1   : > { %v3206_v46 = vsel %vm620_vm3, %v4498_v28, %v4499_v15  ;;  %v4502_v8 = vpop.permute.xlu1 %4501  ;;  %v3207_v12 = vsel %vm620_vm3, %v4489_v43, %v4498_v28  ;;  %v3205_v16 = vsel %vm620_vm3, %v4499_v15, %v7507_v44  ;;  %v3245_v43 = vpack.c.bf16 %v6663_v56, %v6595_v30 }
 0xeb2   : > { %v3242_v36 = vpack.c.bf16 %v6634_v57, %v3206_v46  ;;  %v4507_v49 = vpop.permute.xlu0 %4506  ;;  %v3241_v35 = vpack.c.bf16 %v6623_v50, %v3207_v12  ;;  %v4503_v4 = vunpack.i.l.bf16 %v4502_v8  ;;  %v3243_v22 = vpack.c.bf16 %v6631_v42, %v3205_v16 }
 0xeb3   : > { %v4508_v37 = vunpack.i.l.bf16 %v4507_v49  ;;  %v4504_v13 = vunpack.i.h.bf16 %v4502_v8  ;;  %v4509_v5 = vunpack.i.h.bf16 %v4507_v49  ;;  %v3244_v57 = vpack.c.bf16 %v6647_v3, %v7509_v1 }
 0xeb4   : > { %3277 = vmatprep.subr.bf16.mxu0 %v3241_v35  ;;  %3318 = vmatprep.subr.bf16.mxu1 %v3243_v22  ;;  %v3217_v56 = vsel %vm654_vm6, %v7511_v27, %v4503_v4  ;;  %v4494_v35 = vunpack.i.h.bf16 %v6831_v40 }
 0xeb5   : > { %3278 = vmatpush1.bf16.msra.mxu0 %v3240_v55  ;;  %v4512_v44 = vpop.permute.xlu1 %4511  ;;  %3319 = vmatpush1.bf16.msra.mxu1 %v3242_v36  ;;  %v3218_v42 = vsel %vm654_vm6, %v4508_v37, %v7511_v27  ;;  %v3225_v3 = vsel %vm654_vm6, %v7510_v45, %v4509_v5  ;;  %v3216_v28 = vsel %vm654_vm6, %v4503_v4, %v4504_v13  ;;  %v4493_v55 = vunpack.i.l.bf16 %v6831_v40 }
 0xeb6   : > { %v4514_v50 = vunpack.i.h.bf16 %v4512_v44  ;;  %v4513_v58 = vunpack.i.l.bf16 %v4512_v44  ;;  %v4522_v24 = vpop.permute.xlu0 %4521  ;;  %3279 = vmatprep.subr.bf16.mxu0 %v3245_v43  ;;  %3320 = vmatprep.subr.bf16.mxu1 %v7512_v14  ;;  %v3215_v27 = vsel %vm654_vm6, %v4504_v13, %v4508_v37  ;;  %v3250_v46 = vpack.c.bf16 %v7510_v45, %v3218_v42 }
 0xeb7   : > { %v4524_v21 = vunpack.i.h.bf16 %v4522_v24  ;;  %v4523_v31 = vunpack.i.l.bf16 %v4522_v24  ;;  %v3247_v4 = vpack.c.bf16 %v3225_v3, %v3217_v56 }
 0xeb8   : > { %v3223_v15 = vsel %vm654_vm6, %v4513_v58, %v7510_v45  ;;  %v3224_v7 = vsel %vm654_vm6, %v4509_v5, %v4513_v58  ;;  %v3235_v12 = vsel %vm654_vm6, %v7513_v61, %v4514_v50 }
 0xeb9   : > { %v3233_v14 = vsel %vm654_vm6, %v4523_v31, %v4524_v21  ;;  %3280 = vmatpush1.bf16.msra.mxu0 %v3244_v57  ;;  %v6874_v62 = vpop.permute.xlu1 %4516  ;;  %v3248_v8 = vpack.c.bf16 %v3224_v7, %v3216_v28  ;;  %v3249_v16 = vpack.c.bf16 %v3223_v15, %v3215_v27  ;;  %3321 = vmatpush1.bf16.msra.mxu1 %v3246_v6  ;;  %v4271_v27 = vld [vmem:[%s7267_s3 + $0xc] sm:$0xf] }
 0xeba   : > { %v4532_v36 = vpop.permute.xlu0 %4531  ;;  %v3234_v49 = vsel %vm654_vm6, %v4514_v50, %v4523_v31  ;;  %3322 = vmatprep.subr.bf16.mxu1 %v3250_v46  ;;  %v3232_v45 = vsel %vm654_vm6, %v4524_v21, %v7513_v61  ;;  %v3252_v37 = vpack.c.bf16 %v3233_v14, %v3233_v14  ;;  %v3254_v13 = vpack.c.bf16 %v3235_v12, %v3235_v12 }
 0xebb   : > { %3281 = vmatprep.subr.bf16.mxu0 %v3248_v8  ;;  %v3251_v22 = vpack.c.bf16 %v3234_v49, %v3234_v49  ;;  %v3253_v43 = vpack.c.bf16 %v3232_v45, %v3232_v45  ;;  %v4534_v44 = vunpack.i.h.bf16 %v4532_v36  ;;  %v4533_v57 = vunpack.i.l.bf16 %v4532_v36 }
 0xebc   : > { %v3418_v61 = vsel %vm3405_vm13, %v4493_v55, %v4494_v35 }
 0xebd   : > { %3282 = vmatpush1.bf16.msra.mxu0 %v3247_v4  ;;  %v4527_v5 = vpop.permute.xlu1 %4526  ;;  %3323 = vmatpush1.bf16.msra.mxu1 %v3249_v16  ;;  %v3264_v21 = vsel %vm451_vm0, %v3251_v22, 0  ;;  %v3270_v28 = vsel %vm451_vm0, %v3253_v43, 0  ;;  %v3406_v49 = vsel %vm3405_vm13, %v4533_v57, %v4534_v44 }
 0xebe   : > { %v4529_v50 = vunpack.i.h.bf16 %v4527_v5  ;;  %v4528_v40 = vunpack.i.l.bf16 %v4527_v5  ;;  %v4537_v58 = vpop.permute.xlu0 %4536  ;;  %4273 = vmatprep.subr.msk.bf16.mxu0 %vm451_vm0, %v3252_v37  ;;  %4275 = vmatprep.subr.msk.bf16.mxu1 %vm451_vm0, %v3254_v13 }
 0xebf   : > { %v4539_v24 = vunpack.i.h.bf16 %v4537_v58  ;;  %v4538_v42 = vunpack.i.l.bf16 %v4537_v58 }
 0xec0   : > { %v3407_v6 = vsel %vm3405_vm13, %v4529_v50, %v4533_v57  ;;  %v3409_v56 = vsel %vm3405_vm13, %v4534_v44, %v4528_v40  ;;  %v3408_v31 = vsel %vm3405_vm13, %v4528_v40, %v4529_v50  ;;  %v4519_v44 = vunpack.i.h.bf16 %v6874_v62 }
 0xec1   : > { %v3465_v3 = vpack.c.bf16 %v4493_v55, %v3409_v56  ;;  %v3417_v15 = vsel %vm3405_vm13, %v4494_v35, %v4538_v42  ;;  %3284 = vmatpush1.bf16.msra.mxu0 %v3264_v21  ;;  %v4542_v7 = vpop.permute.xlu1 %4541  ;;  %v3466_v14 = vpack.c.bf16 %v3418_v61, %v3408_v31  ;;  %3325 = vmatpush1.bf16.msra.mxu1 %v3270_v28  ;;  %v4518_v57 = vunpack.i.l.bf16 %v6874_v62 }
 0xec2   : > { %v4544_v46 = vunpack.i.h.bf16 %v4542_v7  ;;  %v4543_v8 = vunpack.i.l.bf16 %v4542_v7  ;;  %v6905_v12 = vpop.permute.xlu0 %3459  ;;  %v3430_v16 = vsel %vm3405_vm13, %v6820_v23, %v4539_v24  ;;  %v3467_v36 = vpack.c.bf16 %v3417_v15, %v3407_v6 }
 0xec3   : > { %3505 = vmatprep.subr.bf16.mxu0 %v3466_v14  ;;  %v3416_v35 = vsel %vm3405_vm13, %v4538_v42, %v4493_v55  ;;  %v3469_v50 = vpack.c.bf16 %v6700_v41, %v3430_v16  ;;  %v3476_v62 = vpack.c.bf16 %v6665_v53, %v7509_v1  ;;  %v3473_v41 = vpack.c.bf16 %v6710_v25, %v7509_v1 }
 0xec4   : > { %v3428_v4 = vsel %vm3405_vm13, %v4543_v8, %v4544_v46  ;;  %4274 = vmatmul.mubr.msk.bf16.vlgmr.msra.gmra.mrb[24].mxu0 %vm705_vm7, %v4271_v27  ;;  %v3468_v45 = vpack.c.bf16 %v3416_v35, %v3406_v49  ;;  %v3429_v37 = vsel %vm3405_vm13, %v4539_v24, %v4543_v8  ;;  %v3427_v22 = vsel %vm3405_vm13, %v4544_v46, %v6820_v23 }
 0xec5   : > { %4276 = vmatmul.mubr.msk.bf16.vlgmr.msra.gmra.mrb[84].mxu1 %vm705_vm7, %v4271_v27  ;;  %3506 = vmatpush1.bf16.msra.mxu0 %v3465_v3  ;;  %v6923_v13 = vpop.permute.xlu1 %4546  ;;  %v3470_v55 = vpack.c.bf16 %v6702_v60, %v3429_v37  ;;  %v3472_v5 = vpack.c.bf16 %v6690_v0, %v3427_v22  ;;  %v3471_v23 = vpack.c.bf16 %v6688_v29, %v3428_v4 }
 0xec6   : > { %3546 = vmatprep.subr.bf16.mxu1 %v3468_v45  ;;  %v4557_v43 = vpop.permute.xlu0 %4556  ;;  %3537 = vmatprep.mubr.bf16.mxu0 %v7495_v59  ;;  %v3474_v0 = vpack.c.bf16 %v6721_v18, %v6595_v30  ;;  %v3475_v29 = vpack.c.bf16 %v6719_v33, %v6597_v48  ;;  %v4549_v6 = vunpack.i.h.bf16 %v6923_v13  ;;  %v3451_v21 = vsel %vm3439_vm14, %v4518_v57, %v4519_v44 }
 0xec7   : > { %3547 = vmatpush1.bf16.msra.mxu1 %v3467_v36  ;;  %3507 = vmatprep.subr.bf16.mxu0 %v3470_v55  ;;  %v4559_v40 = vunpack.i.h.bf16 %v4557_v43  ;;  %v4558_v60 = vunpack.i.l.bf16 %v4557_v43  ;;  %v4548_v14 = vunpack.i.l.bf16 %v6923_v13 }
 0xec8   : > { %3548 = vmatprep.subr.bf16.mxu1 %v3472_v5  ;;  %3578 = vmatprep.mubr.bf16.mxu1 %v7495_v59 }
 0xec9   : > { %3508 = vmatpush1.bf16.msra.mxu0 %v3469_v50  ;;  %v4552_v58 = vpop.permute.xlu1 %4551  ;;  %v3440_v53 = vsel %vm3439_vm14, %v4558_v60, %v4559_v40 }
 0xeca   : > { %v4554_v24 = vunpack.i.h.bf16 %v4552_v58  ;;  %v4553_v42 = vunpack.i.l.bf16 %v4552_v58  ;;  %v4562_v61 = vpop.permute.xlu0 %4561  ;;  %3509 = vmatprep.subr.bf16.mxu0 %v3474_v0 }
 0xecb   : > { %3549 = vmatpush1.bf16.msra.mxu1 %v3471_v23  ;;  %v4564_v18 = vunpack.i.h.bf16 %v4562_v61  ;;  %v4563_v56 = vunpack.i.l.bf16 %v4562_v61 }
 0xecc   : > { %v3442_v33 = vsel %vm3439_vm14, %v4553_v42, %v4554_v24  ;;  %3550 = vmatprep.subr.bf16.mxu1 %v3476_v62  ;;  %v3441_v25 = vsel %vm3439_vm14, %v4554_v24, %v4558_v60  ;;  %v3443_v31 = vsel %vm3439_vm14, %v4559_v40, %v4553_v42 }
 0xecd   : > { %v3464_v3 = vsel %vm3439_vm14, %v6905_v12, %v4564_v18  ;;  %v3450_v15 = vsel %vm3439_vm14, %v4519_v44, %v4563_v56  ;;  %v3452_v28 = vsel %vm3439_vm14, %v4563_v56, %v4518_v57  ;;  %3510 = vmatpush1.bf16.msra.mxu0 %v3473_v41  ;;  %v4567_v7 = vpop.permute.xlu1 %4566  ;;  %v3478_v27 = vpack.c.bf16 %v3451_v21, %v3441_v25 }
 0xece   : > { %v3477_v46 = vpack.c.bf16 %v3452_v28, %v3442_v33  ;;  %v3479_v8 = vpack.c.bf16 %v3450_v15, %v3440_v53  ;;  %v4569_v16 = vunpack.i.h.bf16 %v4567_v7  ;;  %v4577_v36 = vpop.permute.xlu0 %4576  ;;  %v4568_v49 = vunpack.i.l.bf16 %v4567_v7 }
 0xecf   : > { %3551 = vmatpush1.bf16.msra.mxu1 %v3475_v29  ;;  %v4579_v35 = vunpack.i.h.bf16 %v4577_v36  ;;  %v4578_v4 = vunpack.i.l.bf16 %v4577_v36  ;;  %3511 = vmatprep.subr.bf16.mxu0 %v3478_v27  ;;  %v3480_v45 = vpack.c.bf16 %v4563_v56, %v3443_v31  ;;  %v3484_v37 = vpack.c.bf16 %v3464_v3, %v3464_v3  ;;  %v4277_v56 = vld [vmem:[%s7267_s3 + $0x10] sm:$0xf] }
 0xed0   : > { %v3461_v22 = vsel %vm3439_vm14, %v4569_v16, %v6905_v12  ;;  %v3462_v13 = vsel %vm3439_vm14, %v4568_v49, %v4569_v16  ;;  %v3463_v5 = vsel %vm3439_vm14, %v4564_v18, %v4568_v49  ;;  %v3652_v12 = vsel %vm3639_vm15, %v4548_v14, %v4549_v6 }
 0xed1   : > { %3552 = vmatprep.subr.bf16.mxu1 %v3480_v45  ;;  %3512 = vmatpush1.bf16.msra.mxu0 %v3477_v46  ;;  %v4572_v55 = vpop.permute.xlu1 %4571  ;;  %v3483_v43 = vpack.c.bf16 %v3461_v22, %v3461_v22  ;;  %v3482_v44 = vpack.c.bf16 %v3462_v13, %v3462_v13  ;;  %v3481_v40 = vpack.c.bf16 %v3463_v5, %v3463_v5 }
 0xed2   : > { %v4574_v57 = vunpack.i.h.bf16 %v4572_v55  ;;  %v4573_v50 = vunpack.i.l.bf16 %v4572_v55  ;;  %v4582_v23 = vpop.permute.xlu0 %4581  ;;  %v3640_v58 = vsel %vm3639_vm15, %v4578_v4, %v4579_v35  ;;  %v3709_v5 = vpack.c.bf16 %v6781_v39, %v6597_v48 }
 0xed3   : > { %3553 = vmatpush1.bf16.msra.mxu1 %v3479_v8  ;;  %v4583_v60 = vunpack.i.l.bf16 %v4582_v23  ;;  %v3500_v0 = vsel %vm451_vm0, %v3483_v43, 0  ;;  %4279 = vmatprep.subr.msk.bf16.mxu0 %vm451_vm0, %v3482_v44  ;;  %v3494_v41 = vsel %vm451_vm0, %v3481_v40, 0  ;;  %v4584_v33 = vunpack.i.h.bf16 %v4582_v23 }
 0xed4   : > { %v3641_v62 = vsel %vm3639_vm15, %v4574_v57, %v4578_v4  ;;  %v3643_v29 = vsel %vm3639_vm15, %v4579_v35, %v4573_v50  ;;  %4281 = vmatprep.subr.msk.bf16.mxu1 %vm451_vm0, %v3484_v37  ;;  %v3642_v24 = vsel %vm3639_vm15, %v4573_v50, %v4574_v57  ;;  %v3707_v43 = vpack.c.bf16 %v6773_v20, %v7509_v1 }
 0xed5   : > { %v3699_v42 = vpack.c.bf16 %v4548_v14, %v3643_v29  ;;  %v3651_v61 = vsel %vm3639_vm15, %v4549_v6, %v4583_v60  ;;  %3514 = vmatpush1.bf16.msra.mxu0 %v3494_v41  ;;  %v4587_v18 = vpop.permute.xlu1 %4586  ;;  %v3700_v21 = vpack.c.bf16 %v3652_v12, %v3642_v24  ;;  %v3650_v53 = vsel %vm3639_vm15, %v4583_v60, %v4548_v14 }
 0xed6   : > { %v4589_v25 = vunpack.i.h.bf16 %v4587_v18  ;;  %v4588_v31 = vunpack.i.l.bf16 %v4587_v18  ;;  %v3660_v3 = vpop.permute.xlu0 %3659  ;;  %v3702_v15 = vpack.c.bf16 %v3650_v53, %v3640_v58  ;;  %v3701_v28 = vpack.c.bf16 %v3651_v61, %v3641_v62 }
 0xed7   : > { %3555 = vmatpush1.bf16.msra.mxu1 %v3500_v0  ;;  %3739 = vmatprep.subr.bf16.mxu0 %v3700_v21  ;;  %v3664_v27 = vsel %vm3639_vm15, %v3660_v3, %v4584_v33 }
 0xed8   : > { %v3662_v6 = vsel %vm3639_vm15, %v4588_v31, %v4589_v25  ;;  %v3661_v7 = vsel %vm3639_vm15, %v4589_v25, %v3660_v3  ;;  %4280 = vmatmul.mubr.msk.bf16.vlgmr.msra.gmra.mrb[28].mxu0 %vm705_vm7, %v4277_v56  ;;  %3780 = vmatprep.subr.bf16.mxu1 %v3702_v15  ;;  %v3663_v8 = vsel %vm3639_vm15, %v4584_v33, %v4588_v31  ;;  %v4283_v25 = vld [vmem:[%s7267_s3 + $0x14] sm:$0xf] }
 0xed9   : > { %v3706_v14 = vpack.c.bf16 %v6757_v47, %v3661_v7  ;;  %3740 = vmatpush1.bf16.msra.mxu0 %v3699_v42  ;;  %v4592_v46 = vpop.permute.xlu1 %4591  ;;  %3771 = vmatprep.mubr.bf16.mxu0 %v7495_v59  ;;  %v3704_v36 = vpack.c.bf16 %v6766_v2, %v3663_v8  ;;  %v3705_v49 = vpack.c.bf16 %v6755_v9, %v3662_v6 }
 0xeda   : > { %4282 = vmatmul.mubr.msk.bf16.vlgmr.msra.gmra.mrb[88].mxu1 %vm705_vm7, %v4277_v56  ;;  %v4602_v16 = vpop.permute.xlu0 %4601  ;;  %v3703_v35 = vpack.c.bf16 %v6764_v63, %v3664_v27  ;;  %v4594_v4 = vunpack.i.h.bf16 %v4592_v46  ;;  %v4593_v45 = vunpack.i.l.bf16 %v4592_v46  ;;  %v3708_v47 = vpack.c.bf16 %v6783_v10, %v6595_v30 }
 0xedb   : > { %3781 = vmatpush1.bf16.msra.mxu1 %v3701_v28  ;;  %3812 = vmatprep.mubr.bf16.mxu1 %v7495_v59  ;;  %v3710_v2 = vpack.c.bf16 %v6792_v51, %v7509_v1  ;;  %v4604_v9 = vunpack.i.h.bf16 %v4602_v16  ;;  %v4603_v22 = vunpack.i.l.bf16 %v4602_v16 }
 0xedc   : > { %3741 = vmatprep.subr.bf16.mxu0 %v3704_v36  ;;  %3782 = vmatprep.subr.bf16.mxu1 %v3706_v14  ;;  %v3685_v30 = vsel %vm3673_vm4, %v4593_v45, %v4594_v4 }
 0xedd   : > { %3742 = vmatpush1.bf16.msra.mxu0 %v3703_v35  ;;  %v4597_v37 = vpop.permute.xlu1 %4596  ;;  %v3674_v40 = vsel %vm3673_vm4, %v4603_v22, %v4604_v9 }
 0xede   : > { %v4599_v63 = vunpack.i.h.bf16 %v4597_v37  ;;  %v4598_v13 = vunpack.i.l.bf16 %v4597_v37  ;;  %v4607_v55 = vpop.permute.xlu0 %4606  ;;  %3743 = vmatprep.subr.bf16.mxu0 %v3708_v47 }
 0xedf   : > { %3783 = vmatpush1.bf16.msra.mxu1 %v3705_v49  ;;  %v4608_v44 = vunpack.i.l.bf16 %v4607_v55  ;;  %v4609_v51 = vunpack.i.h.bf16 %v4607_v55 }
 0xee0   : > { %v3676_v10 = vsel %vm3673_vm4, %v4598_v13, %v4599_v63  ;;  %3784 = vmatprep.subr.bf16.mxu1 %v3710_v2  ;;  %v3675_v57 = vsel %vm3673_vm4, %v4599_v63, %v4603_v22  ;;  %v3677_v50 = vsel %vm3673_vm4, %v4604_v9, %v4598_v13 }
 0xee1   : > { %v3684_v48 = vsel %vm3673_vm4, %v4594_v4, %v4608_v44  ;;  %v3686_v1 = vsel %vm3673_vm4, %v4608_v44, %v4593_v45  ;;  %3744 = vmatpush1.bf16.msra.mxu0 %v3707_v43  ;;  %v4612_v20 = vpop.permute.xlu1 %4611  ;;  %v3712_v39 = vpack.c.bf16 %v3685_v30, %v3675_v57  ;;  %v3714_v23 = vpack.c.bf16 %v4608_v44, %v3677_v50 }
 0xee2   : > { %v3711_v60 = vpack.c.bf16 %v3686_v1, %v3676_v10  ;;  %v4614_v0 = vunpack.i.h.bf16 %v4612_v20  ;;  %v4613_v12 = vunpack.i.l.bf16 %v4612_v20  ;;  %v3694_v58 = vpop.permute.xlu0 %3693  ;;  %v3713_v62 = vpack.c.bf16 %v3684_v48, %v3674_v40 }
 0xee3   : > { %3785 = vmatpush1.bf16.msra.mxu1 %v3709_v5  ;;  %v3698_v29 = vsel %vm3673_vm4, %v3694_v58, %v4609_v51  ;;  %3745 = vmatprep.subr.bf16.mxu0 %v3712_v39 }
 0xee4   : > { %v3696_v41 = vsel %vm3673_vm4, %v4613_v12, %v4614_v0  ;;  %v3695_v24 = vsel %vm3673_vm4, %v4614_v0, %v3694_v58  ;;  %v3718_v42 = vpack.c.bf16 %v3698_v29, %v3698_v29  ;;  %3786 = vmatprep.subr.bf16.mxu1 %v3714_v23  ;;  %v3697_v61 = vsel %vm3673_vm4, %v4609_v51, %v4613_v12 }
 0xee5   : > { %v3716_v18 = vpack.c.bf16 %v3696_v41, %v3696_v41  ;;  %v3717_v56 = vpack.c.bf16 %v3695_v24, %v3695_v24  ;;  %3746 = vmatpush1.bf16.msra.mxu0 %v3711_v60  ;;  %v3715_v21 = vpack.c.bf16 %v3697_v61, %v3697_v61 }
 0xee7   : > { %3787 = vmatpush1.bf16.msra.mxu1 %v3713_v62  ;;  %4285 = vmatprep.subr.msk.bf16.mxu0 %vm451_vm0, %v3716_v18  ;;  %v3728_v53 = vsel %vm451_vm0, %v3715_v21, 0  ;;  %v3734_v33 = vsel %vm451_vm0, %v3717_v56, 0 }
 0xee8   : > { %4287 = vmatprep.subr.msk.bf16.mxu1 %vm451_vm0, %v3718_v42 }
 0xee9   : > { %3748 = vmatpush1.bf16.msra.mxu0 %v3728_v53 }
 0xeeb   : > { %3789 = vmatpush1.bf16.msra.mxu1 %v3734_v33 }
 0xeec   : > { %4286 = vmatmul.mubr.msk.bf16.vlgmr.msra.gmra.mrb[32].mxu0 %vm705_vm7, %v4283_v25 }
 0xeed   : > { %4045 = vmatprep.mubr.bf16.mxu0 %v7495_v59 }
 0xeee   : > { %4288 = vmatmul.mubr.msk.bf16.vlgmr.msra.gmra.mrb[92].mxu1 %vm705_vm7, %v4283_v25 }
 0xeef   : > { %4085 = vmatprep.mubr.bf16.mxu1 %v7495_v59 }
 0xef2   : > { %v3258_v31 = vpop.permute.xlu1 %3257 }
 0xef3   : > { %v3488_v5 = vpop.permute.xlu0 %3487 }
 0xf97   : > { %v3309_v3 = vpop.f32.mrb[24].mxu0 }
 0xf98   : > { %v3350_v15 = vpop.f32.mrb[84].mxu1  ;;  %v3311_v28 = vpop.f32.mrb[25].mxu0  ;;  %v7048_v6 = vadd.f32 %v3309_v3, %v3258_v31 }
 0xf99   : > { %v3352_v7 = vpop.f32.mrb[85].mxu1  ;;  %v3313_v27 = vpop.f32.mrb[26].mxu0  ;;  %v7050_v8 = vadd.f32 %v3350_v15, %v3258_v31  ;;  %v7053_v49 = vadd.f32 %v3311_v28, %v3258_v31 }
 0xf9a   : > { %v3354_v14 = vpop.f32.mrb[86].mxu1  ;;  %v3314_v46 = vpop.f32.mrb[27].mxu0  ;;  %v3361_v36 = vmul.f32 0.044715, %v7048_v6  ;;  %v7056_v59 = vadd.f32 %v3352_v7, %v3258_v31 }
 0xf9b   : > { %v3355_v16 = vpop.f32.mrb[87].mxu1  ;;  %v3363_v35 = vmul.f32 0.044715, %v7050_v8  ;;  %v3362_v45 = vmul.f32 0.044715, %v7053_v49 }
 0xf9c   : > { %v3365_v4 = vmul.f32 %v3361_v36, %v7048_v6  ;;  %v3364_v37 = vmul.f32 0.044715, %v7056_v59 }
 0xf9d   : > { %v3367_v47 = vmul.f32 %v3363_v35, %v7050_v8  ;;  %v3366_v9 = vmul.f32 %v3362_v45, %v7053_v49 }
 0xf9e   : > { %v3369_v2 = vmul.f32 %v3365_v4, %v7048_v6  ;;  %v3368_v63 = vmul.f32 %v3364_v37, %v7056_v59 }
 0xf9f   : > { %v3371_v22 = vmul.f32 %v3367_v47, %v7050_v8  ;;  %v3370_v55 = vmul.f32 %v3366_v9, %v7053_v49  ;;  %v3357_v9 = vmul.f32 0.5, %v7048_v6 }
 0xfa0   : > { %v3373_v13 = vadd.f32 %v3369_v2, %v7048_v6  ;;  %v3372_v44 = vmul.f32 %v3368_v63, %v7056_v59  ;;  %v3722_v2 = vpop.permute.xlu1 %3721 }
 0xfa1   : > { %v3375_v43 = vadd.f32 %v3371_v22, %v7050_v8  ;;  %v3374_v50 = vadd.f32 %v3370_v55, %v7053_v49  ;;  %v3359_v22 = vmul.f32 0.5, %v7050_v8  ;;  %v3358_v55 = vmul.f32 0.5, %v7053_v49 }
 0xfa2   : > { %v3377_v57 = vmul.f32 0.7978846, %v3373_v13  ;;  %v3376_v12 = vadd.f32 %v3372_v44, %v7056_v59 }
 0xfa3   : > { %v3379_v0 = vmul.f32 0.7978846, %v3375_v43  ;;  %v3378_v61 = vmul.f32 0.7978846, %v3374_v50 }
 0xfa4   : > { %4888 = vtanh.f32 %v3377_v57  ;;  %v3380_v53 = vmul.f32 0.7978846, %v3376_v12 }
 0xfa5   : > { %4890 = vtanh.f32 %v3379_v0 }
 0xfa6   : > { %4892 = vtanh.f32 %v3378_v61 }
 0xfa7   : > { %4894 = vtanh.f32 %v3380_v53 }
 0xfab   : > { %v3539_v30 = vpop.f32.mrb[28].mxu0 }
 0xfac   : > { %v3540_v10 = vadd.f32 %v3539_v30, %v3488_v5  ;;  %v3541_v51 = vpop.f32.mrb[29].mxu0 }
 0xfad   : > { %v3580_v48 = vpop.f32.mrb[88].mxu1  ;;  %v3542_v1 = vadd.f32 %v3541_v51, %v3488_v5  ;;  %v3543_v20 = vpop.f32.mrb[30].mxu0 }
 0xfae   : > { %v3591_v39 = vmul.f32 0.044715, %v3540_v10  ;;  %v3581_v23 = vadd.f32 %v3580_v48, %v3488_v5  ;;  %v3582_v40 = vpop.f32.mrb[89].mxu1  ;;  %v3544_v60 = vpop.f32.mrb[31].mxu0  ;;  %v3587_v51 = vmul.f32 0.5, %v3540_v10 }
 0xfaf   : > { %v3592_v58 = vmul.f32 0.044715, %v3542_v1  ;;  %v3583_v62 = vadd.f32 %v3582_v40, %v3488_v5  ;;  %v3584_v29 = vpop.f32.mrb[90].mxu1  ;;  %v4889_v35 = vpop.eup %4888  ;;  %v3360_v5 = vmul.f32 0.5, %v7056_v59  ;;  %v3588_v50 = vmul.f32 0.5, %v3542_v1 }
 0xfb0   : > { %v3595_v41 = vmul.f32 %v3591_v39, %v3540_v10  ;;  %v3593_v24 = vmul.f32 0.044715, %v3581_v23  ;;  %v3585_v42 = vpop.f32.mrb[91].mxu1  ;;  %v4891_v45 = vpop.eup %4890  ;;  %v3385_v47 = vadd.f32 1.0, %v4889_v35  ;;  %v3589_v57 = vmul.f32 0.5, %v3581_v23 }
 0xfb1   : > { %v3596_v18 = vmul.f32 %v3592_v58, %v3542_v1  ;;  %v3594_v25 = vmul.f32 0.044715, %v3583_v62  ;;  %v4893_v37 = vpop.eup %4892  ;;  %v3387_v13 = vadd.f32 1.0, %v4891_v45  ;;  %v3590_v29 = vmul.f32 0.5, %v3583_v62 }
 0xfb2   : > { %v3599_v56 = vmul.f32 %v3595_v41, %v3540_v10  ;;  %v3597_v21 = vmul.f32 %v3593_v24, %v3581_v23  ;;  %v4895_v30 = vpop.eup %4894  ;;  %v3389_v6 = vmul.f32 %v3385_v47, %v3357_v9  ;;  %v3386_v60 = vadd.f32 1.0, %v4893_v37 }
 0xfb3   : > { %v3600_v33 = vmul.f32 %v3596_v18, %v3542_v1  ;;  %v3598_v28 = vmul.f32 %v3594_v25, %v3583_v62 }
 0xfb4   : > { %v3603_v31 = vadd.f32 %v3599_v56, %v3540_v10  ;;  %v3601_v3 = vmul.f32 %v3597_v21, %v3581_v23  ;;  %v3388_v21 = vadd.f32 1.0, %v4895_v30 }
 0xfb5   : > { %v3604_v15 = vadd.f32 %v3600_v33, %v3542_v1  ;;  %v3602_v46 = vmul.f32 %v3598_v28, %v3583_v62 }
 0xfb6   : > { %v3607_v7 = vmul.f32 0.7978846, %v3603_v31  ;;  %v3605_v27 = vadd.f32 %v3601_v3, %v3581_v23  ;;  %v3391_v23 = vmul.f32 %v3387_v13, %v3359_v22  ;;  %v3392_v45 = vmul.f32 %v3388_v21, %v3360_v5 }
 0xfb7   : > { %v3608_v14 = vmul.f32 0.7978846, %v3604_v15  ;;  %v3606_v36 = vadd.f32 %v3602_v46, %v3583_v62 }
 0xfb8   : > { %4896 = vtanh.f32 %v3607_v7  ;;  %v3609_v16 = vmul.f32 0.7978846, %v3605_v27  ;;  %v3390_v7 = vmul.f32 %v3386_v60, %v3358_v55 }
 0xfb9   : > { %4898 = vtanh.f32 %v3608_v14  ;;  %v3610_v4 = vmul.f32 0.7978846, %v3606_v36 }
 0xfba   : > { %4900 = vtanh.f32 %v3609_v16 }
 0xfbb   : > { %4902 = vtanh.f32 %v3610_v4 }
 0xfbf   : > { %v3773_v63 = vpop.f32.mrb[32].mxu0 }
 0xfc0   : > { %v7076_v43 = vadd.f32 %v3773_v63, %v3722_v2  ;;  %v3775_v44 = vpop.f32.mrb[33].mxu0 }
 0xfc1   : > { %v3814_v48 = vpop.f32.mrb[92].mxu1  ;;  %v3776_v20 = vadd.f32 %v3775_v44, %v3722_v2  ;;  %v3777_v39 = vpop.f32.mrb[34].mxu0 }
 0xfc2   : > { %v4897_v40 = vpop.eup %4896  ;;  %v3825_v8 = vmul.f32 0.044715, %v7076_v43  ;;  %v3815_v0 = vadd.f32 %v3814_v48, %v3722_v2  ;;  %v3816_v12 = vpop.f32.mrb[93].mxu1  ;;  %v3821_v5 = vmul.f32 0.5, %v7076_v43 }
 0xfc3   : > { %v3778_v49 = vpop.f32.mrb[35].mxu0  ;;  %v4899_v58 = vpop.eup %4898  ;;  %v3615_v59 = vadd.f32 1.0, %v4897_v40  ;;  %v3826_v41 = vmul.f32 0.044715, %v3776_v20  ;;  %v3817_v24 = vadd.f32 %v3816_v12, %v3722_v2 }
 0xfc4   : > { %v3818_v42 = vpop.f32.mrb[94].mxu1  ;;  %v4901_v10 = vpop.eup %4900  ;;  %v3616_v1 = vadd.f32 1.0, %v4899_v58  ;;  %v3829_v61 = vmul.f32 %v3825_v8, %v7076_v43  ;;  %v3827_v18 = vmul.f32 0.044715, %v3815_v0  ;;  %v3823_v12 = vmul.f32 0.5, %v3815_v0 }
 0xfc5   : > { %v3819_v56 = vpop.f32.mrb[95].mxu1  ;;  %v3619_v53 = vmul.f32 %v3615_v59, %v3587_v51  ;;  %v3617_v33 = vadd.f32 1.0, %v4901_v10  ;;  %v3830_v25 = vmul.f32 %v3826_v41, %v3776_v20  ;;  %v3828_v28 = vmul.f32 0.044715, %v3817_v24  ;;  %v4903_v62 = vpop.eup %4902 }
 0xfc6   : > { %v3620_v31 = vmul.f32 %v3616_v1, %v3588_v50  ;;  %v3833_v3 = vmul.f32 %v3829_v61, %v7076_v43  ;;  %v3831_v15 = vmul.f32 %v3827_v18, %v3815_v0  ;;  %v3618_v16 = vadd.f32 1.0, %v4903_v62  ;;  %v7522_v61 = vld [vmem:[#allocation25_spill] sm:$0xff] }
 0xfc7   : > { %v3621_v27 = vmul.f32 %v3617_v33, %v3589_v57  ;;  %v3834_v14 = vmul.f32 %v3830_v25, %v3776_v20  ;;  %v3623_v46 = vadd.f32 %v3619_v53, %v3389_v6  ;;  %v3832_v4 = vmul.f32 %v3828_v28, %v3817_v24  ;;  %v7525_v53 = vld [vmem:[#allocation28_spill] sm:$0xff] }
 0xfc8   : > { %v3837_v36 = vadd.f32 %v3833_v3, %v7076_v43  ;;  %v3835_v35 = vmul.f32 %v3831_v15, %v3815_v0  ;;  %v3624_v2 = vadd.f32 %v3620_v31, %v3390_v7  ;;  %v3622_v9 = vmul.f32 %v3618_v16, %v3590_v29  ;;  %v7523_v43 = vld [vmem:[#allocation27_spill] sm:$0xff] }
 0xfc9   : > { %v3838_v47 = vadd.f32 %v3834_v14, %v3776_v20  ;;  %v3625_v37 = vadd.f32 %v3621_v27, %v3391_v23  ;;  %v3836_v13 = vmul.f32 %v3832_v4, %v3817_v24  ;;  %v3822_v6 = vmul.f32 0.5, %v3776_v20 }
 0xfca   : > { %v3841_v22 = vmul.f32 0.7978846, %v3837_v36  ;;  %v3839_v63 = vadd.f32 %v3835_v35, %v3815_v0  ;;  %v3626_v51 = vadd.f32 %v3622_v9, %v3392_v45  ;;  %v3824_v41 = vmul.f32 0.5, %v3817_v24  ;;  %v7526_v36 = vld [vmem:[#allocation7_spill] sm:$0xff] }
 0xfcb   : > { %v3842_v44 = vmul.f32 0.7978846, %v3838_v47  ;;  %v3840_v55 = vadd.f32 %v3836_v13, %v3817_v24  ;;  %v7524_v24 = vld [vmem:[#allocation26_spill] sm:$0xff] }
 0xfcc   : > { %4904 = vtanh.f32 %v3841_v22  ;;  %v3843_v30 = vmul.f32 0.7978846, %v3839_v63 }
 0xfcd   : > { %4906 = vtanh.f32 %v3842_v44  ;;  %v3844_v57 = vmul.f32 0.7978846, %v3840_v55  ;;  %v7527_v55 = vld [vmem:[#allocation17_spill] sm:$0xff] }
 0xfce   : > { %4908 = vtanh.f32 %v3843_v30 }
 0xfcf   : > { %4910 = vtanh.f32 %v3844_v57 }
 0xfd6   : > { %v4905_v50 = vpop.eup %4904 }
 0xfd7   : > { %v4907_v48 = vpop.eup %4906  ;;  %v3849_v39 = vadd.f32 1.0, %v4905_v50 }
 0xfd8   : > { %v4909_v40 = vpop.eup %4908  ;;  %v3850_v60 = vadd.f32 1.0, %v4907_v48 }
 0xfd9   : > { %v3853_v8 = vmul.f32 %v3849_v39, %v3821_v5  ;;  %v3851_v49 = vadd.f32 1.0, %v4909_v40  ;;  %v4911_v58 = vpop.eup %4910  ;;  %v4290_v39 = vld [vmem:[%s7268_s4 + $0x30] sm:$0xff] }
 0xfda   : > { %v3854_v59 = vmul.f32 %v3850_v60, %v3822_v6  ;;  %v3852_v42 = vadd.f32 1.0, %v4911_v58 }
 0xfdb   : > { %v3855_v29 = vmul.f32 %v3851_v49, %v3823_v12  ;;  %v3857_v10 = vadd.f32 %v3853_v8, %v3623_v46 }
 0xfdc   : > { %v3858_v23 = vadd.f32 %v3854_v59, %v3624_v2  ;;  %v3856_v1 = vmul.f32 %v3852_v42, %v3824_v41 }
 0xfdd   : > { %v7084_v18 = vmul.f32 %v3857_v10, %v7522_v61  ;;  %v3859_v56 = vadd.f32 %v3855_v29, %v3625_v37 }
 0xfde   : > { %v3860_v0 = vadd.f32 %v3856_v1, %v3626_v51  ;;  %v7096_v21 = vmul.f32 %v3858_v23, %v7524_v24 }
 0xfdf   : > { %3865 = vrot.lane.b32.xlu0 %v7084_v18, %s4926_s14  ;;  %v7089_v20 = vmul.f32 %v3859_v56, %v7523_v43 }
 0xfe0   : > { %v7101_v33 = vmul.f32 %v3860_v0, %v7525_v53  ;;  %v4615_v25 = vpack.i.bf16 %v7096_v21, %v7084_v18 }
 0xfe1   : > { %3869 = vrot.lane.b32.xlu1 %v7089_v20, %s4926_s14 }
 0xfe2   : > { %v4620_v31 = vpack.i.bf16 %v7101_v33, %v7089_v20 }
 0xfe3   : > { %3881 = vrot.lane.b32.xlu0 %v7084_v18, %s4927_s15 }
 0xfe5   : > { %3867 = vrot.lane.b32.xlu1 %v7096_v21, %s4926_s14 }
 0xfe7   : > { %3871 = vrot.lane.b32.xlu0 %v7101_v33, %s4926_s14 }
 0xfe9   : > { %3883 = vrot.lane.b32.xlu1 %v7096_v21, %s4927_s15 }
 0xfeb   : > { %3885 = vrot.lane.b32.xlu0 %v7089_v20, %s4927_s15 }
 0xfed   : > { %3887 = vrot.lane.b32.xlu1 %v7101_v33, %s4927_s15 }
 0xff1   : > { %4616 = vrot.lane.b32.xlu1 %v4615_v25, %s4929_s20 }
 0xff5   : > { %4621 = vrot.lane.b32.xlu1 %v4620_v31, %s4929_s20 }
0x1051   : > { %v3866_v3 = vpop.permute.xlu0 %3865 }
0x1053   : > { %v3870_v15 = vpop.permute.xlu1 %3869 }
0x1055   : > { %v3882_v28 = vpop.permute.xlu0 %3881 }
0x1057   : > { %v3868_v62 = vpop.permute.xlu1 %3867 }
0x1058   : > { %v3875_v7 = vsel %vm542_vm1, %v3866_v3, %v3868_v62  ;;  %v3874_v45 = vsel %vm542_vm1, %v3868_v62, %v3870_v15 }
0x1059   : > { %v3872_v27 = vpop.permute.xlu0 %3871  ;;  %v7124_v16 = vmul.f32 %v3875_v7, %v7499_v17  ;;  %v7139_v17 = vmul.f32 %v3874_v45, %v7501_v19 }
0x105a   : > { %v3873_v14 = vsel %vm542_vm1, %v3870_v15, %v3872_v27  ;;  %v3876_v46 = vsel %vm542_vm1, %v3872_v27, %v3866_v3 }
0x105b   : > { %v7127_v35 = vmul.f32 %v3876_v46, %v7526_v36  ;;  %v3884_v4 = vpop.permute.xlu1 %3883  ;;  %v7132_v47 = vmul.f32 %v3873_v14, %v7502_v26 }
0x105c   : > { %v3891_v63 = vsel %vm579_vm2, %v3882_v28, %v3884_v4 }
0x105d   : > { %v4625_v37 = vpack.i.bf16 %v7124_v16, %v7127_v35  ;;  %v3886_v2 = vpop.permute.xlu0 %3885  ;;  %v4630_v44 = vpack.i.bf16 %v7132_v47, %v7139_v17  ;;  %v7160_v57 = vmul.f32 %v3891_v63, %v7500_v54  ;;  %v4650_v54 = vpack.i.bf16 %v7101_v33, %v7084_v18 }
0x105e   : > { %v3890_v9 = vsel %vm579_vm2, %v3884_v4, %v3886_v2  ;;  %v4660_v5 = vpack.i.bf16 %v7132_v47, %v7127_v35 }
0x105f   : > { %v3888_v22 = vpop.permute.xlu1 %3887  ;;  %4626 = vrot.lane.b32.xlu0 %v4625_v37, %s4929_s20  ;;  %v7151_v30 = vmul.f32 %v3890_v9, %v7503_v38  ;;  %v4645_v38 = vpack.i.bf16 %v7089_v20, %v7096_v21 }
0x1060   : > { %v3889_v26 = vsel %vm579_vm2, %v3886_v2, %v3888_v22  ;;  %v3892_v13 = vsel %vm579_vm2, %v3888_v22, %v3882_v28 }
0x1061   : > { %v7154_v19 = vmul.f32 %v3889_v26, %v7504_v32  ;;  %v7157_v51 = vmul.f32 %v3892_v13, %v7527_v55  ;;  %v4635_v48 = vpack.i.bf16 %v7151_v30, %v7160_v57  ;;  %v4655_v32 = vpack.i.bf16 %v7139_v17, %v7124_v16 }
0x1063   : > { %v4640_v50 = vpack.i.bf16 %v7157_v51, %v7154_v19  ;;  %4631 = vrot.lane.b32.xlu0 %v4630_v44, %s4929_s20  ;;  %v4617_v40 = vpop.permute.xlu1 %4616 }
0x1064   : > { %v4619_v6 = vunpack.i.h.bf16 %v4617_v40  ;;  %v4618_v60 = vunpack.i.l.bf16 %v4617_v40 }
0x1065   : > { %4641 = vrot.lane.b32.xlu1 %v4640_v50, %s4929_s20 }
0x1066   : > { %v3923_v42 = vsel %vm620_vm3, %v4618_v60, %v4619_v6 }
0x1067   : > { %4636 = vrot.lane.b32.xlu0 %v4635_v48, %s4929_s20  ;;  %v4622_v8 = vpop.permute.xlu1 %4621 }
0x1068   : > { %v4624_v59 = vunpack.i.h.bf16 %v4622_v8  ;;  %v4623_v29 = vunpack.i.l.bf16 %v4622_v8 }
0x1069   : > { %4646 = vrot.lane.b32.xlu1 %v4645_v38, %s4930_s27 }
0x106a   : > { %v3922_v56 = vsel %vm620_vm3, %v4619_v6, %v4623_v29  ;;  %v3924_v43 = vsel %vm620_vm3, %v4624_v59, %v4618_v60  ;;  %v3921_v7 = vsel %vm620_vm3, %v4623_v29, %v4624_v59 }
0x106b   : > { %4656 = vrot.lane.b32.xlu0 %v4655_v32, %s4930_s27 }
0x106d   : > { %4651 = vrot.lane.b32.xlu1 %v4650_v54, %s4930_s27 }
0x106f   : > { %4661 = vrot.lane.b32.xlu0 %v4660_v5, %s4930_s27  ;;  %v3981_v5 = vpack.c.bf16 %v7160_v57, %v7084_v18 }
0x1071   : > { %4671 = vrot.lane.b32.xlu1 %v4640_v50, %s4930_s27 }
0x1073   : > { %4666 = vrot.lane.b32.xlu0 %v4635_v48, %s4930_s27 }
0x1077   : > { %3995 = vperm.xlu0 %4323, %v4290_v39  }
0x10d1   : > { %v4627_v12 = vpop.permute.xlu0 %4626 }
0x10d2   : > { %v4629_v49 = vunpack.i.h.bf16 %v4627_v12  ;;  %v4628_v58 = vunpack.i.l.bf16 %v4627_v12 }
0x10d4   : > { %v3911_v41 = vsel %vm620_vm3, %v4628_v58, %v4629_v49 }
0x10d5   : > { %v4632_v10 = vpop.permute.xlu0 %4631  ;;  %v3974_v23 = vpack.c.bf16 %v3923_v42, %v3911_v41 }
0x10d6   : > { %v4634_v1 = vunpack.i.h.bf16 %v4632_v10  ;;  %v4633_v61 = vunpack.i.l.bf16 %v4632_v10 }
0x10d7   : > { %v4642_v0 = vpop.permute.xlu1 %4641  ;;  %4013 = vmatprep.subr.bf16.mxu0 %v3974_v23 }
0x10d8   : > { %v3912_v24 = vsel %vm620_vm3, %v4634_v1, %v4628_v58  ;;  %v3910_v53 = vsel %vm620_vm3, %v4629_v49, %v4633_v61  ;;  %v4644_v25 = vunpack.i.h.bf16 %v4642_v0  ;;  %v4643_v31 = vunpack.i.l.bf16 %v4642_v0 }
0x10d9   : > { %v3973_v3 = vpack.c.bf16 %v3924_v43, %v3912_v24  ;;  %v3975_v15 = vpack.c.bf16 %v3922_v56, %v3910_v53  ;;  %v4637_v28 = vpop.permute.xlu0 %4636  ;;  %v3909_v62 = vsel %vm620_vm3, %v4633_v61, %v4634_v1 }
0x10da   : > { %v4639_v27 = vunpack.i.h.bf16 %v4637_v28  ;;  %v4638_v14 = vunpack.i.l.bf16 %v4637_v28  ;;  %v3976_v46 = vpack.c.bf16 %v3921_v7, %v3909_v62  ;;  %v3933_v36 = vsel %vm620_vm3, %v4643_v31, %v4644_v25 }
0x10db   : > { %v4647_v4 = vpop.permute.xlu1 %4646  ;;  %4014 = vmatpush1.bf16.msra.mxu0 %v3973_v3  ;;  %v3980_v2 = vpack.c.bf16 %v7132_v47, %v3933_v36  ;;  %v3982_v47 = vpack.c.bf16 %v7151_v30, %v7096_v21 }
0x10dc   : > { %v3934_v45 = vsel %vm620_vm3, %v4639_v27, %v4643_v31  ;;  %v3936_v37 = vsel %vm620_vm3, %v4644_v25, %v4638_v14  ;;  %4053 = vmatprep.subr.bf16.mxu1 %v3976_v46  ;;  %v4649_v63 = vunpack.i.h.bf16 %v4647_v4  ;;  %v3935_v13 = vsel %vm620_vm3, %v4638_v14, %v4639_v27 }
0x10dd   : > { %v3977_v9 = vpack.c.bf16 %v7127_v35, %v3936_v37  ;;  %v3979_v22 = vpack.c.bf16 %v7139_v17, %v3934_v45  ;;  %4054 = vmatpush1.bf16.msra.mxu1 %v3975_v15  ;;  %v4657_v26 = vpop.permute.xlu0 %4656  ;;  %v4648_v44 = vunpack.i.l.bf16 %v4647_v4  ;;  %v3978_v48 = vpack.c.bf16 %v7124_v16, %v3935_v13 }
0x10de   : > { %v4659_v55 = vunpack.i.h.bf16 %v4657_v26  ;;  %v4658_v50 = vunpack.i.l.bf16 %v4657_v26  ;;  %4055 = vmatprep.subr.bf16.mxu1 %v3980_v2  ;;  %v3984_v17 = vpack.c.bf16 %v7157_v51, %v7101_v33  ;;  %v3983_v16 = vpack.c.bf16 %v7154_v19, %v7089_v20 }
0x10df   : > { %v4652_v38 = vpop.permute.xlu1 %4651  ;;  %4015 = vmatprep.subr.bf16.mxu0 %v3978_v48  ;;  %v3958_v30 = vsel %vm654_vm6, %v4648_v44, %v4649_v63 }
0x10e0   : > { %v4654_v32 = vunpack.i.h.bf16 %v4652_v38  ;;  %v4653_v35 = vunpack.i.l.bf16 %v4652_v38  ;;  %v3946_v54 = vsel %vm654_vm6, %v4658_v50, %v4659_v55  ;;  %4016 = vmatpush1.bf16.msra.mxu0 %v3977_v9 }
0x10e1   : > { %4056 = vmatpush1.bf16.msra.mxu1 %v3979_v22  ;;  %v4662_v39 = vpop.permute.xlu0 %4661  ;;  %4017 = vmatprep.subr.bf16.mxu0 %v3982_v47  ;;  %v3986_v57 = vpack.c.bf16 %v3958_v30, %v3946_v54 }
0x10e2   : > { %v4664_v40 = vunpack.i.h.bf16 %v4662_v39  ;;  %v4663_v21 = vunpack.i.l.bf16 %v4662_v39  ;;  %4057 = vmatprep.subr.bf16.mxu1 %v3984_v17  ;;  %v3957_v33 = vsel %vm654_vm6, %v4649_v63, %v4654_v32  ;;  %v3959_v51 = vsel %vm654_vm6, %v4653_v35, %v4648_v44 }
0x10e3   : > { %v4672_v18 = vpop.permute.xlu1 %4671  ;;  %v3960_v6 = vsel %vm654_vm6, %v4654_v32, %v4653_v35 }
0x10e4   : > { %v3945_v20 = vsel %vm654_vm6, %v4659_v55, %v4664_v40  ;;  %v3947_v19 = vsel %vm654_vm6, %v4663_v21, %v4658_v50  ;;  %v4674_v60 = vunpack.i.h.bf16 %v4672_v18  ;;  %v4673_v8 = vunpack.i.l.bf16 %v4672_v18  ;;  %4018 = vmatpush1.bf16.msra.mxu0 %v3981_v5 }
0x10e5   : > { %v3985_v12 = vpack.c.bf16 %v3959_v51, %v3947_v19  ;;  %v3987_v49 = vpack.c.bf16 %v3957_v33, %v3945_v20  ;;  %4058 = vmatpush1.bf16.msra.mxu1 %v3983_v16  ;;  %v4667_v58 = vpop.permute.xlu0 %4666  ;;  %v3948_v59 = vsel %vm654_vm6, %v4664_v40, %v4663_v21  ;;  %4019 = vmatprep.subr.bf16.mxu0 %v3986_v57 }
0x10e6   : > { %v3969_v29 = vsel %vm654_vm6, %v4673_v8, %v4674_v60  ;;  %v4669_v41 = vunpack.i.h.bf16 %v4667_v58  ;;  %v4668_v42 = vunpack.i.l.bf16 %v4667_v58  ;;  %v3988_v10 = vpack.c.bf16 %v3960_v6, %v3948_v59 }
0x10e7   : > { %v3991_v23 = vpack.c.bf16 %v3969_v29, %v3969_v29 }
0x10e8   : > { %v3970_v1 = vsel %vm654_vm6, %v4669_v41, %v4673_v8  ;;  %v3972_v61 = vsel %vm654_vm6, %v4674_v60, %v4668_v42  ;;  %4059 = vmatprep.subr.bf16.mxu1 %v3988_v10  ;;  %v3971_v56 = vsel %vm654_vm6, %v4668_v42, %v4669_v41  ;;  %4020 = vmatpush1.bf16.msra.mxu0 %v3985_v12 }
0x10e9   : > { %v3990_v43 = vpack.c.bf16 %v3970_v1, %v3970_v1  ;;  %v3992_v0 = vpack.c.bf16 %v3972_v61, %v3972_v61  ;;  %4060 = vmatpush1.bf16.msra.mxu1 %v3987_v49  ;;  %v3989_v24 = vpack.c.bf16 %v3971_v56, %v3971_v56  ;;  %v4008_v25 = vsel %vm451_vm0, %v3991_v23, 0 }
0x10eb   : > { %4291 = vmatprep.subr.msk.bf16.mxu0 %vm451_vm0, %v3990_v43  ;;  %4293 = vmatprep.subr.msk.bf16.mxu1 %vm451_vm0, %v3992_v0  ;;  %v4002_v53 = vsel %vm451_vm0, %v3989_v24, 0 }
0x10ec   : > { %4022 = vmatpush1.bf16.msra.mxu0 %v4002_v53 }
0x10ed   : > { %4062 = vmatpush1.bf16.msra.mxu1 %v4008_v25 }
0x10ef   : > { %4292 = vmatmul.mubr.msk.bf16.vlgmr.msra.gmra.mrb[36].mxu0 %vm705_vm7, %v4289_v34 }
0x10f0   : > { %4294 = vmatmul.mubr.msk.bf16.vlgmr.msra.gmra.mrb[96].mxu1 %vm705_vm7, %v4289_v34 }
0x10f6   : > { %v3996_v31 = vpop.permute.xlu0 %3995 }
0x11c2   : > { %v4047_v3 = vpop.f32.mrb[36].mxu0 }
0x11c3   : > { %v4087_v15 = vpop.f32.mrb[96].mxu1  ;;  %v4048_v62 = vpop.f32.mrb[37].mxu0 }
0x11c4   : > { %v4088_v28 = vadd.f32 %v4087_v15, %v3996_v31  ;;  %v4089_v7 = vpop.f32.mrb[97].mxu1  ;;  %v4049_v27 = vadd.f32 %v4048_v62, %v3996_v31  ;;  %v4050_v14 = vpop.f32.mrb[38].mxu0 }
0x11c5   : > { %v4090_v46 = vpop.f32.mrb[98].mxu1  ;;  %v4051_v4 = vpop.f32.mrb[39].mxu0 }
0x11c6   : > { %v4096_v36 = vmul.f32 0.044715, %v4088_v28  ;;  %v4091_v45 = vpop.f32.mrb[99].mxu1  ;;  %v4095_v37 = vmul.f32 0.044715, %v4049_v27  ;;  %v4094_v38 = vmul.f32 0.5, %v4088_v28 }
0x11c7   : > { %v4093_v32 = vmul.f32 0.5, %v4049_v27 }
0x11c8   : > { %v4098_v2 = vmul.f32 %v4096_v36, %v4088_v28  ;;  %v4097_v9 = vmul.f32 %v4095_v37, %v4049_v27 }
0x11ca   : > { %v4100_v22 = vmul.f32 %v4098_v2, %v4088_v28  ;;  %v4099_v63 = vmul.f32 %v4097_v9, %v4049_v27 }
0x11cc   : > { %v4102_v26 = vadd.f32 %v4100_v22, %v4088_v28  ;;  %v4101_v13 = vadd.f32 %v4099_v63, %v4049_v27 }
0x11ce   : > { %v4104_v44 = vmul.f32 0.7978846, %v4102_v26  ;;  %v4103_v55 = vmul.f32 0.7978846, %v4101_v13 }
0x11d0   : > { %4912 = vtanh.f32 %v4104_v44 }
0x11d1   : > { %4914 = vtanh.f32 %v4103_v55 }
0x11da   : > { %v4913_v50 = vpop.eup %4912 }
0x11db   : > { %v4915_v48 = vpop.eup %4914  ;;  %v4108_v47 = vadd.f32 1.0, %v4913_v50 }
0x11dc   : > { %v4107_v35 = vadd.f32 1.0, %v4915_v48 }
0x11dd   : > { %v4110_v17 = vmul.f32 %v4108_v47, %v4094_v38 }
0x11de   : > { %v4109_v54 = vmul.f32 %v4107_v35, %v4093_v32 }
0x11df   : > { %v4112_v5 = vadd.f32 %v4110_v17, %v6587_v52 }
0x11e0   : > { %v4111_v39 = vadd.f32 %v4109_v54, %v6583_v11 }
0x11e1   : > { %4114 = vst [vmem:[%s440_s18 + $0x8] sm:$0xff] %v4112_v5 }
0x11e2   : > { %4113 = vst [vmem:[%s440_s18] sm:$0xff] %v4111_v39 }
0x11e3 PF: > { %s23_s25 = sadd.s32 1, %s4922_s25  }
0x11e4   : > { %p20_p4 = scmp.ge.s32.totalorder %s23_s25, 4  }
0x11e6   :  { %22 = sbr.rel (!%p20_p4) target bundleno = 1 (0x1), region = 159 }

</bundles_post_ra>
